<compile_context>
chip_gen: v6e
topology: v6e:2x2x1
jax: 0.10.0
libtpu: 0.0.40
codegen_flags: <defaults>
</compile_context>

<pallas_src>
import functools

import jax
import jax.numpy as jnp
from jax.experimental import pallas as pl
from jax.experimental.pallas import tpu as pltpu

LANE = 128
SUBLANE = 8
NEG_INF = -1e30  # finite "minus infinity" for padded logit lanes


def mlp_logsoftmax_kernel(x_ref, w1q_ref, w1s_ref, b1_ref, w2_ref, b2_ref, o_ref):
    # Hidden layer: int8 W1 cast to bf16 (exact), bf16 x bf16 MXU matmul with
    # f32 accumulation, then per-output-channel dequant scale, bias and ReLU.
    w1 = w1q_ref[...].astype(jnp.bfloat16)
    h = jnp.dot(x_ref[...].astype(jnp.bfloat16), w1,
                preferred_element_type=jnp.float32)
    h = jnp.maximum(h * w1s_ref[...] + b1_ref[...], 0.0)        # (tile_b, H) f32

    # Output layer: (tile_b, H) @ (H, C_pad).  Padded classes carry a -1e30
    # bias so they drop out of the max / logsumexp (exp underflows to 0).
    z = jnp.dot(h.astype(jnp.bfloat16), w2_ref[...],
                preferred_element_type=jnp.float32)
    z = z + b2_ref[...]                                          # (tile_b, C_pad)

    # Numerically stable log_softmax over the lane-dense class dimension.
    m = jnp.max(z, axis=1, keepdims=True)
    s = z - m
    lse = jnp.log(jnp.sum(jnp.exp(s), axis=1, keepdims=True))
    o_ref[...] = s - lse


def prepare_params(w1, b1, w2, b2):
    """One-time parameter prep (NOT in the per-call hot path).

    w1: (D_in, H), b1: (H,), w2: (H, C), b2: (C,) — any float dtype.
    Returns kernel-ready arrays:
      w1_q int8 (D_in, H), w1_s f32 (1, H)  symmetric per-out-channel quant
      b1_f f32 (1, H)
      w2_bf bf16 (H, C_pad) zero-padded, b2_f f32 (1, C_pad) with -1e30 padding.
    """
    d_in, H = w1.shape
    C = w2.shape[1]
    c_pad = max(LANE, pl.cdiv(C, LANE) * LANE)

    w1_f = jnp.asarray(w1, jnp.float32)
    absmax = jnp.max(jnp.abs(w1_f), axis=0, keepdims=True)            # (1, H)
    w1_s = jnp.where(absmax > 0.0, absmax / 127.0, 1.0).astype(jnp.float32)
    w1_q = jnp.clip(jnp.round(w1_f / w1_s), -127.0, 127.0).astype(jnp.int8)

    b1_f = jnp.reshape(b1, (1, H)).astype(jnp.float32)
    w2_bf = jnp.zeros((H, c_pad), jnp.bfloat16).at[:, :C].set(
        jnp.asarray(w2, jnp.bfloat16))
    b2_f = jnp.full((1, c_pad), NEG_INF, jnp.float32).at[:, :C].set(
        jnp.reshape(b2, (C,)).astype(jnp.float32))
    return w1_q, w1_s, b1_f, w2_bf, b2_f


def _choose_tile_b(B):
    # One grid step for small/medium batch: v5e/v6e have a single TensorCore
    # (per-step overhead ~0.35 us would be pure cost), and on v7x splitting
    # duplicates the weight DMA per core, which only pays when per-core compute
    # exceeds it (roughly B >= ~1k for this net).
    if B <= 1024:
        return pl.cdiv(B, SUBLANE) * SUBLANE
    return 256


@functools.partial(jax.jit, static_argnames=("num_classes",))
def fully_connected_net(x, w1_q, w1_s, b1, w2, b2, *, num_classes):
    """x: (B, D_in) bf16 (preferred) or f32.  Returns (B, num_classes) f32
    log-probabilities."""
    B, d_in = x.shape
    H = w1_q.shape[1]
    c_pad = w2.shape[1]

    tile_b = _choose_tile_b(B)
    b_pad = pl.cdiv(B, tile_b) * tile_b
    x_p = x if b_pad == B else jnp.pad(x, ((0, b_pad - B), (0, 0)))

    grid = (b_pad // tile_b,)

    cost = pl.CostEstimate(
        flops=2 * b_pad * (d_in * H + H * c_pad),
        transcendentals=b_pad * c_pad,
        bytes_accessed=(x_p.size * x_p.dtype.itemsize
                        + w1_q.size + w1_s.size * 4 + b1.size * 4
                        + w2.size * 2 + b2.size * 4 + b_pad * c_pad * 4),
    )

    # Constant-index weights/biases are fetched once and stay VMEM-resident
    # across all batch tiles; Buffered(1) turns off the default double
    # buffering for blocks that never change (halves resident weight VMEM,
    # which is the first limit when scaling H on v7x's 64 MiB).
    def const_spec(shape):
        return pl.BlockSpec(shape, lambda i: (0,) * len(shape),
                            pipeline_mode=pl.Buffered(1))

    out = pl.pallas_call(
        mlp_logsoftmax_kernel,
        out_shape=jax.ShapeDtypeStruct((b_pad, c_pad), jnp.float32),
        grid=grid,
        in_specs=[
            pl.BlockSpec((tile_b, d_in), lambda i: (i, 0)),   # x: batch-tiled
            const_spec((d_in, H)),                            # W1 (int8)
            const_spec((1, H)),                               # W1 scale (f32)
            const_spec((1, H)),                               # b1
            const_spec((H, c_pad)),                           # W2 (bf16, padded)
            const_spec((1, c_pad)),                           # b2 (+ -1e30 pad)
        ],
        out_specs=pl.BlockSpec((tile_b, c_pad), lambda i: (i, 0)),
        compiler_params=pltpu.CompilerParams(
            dimension_semantics=("parallel",),
            vmem_limit_bytes=48 * 1024 * 1024),
        cost_estimate=cost,
    )(x_p, w1_q, w1_s, b1, w2, b2)

    # Strip batch padding and the padded class lanes.
    return out[:B, :num_classes]


def _reference_quantized(x, w1_q, w1_s, b1, w2, b2, num_classes):
    # Same quantized bf16/f32 math as the kernel, in plain JAX.
    h = jnp.dot(x.astype(jnp.bfloat16), w1_q.astype(jnp.bfloat16),
                preferred_element_type=jnp.float32) * w1_s + b1
    h = jnp.maximum(h, 0.0)
    z = jnp.dot(h.astype(jnp.bfloat16), w2[:, :num_classes],
                preferred_element_type=jnp.float32) + b2[:, :num_classes]
    return jax.nn.log_softmax(z, axis=1)


def _reference_f32(x, w1, b1, w2, b2):
    # Full-precision f32 reference, to quantify the int8/bf16 drift.
    h = jnp.maximum(jnp.dot(x, w1) + jnp.reshape(b1, (1, -1)), 0.0)
    z = jnp.dot(h, w2) + jnp.reshape(b2, (1, -1))
    return jax.nn.log_softmax(z, axis=1)


if __name__ == "__main__":
    layers = [784, 800, 10]   # FullyConnectedNet default
    batch = 32                # small demo batch (multiple of 8 -> no padding)

    key = jax.random.PRNGKey(0)
    kx, k1, k2, k3, k4 = jax.random.split(key, 5)

    d_in, d_h, d_out = layers
    lim1 = 1.0 / jnp.sqrt(jnp.float32(d_in))
    lim2 = 1.0 / jnp.sqrt(jnp.float32(d_h))
    # torch.nn.Linear-style init U(-1/sqrt(fan_in), 1/sqrt(fan_in)), stored (in, out).
    w1 = jax.random.uniform(k1, (d_in, d_h), jnp.float32, -lim1, lim1)
    b1 = jax.random.uniform(k2, (d_h,), jnp.float32, -lim1, lim1)
    w2 = jax.random.uniform(k3, (d_h, d_out), jnp.float32, -lim2, lim2)
    b2 = jax.random.uniform(k4, (d_out,), jnp.float32, -lim2, lim2)

    # Producer emits bf16 activations (no wrapper astype in the hot path).
    x = jax.random.normal(kx, (batch, d_in), jnp.float32).astype(jnp.bfloat16)

    # One-time weight prep (quantize / pad / cast) — outside the forward pass.
    w1_q, w1_s, b1_f, w2_bf, b2_f = prepare_params(w1, b1, w2, b2)

    out = fully_connected_net(x, w1_q, w1_s, b1_f, w2_bf, b2_f, num_classes=d_out)
    jax.block_until_ready(out)

    assert out.shape == (batch, d_out)
    assert out.dtype == jnp.float32

    # Tight check vs. a reference using the exact same quantized math.
    ref_q = _reference_quantized(x, w1_q, w1_s, b1_f, w2_bf, b2_f, d_out)
    assert jnp.allclose(out, ref_q, atol=5e-3, rtol=5e-3), "mismatch vs quantized reference"

    # Quantify drift vs. a full-precision f32 reference (the torch module is
    # f64; f32 is the attainable TPU baseline).
    ref_f32 = _reference_f32(x.astype(jnp.float32), w1, b1, w2, b2)
    max_err = float(jnp.max(jnp.abs(out - ref_f32)))
    assert max_err < 0.1, f"excessive drift vs f32 reference: {max_err}"

    # Sanity: log-probabilities exponentiate and sum to 1 per row.
    assert jnp.allclose(jnp.sum(jnp.exp(out), axis=1), 1.0, atol=1e-3)

    print("KERNEL_OK")
</pallas_src>

<mosaic_0001>
module attributes {stable_mosaic.version = 11 : i64} {
  func.func @mlp_logsoftmax_kernel(%arg0: i32, %arg1: memref<32x784xbf16, #tpu.memory_space<vmem>>, %arg2: memref<784x800xi8, #tpu.memory_space<vmem>>, %arg3: memref<1x800xf32, #tpu.memory_space<vmem>>, %arg4: memref<1x800xf32, #tpu.memory_space<vmem>>, %arg5: memref<800x128xbf16, #tpu.memory_space<vmem>>, %arg6: memref<1x128xf32, #tpu.memory_space<vmem>>, %arg7: memref<32x128xf32, #tpu.memory_space<vmem>>) attributes {dimension_semantics = [#tpu.dimension_semantics<parallel>], iteration_bounds = array<i64: 1>, scalar_prefetch = 0 : i64, scratch_operands = 0 : i64, tpu.core_type = #tpu.core_type<tc>, window_params = [{transform_indices = @transform_0, window_bounds = array<i64: 32, 784>}, {pipeline_mode = #tpu.pipeline_mode<synchronous>, transform_indices = @transform_1, window_bounds = array<i64: 784, 800>}, {pipeline_mode = #tpu.pipeline_mode<synchronous>, transform_indices = @transform_2, window_bounds = array<i64: 1, 800>}, {pipeline_mode = #tpu.pipeline_mode<synchronous>, transform_indices = @transform_3, window_bounds = array<i64: 1, 800>}, {pipeline_mode = #tpu.pipeline_mode<synchronous>, transform_indices = @transform_4, window_bounds = array<i64: 800, 128>}, {pipeline_mode = #tpu.pipeline_mode<synchronous>, transform_indices = @transform_5, window_bounds = array<i64: 1, 128>}, {transform_indices = @transform_6, window_bounds = array<i64: 32, 128>}]} {
    %c0 = arith.constant 0 : index
    %c0_0 = arith.constant 0 : index
    %0 = vector.load %arg2[%c0, %c0_0] : memref<784x800xi8, #tpu.memory_space<vmem>>, vector<784x800xi8>
    %1 = arith.sitofp %0 : vector<784x800xi8> to vector<784x800xbf16>
    %c0_1 = arith.constant 0 : index
    %c0_2 = arith.constant 0 : index
    %2 = vector.load %arg1[%c0_1, %c0_2] : memref<32x784xbf16, #tpu.memory_space<vmem>>, vector<32x784xbf16>
    %cst = arith.constant dense<0.000000e+00> : vector<32x800xf32>
    %3 = tpu.matmul %2, %1, %cst {dimension_numbers = #tpu.dot_dimension_numbers<[1], [0], [0], [1], [0, 0, 1, 1], [], []>} : vector<32x784xbf16>, vector<784x800xbf16>, vector<32x800xf32> -> vector<32x800xf32>
    %c0_3 = arith.constant 0 : index
    %c0_4 = arith.constant 0 : index
    %4 = vector.load %arg3[%c0_3, %c0_4] : memref<1x800xf32, #tpu.memory_space<vmem>>, vector<1x800xf32>
    %5 = vector.broadcast %4 : vector<1x800xf32> to vector<32x800xf32>
    %6 = arith.mulf %3, %5 : vector<32x800xf32>
    %c0_5 = arith.constant 0 : index
    %c0_6 = arith.constant 0 : index
    %7 = vector.load %arg4[%c0_5, %c0_6] : memref<1x800xf32, #tpu.memory_space<vmem>>, vector<1x800xf32>
    %8 = vector.broadcast %7 : vector<1x800xf32> to vector<32x800xf32>
    %9 = arith.addf %6, %8 : vector<32x800xf32>
    %cst_7 = arith.constant 0.000000e+00 : f32
    %10 = vector.broadcast %cst_7 : f32 to vector<32x800xf32>
    %11 = arith.maximumf %9, %10 : vector<32x800xf32>
    %12 = arith.truncf %11 : vector<32x800xf32> to vector<32x800xbf16>
    %c0_8 = arith.constant 0 : index
    %c0_9 = arith.constant 0 : index
    %13 = vector.load %arg5[%c0_8, %c0_9] : memref<800x128xbf16, #tpu.memory_space<vmem>>, vector<800x128xbf16>
    %cst_10 = arith.constant dense<0.000000e+00> : vector<32x128xf32>
    %14 = tpu.matmul %12, %13, %cst_10 {dimension_numbers = #tpu.dot_dimension_numbers<[1], [0], [0], [1], [0, 0, 1, 1], [], []>} : vector<32x800xbf16>, vector<800x128xbf16>, vector<32x128xf32> -> vector<32x128xf32>
    %c0_11 = arith.constant 0 : index
    %c0_12 = arith.constant 0 : index
    %15 = vector.load %arg6[%c0_11, %c0_12] : memref<1x128xf32, #tpu.memory_space<vmem>>, vector<1x128xf32>
    %16 = vector.broadcast %15 : vector<1x128xf32> to vector<32x128xf32>
    %17 = arith.addf %14, %16 : vector<32x128xf32>
    %cst_13 = arith.constant dense<0xFF800000> : vector<32xf32>
    %18 = vector.multi_reduction <maximumf>, %17, %cst_13 [1] : vector<32x128xf32> to vector<32xf32>
    %19 = vector.shape_cast %18 : vector<32xf32> to vector<32x1xf32>
    %20 = vector.broadcast %19 : vector<32x1xf32> to vector<32x128xf32>
    %21 = arith.subf %17, %20 : vector<32x128xf32>
    %22 = math.exp %21 : vector<32x128xf32>
    %cst_14 = arith.constant dense<0.000000e+00> : vector<32xf32>
    %23 = vector.multi_reduction <add>, %22, %cst_14 [1] : vector<32x128xf32> to vector<32xf32>
    %24 = vector.shape_cast %23 : vector<32xf32> to vector<32x1xf32>
    %25 = math.log %24 : vector<32x1xf32>
    %26 = vector.broadcast %25 : vector<32x1xf32> to vector<32x128xf32>
    %27 = arith.subf %21, %26 : vector<32x128xf32>
    %c0_15 = arith.constant 0 : index
    %c0_16 = arith.constant 0 : index
    %28 = vector.load %arg7[%c0_15, %c0_16] : memref<32x128xf32, #tpu.memory_space<vmem>>, vector<32x128xf32>
    tpu.vector_store %arg7[%c0_15, %c0_16], %27 {strides = array<i32>} : memref<32x128xf32, #tpu.memory_space<vmem>>, vector<32x128xf32>,
    return
  }
  func.func @transform_0(%arg0: i32) -> (i32, i32) {
    %c0_i32 = arith.constant 0 : i32
    %c0_i32_0 = arith.constant 0 : i32
    return %arg0, %c0_i32 : i32, i32
  }
  func.func @transform_1(%arg0: i32) -> (i32, i32) {
    %c0_i32 = arith.constant 0 : i32
    %c0_i32_0 = arith.constant 0 : i32
    %c0_i32_1 = arith.constant 0 : i32
    return %c0_i32, %c0_i32_0 : i32, i32
  }
  func.func @transform_2(%arg0: i32) -> (i32, i32) {
    %c0_i32 = arith.constant 0 : i32
    %c0_i32_0 = arith.constant 0 : i32
    %c0_i32_1 = arith.constant 0 : i32
    return %c0_i32, %c0_i32_0 : i32, i32
  }
  func.func @transform_3(%arg0: i32) -> (i32, i32) {
    %c0_i32 = arith.constant 0 : i32
    %c0_i32_0 = arith.constant 0 : i32
    %c0_i32_1 = arith.constant 0 : i32
    return %c0_i32, %c0_i32_0 : i32, i32
  }
  func.func @transform_4(%arg0: i32) -> (i32, i32) {
    %c0_i32 = arith.constant 0 : i32
    %c0_i32_0 = arith.constant 0 : i32
    %c0_i32_1 = arith.constant 0 : i32
    return %c0_i32, %c0_i32_0 : i32, i32
  }
  func.func @transform_5(%arg0: i32) -> (i32, i32) {
    %c0_i32 = arith.constant 0 : i32
    %c0_i32_0 = arith.constant 0 : i32
    %c0_i32_1 = arith.constant 0 : i32
    return %c0_i32, %c0_i32_0 : i32, i32
  }
  func.func @transform_6(%arg0: i32) -> (i32, i32) {
    %c0_i32 = arith.constant 0 : i32
    %c0_i32_0 = arith.constant 0 : i32
    return %arg0, %c0_i32 : i32, i32
  }
}

</mosaic_0001>

<bundles_post_ra>
// kernel: fully_connected_net.1
= control target key start
LH: loop header
LB: loop body
LE: loop exit
PB: predicated region body
PF: predicated region fallthrough
CT: control target
= control target key end

     0   :  { %11 = vsyncpa [#allocation3], 0  ;;  %s6628_s0 = inlined_call_operand.hbm [shape: bf16[32,784], index: 0, kind: input, shape index: {}]   ;;  %s6629_s1 = inlined_call_operand.hbm [shape: s8[784,800], index: 1, kind: input, shape index: {}]   ;;  %s6630_s2 = inlined_call_operand.hbm [shape: f32[1,800], index: 2, kind: input, shape index: {}]   ;;  %s6631_s3 = inlined_call_operand.hbm [shape: f32[1,800], index: 3, kind: input, shape index: {}]   ;;  %s6632_s4 = inlined_call_operand.hbm [shape: bf16[800,128], index: 4, kind: input, shape index: {}]   ;;  %s6633_s5 = inlined_call_operand.vmem [shape: f32[1,128], index: 5, kind: input, shape index: {}]   ;;  %s6634_s6 = inlined_call_operand.vmem [shape: f32[32,128], index: 6, kind: output, shape index: {}]  }
   0x1   :  { %12 = vsyncpa [#allocation5], 0 }
   0x2   :  { %13 = vsyncpa [#allocation8], 0  ;;  %s5027_s21 = smov [#allocation4]  }
   0x3   :  { %s31_s22 = sshll.u32 %s5027_s21, 4  ;;  %s32_s22 = int_to_ptr.vmem [resolvable:$true] %s31_s22 }
   0x4   :  { %s4929_s23 = scalar_lea.vmem %s32_s22, 21952  ;;  %p4934_p1 = scmp.lt.s32.totalorder %s32_s22, %s32_s22 }
   0x5   :  { %p4930_p0 = scmp.ne.s32.totalorder %s32_s22, %s4929_s23  ;;  %p4935_p2 = scmp.lt.s32.totalorder %s4929_s23, %s4929_s23 }
   0x7   :  { %p4936_p3 = por %p4935_p2, %p4934_p1 }
   0x9   :  { %p4937_p4 = pnand %p4936_p3, %p4930_p0 }
   0xb   :  { %4940 = shalt.err (!%p4937_p4)
}
   0xc   :  { %s5028_s24 = smov 224   ;;  %s5029_s25 = smov 14  }
   0xd   :  { %37 = dma.hbm_to_vmem [thread:$0]  %s6629_s1, 21952, %s32_s22, [#allocation5], %s5028_s24, %s5028_s24, %s5029_s25  }
   0xe   :  { %s5030_s28 = smov [#allocation7]   ;;  %s5031_s30 = smov [#allocation2]  }
   0xf   :  { %s54_s29 = sshll.u32 %s5030_s28, 4  ;;  %s19_s7 = sshll.u32 %s5031_s30, 4  ;;  %s55_s29 = int_to_ptr.vmem [resolvable:$true] %s54_s29  ;;  %s20_s7 = int_to_ptr.vmem [resolvable:$true] %s19_s7 }
  0x10   :  { %s4949_s8 = scalar_lea.vmem %s55_s29, 112  ;;  %s4953_s9 = scalar_lea.vmem %s55_s29, 128 }
  0x11   :  { %p4950_p5 = scmp.ne.s32.totalorder %s55_s29, %s4949_s8  ;;  %p4954_p6 = scmp.lt.s32.totalorder %s55_s29, %s55_s29 }
  0x12   :  { %p4955_p7 = scmp.lt.s32.totalorder %s4953_s9, %s4949_s8 }
  0x14   :  { %p4956_p8 = por %p4955_p7, %p4954_p6 }
  0x16   :  { %p4957_p9 = pnand %p4956_p8, %p4950_p5 }
  0x18   :  { %4960 = shalt.err (!%p4957_p9)
}
  0x19   :  { %57 = dma.hbm_to_vmem [thread:$0]  %s6631_s3, 112, %s55_s29, [#allocation8]  }
  0x1a   :  { %s4969_s12 = scalar_lea.vmem %s20_s7, 1792  ;;  %p4974_p11 = scmp.lt.s32.totalorder %s20_s7, %s20_s7 }
  0x1b   :  { %p4970_p10 = scmp.ne.s32.totalorder %s20_s7, %s4969_s12  ;;  %p4975_p12 = scmp.lt.s32.totalorder %s4969_s12, %s4969_s12 }
  0x1d   :  { %p4976_p13 = por %p4975_p12, %p4974_p11 }
  0x1f   :  { %p4977_p0 = pnand %p4976_p13, %p4970_p10 }
  0x21   :  { %4980 = shalt.err (!%p4977_p0)
}
  0x22   :  { %s5032_s1 = smov 448   ;;  %s5033_s13 = smov 28  }
  0x23   :  { %25 = dma.hbm_to_vmem [thread:$0]  %s6628_s0, 1792, %s20_s7, [#allocation3], %s5032_s1, %s5032_s1, %s5033_s13  }
  0x24   :  { %s5034_s16 = smov [#allocation6]   ;;  %s5035_s18 = smov [#allocation9]  }
  0x25   :  { %s44_s17 = sshll.u32 %s5034_s16, 4  ;;  %s63_s19 = sshll.u32 %s5035_s18, 4  ;;  %s45_s17 = int_to_ptr.vmem [resolvable:$true] %s44_s17  ;;  %s64_s19 = int_to_ptr.vmem [resolvable:$true] %s63_s19 }
  0x26   :  { %s4989_s3 = scalar_lea.vmem %s45_s17, 112  ;;  %s4993_s20 = scalar_lea.vmem %s45_s17, 128 }
  0x27   :  { %p4990_p1 = scmp.ne.s32.totalorder %s45_s17, %s4989_s3  ;;  %p4994_p2 = scmp.lt.s32.totalorder %s45_s17, %s45_s17 }
  0x28   :  { %p4995_p3 = scmp.lt.s32.totalorder %s4993_s20, %s4989_s3 }
  0x2a   :  { %p4996_p4 = por %p4995_p3, %p4994_p2 }
  0x2c   :  { %p4997_p5 = pnand %p4996_p4, %p4990_p1 }
  0x2e   :  { %5000 = shalt.err (!%p4997_p5)
}
  0x2f   :  { %47 = dma.hbm_to_vmem [thread:$0]  %s6630_s2, 112, %s45_s17, [#allocation5]  }
  0x30   :  { %s5009_s23 = scalar_lea.vmem %s64_s19, 6400  ;;  %p5014_p7 = scmp.lt.s32.totalorder %s64_s19, %s64_s19 }
  0x31   :  { %p5010_p6 = scmp.ne.s32.totalorder %s64_s19, %s5009_s23  ;;  %p5015_p8 = scmp.lt.s32.totalorder %s5009_s23, %s5009_s23 }
  0x33   :  { %p5016_p9 = por %p5015_p8, %p5014_p7 }
  0x35   :  { %p5017_p10 = pnand %p5016_p9, %p5010_p6 }
  0x37   :  { %5020 = shalt.err (!%p5017_p10)
}
  0x38   :  { %s5036_s0 = smov 64   ;;  %s5037_s24 = smov 4  }
  0x39   :  { %69 = dma.hbm_to_vmem [thread:$0]  %s6632_s4, 6400, %s64_s19, [#allocation8], %s5036_s0, %s5036_s0, %s5037_s24  }
  0x3a   :  { %5021 = dma.done.wait [#allocation3], 1792  }
  0x3b   :  { %5022 = vsyncadd [#allocation3], 4294965504 }
  0x3c   :  { %5023 = dma.done.wait [#allocation5], 22064  }
  0x3d   :  { %5024 = vsyncadd [#allocation5], 4294945232 }
  0x3e   :  { %5025 = dma.done.wait [#allocation8], 6512  }
  0x3f   :  { %5026 = vsyncadd [#allocation8], 4294960784  ;;  %v5089_v0 = vld [vmem:[#allocation4 + $0xc4] sm:$0xff]  ;;  %v5091_v1 = vld [vmem:[#allocation4 + $0xd2] sm:$0xff]  ;;  %vm2526_vm0 = vcmask 130048   ;;  %vm3944_vm1 = vcmask 261120  }
  0x40   :  { %v5093_v2 = vld [vmem:[#allocation4 + $0x284] sm:$0xff]  ;;  %v340_v3 = vunpack.c.l.s8.bf16 %v5089_v0  ;;  %v6637_v4 = vunpack.c.h.s8.bf16 %v5089_v0  ;;  %v344_v5 = vunpack.c.l.s8.bf16 %v5091_v1  ;;  %v6638_v6 = vunpack.c.h.s8.bf16 %v5091_v1  ;;  %v5099_v7 = vld [vmem:[#allocation4 + $0x292] sm:$0xff]  ;;  %v5122_v21 = vld [vmem:[#allocation4 + $0x9a] sm:$0xff] }
  0x41   :  { %6700 = vst [vmem:[#allocation13_spill] sm:$0xff] %v5093_v2  ;;  %6701 = vst [vmem:[#allocation14_spill] sm:$0xff] %v5099_v7  ;;  %v5101_v8 = vld [vmem:[#allocation4 + $0xa8] sm:$0xff]  ;;  %v5103_v9 = vld [vmem:[#allocation4 + $0xb6] sm:$0xff]  ;;  %v468_v10 = vunpack.c.l.s8.bf16 %v5093_v2  ;;  %v6635_v11 = vunpack.c.h.s8.bf16 %v5093_v2  ;;  %v472_v12 = vunpack.c.l.s8.bf16 %v5099_v7  ;;  %v6636_v13 = vunpack.c.h.s8.bf16 %v5099_v7 }
  0x42   :  { %v5109_v14 = vld [vmem:[#allocation4 + $0x268] sm:$0xff]  ;;  %v5111_v15 = vld [vmem:[#allocation4 + $0x276] sm:$0xff]  ;;  %v4262_v17 = vcombine.high %v340_v3, %v344_v5  ;;  %v5119_v18 = vcombine.low %v6637_v4, %v6638_v6  ;;  %v4261_v19 = vcombine.low %v340_v3, %v344_v5  ;;  %v332_v20 = vunpack.c.l.s8.bf16 %v5101_v8  ;;  %v5141_v33 = vld [vmem:[#allocation4 + $0x7e] sm:$0xff] }
  0x43   :  { %6702 = vst [vmem:[#allocation15_spill] sm:$0xff] %v5109_v14  ;;  %6703 = vst [vmem:[#allocation16_spill] sm:$0xff] %v5111_v15  ;;  %v5113_v16 = vld [vmem:[#allocation4 + $0x8c] sm:$0xff]  ;;  %v5126_v23 = vld [vmem:[#allocation4 + $0x25a] sm:$0xff]  ;;  %v4374_v24 = vcombine.high %v468_v10, %v472_v12  ;;  %v5132_v25 = vcombine.low %v6635_v11, %v6636_v13  ;;  %v4373_v26 = vcombine.low %v468_v10, %v472_v12  ;;  %v336_v27 = vunpack.c.l.s8.bf16 %v5103_v9 }
  0x44   :  { %6704 = vst [vmem:[#allocation17_spill] sm:$0xff] %v5119_v18  ;;  %v5124_v22 = vld [vmem:[#allocation4 + $0x24c] sm:$0xff]  ;;  %6706 = vst [vmem:[#allocation19_spill] sm:$0xff] %v5126_v23  ;;  %2533 = vmatprep.subr.bf16.mxu0 %v4262_v17  ;;  %v460_v28 = vunpack.c.l.s8.bf16 %v5109_v14  ;;  %v464_v29 = vunpack.c.l.s8.bf16 %v5111_v15  ;;  %v324_v30 = vunpack.c.l.s8.bf16 %v5113_v16  ;;  %v328_v31 = vunpack.c.l.s8.bf16 %v5122_v21  ;;  %v5147_v39 = vld [vmem:[#allocation4 + $0x23e] sm:$0xff] }
  0x45   :  { %6705 = vst [vmem:[#allocation18_spill] sm:$0xff] %v5124_v22  ;;  %6707 = vst [vmem:[#allocation20_spill] sm:$0xff] %v5132_v25  ;;  %v5139_v32 = vld [vmem:[#allocation4 + $0x70] sm:$0xff]  ;;  %2586 = vmatprep.subr.bf16.mxu1 %v4374_v24  ;;  %2534 = vmatpush1.bf16.msra.mxu0 %v4261_v19  ;;  %v4255_v34 = vcombine.high %v332_v20, %v336_v27  ;;  %v4254_v35 = vcombine.low %v332_v20, %v336_v27  ;;  %v452_v36 = vunpack.c.l.s8.bf16 %v5124_v22  ;;  %v5153_v47 = vld [vmem:[#allocation4 + $0x62] sm:$0xff] }
  0x46   :  { %v456_v37 = vunpack.c.l.s8.bf16 %v5126_v23  ;;  %v5145_v38 = vld [vmem:[#allocation4 + $0x230] sm:$0xff]  ;;  %6709 = vst [vmem:[#allocation22_spill] sm:$0xff] %v5147_v39  ;;  %2587 = vmatpush1.bf16.msra.mxu1 %v4373_v26  ;;  %v4367_v40 = vcombine.high %v460_v28, %v464_v29  ;;  %v4366_v41 = vcombine.low %v460_v28, %v464_v29  ;;  %v4248_v42 = vcombine.high %v324_v30, %v328_v31  ;;  %v5159_v51 = vld [vmem:[#allocation4 + $0x222] sm:$0xff]  ;;  %v5165_v60 = vld [vmem:[#allocation4 + $0x38] sm:$0xff] }
  0x47   :  { %6708 = vst [vmem:[#allocation21_spill] sm:$0xff] %v5145_v38  ;;  %2535 = vmatprep.subr.bf16.mxu0 %v4255_v34  ;;  %v316_v44 = vunpack.c.l.s8.bf16 %v5139_v32  ;;  %v320_v45 = vunpack.c.l.s8.bf16 %v5141_v33  ;;  %v5151_v46 = vld [vmem:[#allocation4 + $0x54] sm:$0xff]  ;;  %v444_v48 = vunpack.c.l.s8.bf16 %v5145_v38  ;;  %v448_v49 = vunpack.c.l.s8.bf16 %v5147_v39  ;;  %6711 = vst [vmem:[#allocation24_spill] sm:$0xff] %v5159_v51  ;;  %v5167_v61 = vld [vmem:[#allocation4 + $0x46] sm:$0xff] }
  0x48   :  { %v4360_v43 = vcombine.high %v452_v36, %v456_v37  ;;  %2588 = vmatprep.subr.bf16.mxu1 %v4367_v40  ;;  %v5157_v50 = vld [vmem:[#allocation4 + $0x214] sm:$0xff]  ;;  %v4247_v52 = vcombine.low %v324_v30, %v328_v31  ;;  %v4359_v53 = vcombine.low %v452_v36, %v456_v37  ;;  %v308_v55 = vunpack.c.l.s8.bf16 %v5151_v46  ;;  %v5171_v63 = vld [vmem:[#allocation4 + $0x206] sm:$0xff]  ;;  %v5175_v19 = vld [vmem:[#allocation4 + $0x1c] sm:$0xff] }
  0x49   :  { %6710 = vst [vmem:[#allocation23_spill] sm:$0xff] %v5157_v50  ;;  %2536 = vmatpush1.bf16.msra.mxu0 %v4254_v35  ;;  %v4241_v54 = vcombine.high %v316_v44, %v320_v45  ;;  %v312_v56 = vunpack.c.l.s8.bf16 %v5153_v47  ;;  %v4353_v57 = vcombine.high %v444_v48, %v448_v49  ;;  %v436_v58 = vunpack.c.l.s8.bf16 %v5157_v50  ;;  %v5169_v62 = vld [vmem:[#allocation4 + $0x1f8] sm:$0xff]  ;;  %6713 = vst [vmem:[#allocation26_spill] sm:$0xff] %v5171_v63  ;;  %v5179_v27 = vld [vmem:[#allocation4 + $0x2a] sm:$0xff] }
  0x4a   :  { %2589 = vmatpush1.bf16.msra.mxu1 %v4366_v41  ;;  %2537 = vmatprep.subr.bf16.mxu0 %v4248_v42  ;;  %v440_v59 = vunpack.c.l.s8.bf16 %v5159_v51  ;;  %6712 = vst [vmem:[#allocation25_spill] sm:$0xff] %v5169_v62  ;;  %v4240_v3 = vcombine.low %v316_v44, %v320_v45  ;;  %v4352_v5 = vcombine.low %v444_v48, %v448_v49  ;;  %v300_v12 = vunpack.c.l.s8.bf16 %v5165_v60  ;;  %v5181_v28 = vld [vmem:[#allocation4 + $0x1dc] sm:$0xff]  ;;  %v5183_v29 = vld [vmem:[#allocation4 + $0x1ea] sm:$0xff]  ;;  %v5199_v49 = vld [vmem:[#allocation4 + $0x1b2] sm:$0xff] }
  0x4b   :  { %2590 = vmatprep.subr.bf16.mxu1 %v4360_v43  ;;  %v4234_v10 = vcombine.high %v308_v55, %v312_v56  ;;  %v304_v17 = vunpack.c.l.s8.bf16 %v5167_v61  ;;  %v428_v24 = vunpack.c.l.s8.bf16 %v5169_v62  ;;  %v432_v26 = vunpack.c.l.s8.bf16 %v5171_v63  ;;  %6714 = vst [vmem:[#allocation27_spill] sm:$0xff] %v5181_v28  ;;  %6715 = vst [vmem:[#allocation28_spill] sm:$0xff] %v5183_v29  ;;  %v5186_v35 = vld [vmem:[#allocation4] sm:$0xff]  ;;  %v5191_v42 = vld [vmem:[#allocation4 + $0xe] sm:$0xff] }
  0x4c   :  { %v4346_v20 = vcombine.high %v436_v58, %v440_v59  ;;  %v4233_v30 = vcombine.low %v308_v55, %v312_v56  ;;  %v4345_v31 = vcombine.low %v436_v58, %v440_v59  ;;  %v292_v34 = vunpack.c.l.s8.bf16 %v5175_v19  ;;  %v5193_v43 = vld [vmem:[#allocation4 + $0x1c0] sm:$0xff]  ;;  %v5195_v44 = vld [vmem:[#allocation4 + $0x1ce] sm:$0xff]  ;;  %v4819_v11 = vld [vmem:[#allocation2 + $0xc] ss:$28 sps:$4 sm:$0xff]  }
  0x4d   :  { %2538 = vmatpush1.bf16.msra.mxu0 %v4247_v52  ;;  %v4227_v36 = vcombine.high %v300_v12, %v304_v17  ;;  %v296_v37 = vunpack.c.l.s8.bf16 %v5179_v27  ;;  %v420_v40 = vunpack.c.l.s8.bf16 %v5181_v28  ;;  %v424_v41 = vunpack.c.l.s8.bf16 %v5183_v29  ;;  %6716 = vst [vmem:[#allocation29_spill] sm:$0xff] %v5193_v43  ;;  %6717 = vst [vmem:[#allocation30_spill] sm:$0xff] %v5195_v44  ;;  %v5197_v48 = vld [vmem:[#allocation4 + $0x1a4] sm:$0xff]  ;;  %v4817_v58 = vld [vmem:[#allocation2 + $0x4] ss:$28 sps:$4 sm:$0xff]   ;;  %2618 = vmatprep.mubr.bf16.mxu1 %v4819_v11 }
  0x4e   :  { %2591 = vmatpush1.bf16.msra.mxu1 %v4359_v53  ;;  %2539 = vmatprep.subr.bf16.mxu0 %v4241_v54  ;;  %v4339_v45 = vcombine.high %v428_v24, %v432_v26  ;;  %v5201_v52 = vld [vmem:[#allocation4 + $0x364] sm:$0xff]  ;;  %v5203_v53 = vld [vmem:[#allocation4 + $0x372] sm:$0xff]  ;;  %v4226_v55 = vcombine.low %v300_v12, %v304_v17  ;;  %v284_v56 = vunpack.c.l.s8.bf16 %v5186_v35  ;;  %v4338_v59 = vcombine.low %v428_v24, %v432_v26 }
  0x4f   :  { %2592 = vmatprep.subr.bf16.mxu1 %v4353_v57  ;;  %6718 = vst [vmem:[#allocation31_spill] sm:$0xff] %v5201_v52  ;;  %6719 = vst [vmem:[#allocation32_spill] sm:$0xff] %v5203_v53  ;;  %v5205_v54 = vld [vmem:[#allocation4 + $0x188] sm:$0xff]  ;;  %v288_v57 = vunpack.c.l.s8.bf16 %v5191_v42  ;;  %v4219_v13 = vcombine.low %v292_v34, %v296_v37  ;;  %v4331_v4 = vcombine.low %v420_v40, %v424_v41  ;;  %v412_v12 = vunpack.c.l.s8.bf16 %v5193_v43  ;;  %v5231_v18 = vld [vmem:[#allocation4 + $0x150] sm:$0xff] }
  0x50   :  { %v416_v17 = vunpack.c.l.s8.bf16 %v5195_v44  ;;  %v5217_v6 = vld [vmem:[#allocation4 + $0x16c] sm:$0xff]  ;;  %2565 = vmatprep.mubr.bf16.mxu0 %v4817_v58  ;;  %v404_v24 = vunpack.c.l.s8.bf16 %v5197_v48  ;;  %v408_v26 = vunpack.c.l.s8.bf16 %v5199_v49  ;;  %v396_v25 = vunpack.c.l.s8.bf16 %v5205_v54  ;;  %v5237_v11 = vld [vmem:[#allocation4 + $0x15e] sm:$0xff]  ;;  %v5245_v62 = vld [vmem:[#allocation4 + $0x134] sm:$0xff] }
  0x51   :  { %2540 = vmatpush1.bf16.msra.mxu0 %v4240_v3  ;;  %v4220_v3 = vcombine.high %v292_v34, %v296_v37  ;;  %v536_v34 = vunpack.c.l.s8.bf16 %v5203_v53  ;;  %v5225_v37 = vld [vmem:[#allocation4 + $0x32c] sm:$0xff]  ;;  %v388_v44 = vunpack.c.l.s8.bf16 %v5217_v6  ;;  %v5247_v51 = vld [vmem:[#allocation4 + $0x142] sm:$0xff]  ;;  %v5249_v50 = vld [vmem:[#allocation4 + $0x2f4] sm:$0xff] }
  0x52   :  { %2593 = vmatpush1.bf16.msra.mxu1 %v4352_v5  ;;  %2541 = vmatprep.subr.bf16.mxu0 %v4234_v10  ;;  %v4332_v5 = vcombine.high %v420_v40, %v424_v41  ;;  %v5209_v10 = vld [vmem:[#allocation4 + $0x196] sm:$0xff]  ;;  %6722 = vst [vmem:[#allocation35_spill] sm:$0xff] %v5225_v37  ;;  %v4213_v41 = vcombine.high %v284_v56, %v288_v57  ;;  %6726 = vst [vmem:[#allocation39_spill] sm:$0xff] %v5247_v51  ;;  %v376_v22 = vunpack.c.l.s8.bf16 %v5247_v51 }
  0x53   :  { %2594 = vmatprep.subr.bf16.mxu1 %v4346_v20  ;;  %v5211_v20 = vld [vmem:[#allocation4 + $0x348] sm:$0xff]  ;;  %v5227_v40 = vld [vmem:[#allocation4 + $0x33a] sm:$0xff]  ;;  %v400_v58 = vunpack.c.l.s8.bf16 %v5209_v10  ;;  %v5241_v28 = vld [vmem:[#allocation4 + $0x310] sm:$0xff]  ;;  %6727 = vst [vmem:[#allocation40_spill] sm:$0xff] %v5249_v50 }
  0x54   :  { %6720 = vst [vmem:[#allocation33_spill] sm:$0xff] %v5211_v20  ;;  %6723 = vst [vmem:[#allocation36_spill] sm:$0xff] %v5227_v40  ;;  %v520_v29 = vunpack.c.l.s8.bf16 %v5227_v40  ;;  %v384_v40 = vunpack.c.l.s8.bf16 %v5237_v11  ;;  %v5257_v39 = vld [vmem:[#allocation4 + $0x118] sm:$0xff]  ;;  %v508_v38 = vunpack.c.l.s8.bf16 %v5241_v28 }
  0x55   :  { %2542 = vmatpush1.bf16.msra.mxu0 %v4233_v30  ;;  %v5215_v30 = vld [vmem:[#allocation4 + $0x356] sm:$0xff]  ;;  %6724 = vst [vmem:[#allocation37_spill] sm:$0xff] %v5241_v28  ;;  %6729 = vst [vmem:[#allocation42_spill] sm:$0xff] %v5257_v39  ;;  %v364_v14 = vunpack.c.l.s8.bf16 %v5257_v39 }
  0x56   :  { %2595 = vmatpush1.bf16.msra.mxu1 %v4345_v31  ;;  %2543 = vmatprep.subr.bf16.mxu0 %v4227_v36  ;;  %6721 = vst [vmem:[#allocation34_spill] sm:$0xff] %v5215_v30  ;;  %v5219_v31 = vld [vmem:[#allocation4 + $0x17a] sm:$0xff]  ;;  %v532_v36 = vunpack.c.l.s8.bf16 %v5201_v52  ;;  %v524_v52 = vunpack.c.l.s8.bf16 %v5211_v20  ;;  %v528_v53 = vunpack.c.l.s8.bf16 %v5215_v30  ;;  %v4317_v30 = vcombine.low %v404_v24, %v408_v26 }
  0x57   :  { %2596 = vmatprep.subr.bf16.mxu1 %v4339_v45  ;;  %v4212_v45 = vcombine.low %v284_v56, %v288_v57  ;;  %v392_v43 = vunpack.c.l.s8.bf16 %v5219_v31  ;;  %v4324_v56 = vcombine.low %v412_v12, %v416_v17  ;;  %v516_v57 = vunpack.c.l.s8.bf16 %v5225_v37  ;;  %v5255_v37 = vld [vmem:[#allocation4 + $0x302] sm:$0xff] }
  0x58   :  { %v4430_v20 = vcombine.high %v532_v36, %v536_v34  ;;  %v4429_v63 = vcombine.low %v532_v36, %v536_v34  ;;  %6728 = vst [vmem:[#allocation41_spill] sm:$0xff] %v5255_v37  ;;  %v5263_v34 = vld [vmem:[#allocation4 + $0x126] sm:$0xff]  ;;  %v504_v15 = vunpack.c.l.s8.bf16 %v5255_v37 }
  0x59   :  { %2544 = vmatpush1.bf16.msra.mxu0 %v4226_v55  ;;  %v4325_v55 = vcombine.high %v412_v12, %v416_v17  ;;  %v5251_v12 = vcombine.low %v396_v25, %v400_v58  ;;  %v380_v17 = vunpack.c.l.s8.bf16 %v5231_v18  ;;  %v5261_v36 = vcombine.high %v388_v44, %v392_v43  ;;  %6730 = vst [vmem:[#allocation43_spill] sm:$0xff] %v5263_v34 }
  0x5a   :  { %2597 = vmatpush1.bf16.msra.mxu1 %v4338_v59  ;;  %2545 = vmatprep.subr.bf16.mxu0 %v4220_v3  ;;  %v5243_v59 = vld [vmem:[#allocation4 + $0x31e] sm:$0xff]  ;;  %v4318_v3 = vcombine.high %v404_v24, %v408_v26  ;;  %v4423_v24 = vcombine.high %v524_v52, %v528_v53  ;;  %v5259_v26 = vcombine.low %v524_v52, %v528_v53  ;;  %v5277_v52 = vld [vmem:[#allocation4 + $0x10a] sm:$0xff]  ;;  %v372_v53 = vunpack.c.l.s8.bf16 %v5245_v62 }
  0x5b   :  { %2598 = vmatprep.subr.bf16.mxu1 %v4332_v5  ;;  %6725 = vst [vmem:[#allocation38_spill] sm:$0xff] %v5243_v59  ;;  %v4311_v5 = vcombine.high %v396_v25, %v400_v58  ;;  %v5267_v25 = vcombine.high %v516_v57, %v520_v29  ;;  %v5269_v58 = vcombine.low %v388_v44, %v392_v43  ;;  %v512_v23 = vunpack.c.l.s8.bf16 %v5243_v59  ;;  %v5283_v43 = vld [vmem:[#allocation4 + $0x2bc] sm:$0xff]  ;;  %v5285_v44 = vld [vmem:[#allocation4 + $0x2ca] sm:$0xff] }
  0x5c   :  { %6734 = vst [vmem:[#allocation47_spill] sm:$0xff] %v5277_v52  ;;  %6735 = vst [vmem:[#allocation48_spill] sm:$0xff] %v5283_v43  ;;  %v5287_v59 = vcombine.low %v516_v57, %v520_v29  ;;  %v5289_v28 = vcombine.high %v380_v17, %v384_v40  ;;  %v368_v2 = vunpack.c.l.s8.bf16 %v5263_v34  ;;  %v360_v51 = vunpack.c.l.s8.bf16 %v5277_v52  ;;  %v5303_v34 = vld [vmem:[#allocation4 + $0xe0] sm:$0xff]  ;;  %v5313_v52 = vld [vmem:[#allocation4 + $0xee] sm:$0xff] }
  0x5d   :  { %2546 = vmatpush1.bf16.msra.mxu0 %v4219_v13  ;;  %v5265_v13 = vld [vmem:[#allocation4 + $0x2d8] sm:$0xff]  ;;  %6736 = vst [vmem:[#allocation49_spill] sm:$0xff] %v5285_v44  ;;  %v5299_v29 = vcombine.low %v380_v17, %v384_v40  ;;  %v484_v57 = vunpack.c.l.s8.bf16 %v5283_v43  ;;  %v488_v39 = vunpack.c.l.s8.bf16 %v5285_v44  ;;  %6737 = vst [vmem:[#allocation50_spill] sm:$0xff] %v5313_v52  ;;  %v5321_v44 = vld [vmem:[#allocation4 + $0x2a0] sm:$0xff] }
  0x5e   :  { %2599 = vmatpush1.bf16.msra.mxu1 %v4331_v4  ;;  %2547 = vmatprep.subr.bf16.mxu0 %v4213_v41  ;;  %6731 = vst [vmem:[#allocation44_spill] sm:$0xff] %v5265_v13  ;;  %v5273_v4 = vld [vmem:[#allocation4 + $0x2e6] sm:$0xff]  ;;  %v5275_v41 = vld [vmem:[#allocation4 + $0xfc] sm:$0xff]  ;;  %v492_v7 = vunpack.c.l.s8.bf16 %v5265_v13  ;;  %v5311_v13 = vcombine.low %v372_v53, %v376_v22  ;;  %v5317_v40 = vcombine.high %v364_v14, %v368_v2  ;;  %6738 = vst [vmem:[#allocation51_spill] sm:$0xff] %v5321_v44 }
  0x5f   :  { %2600 = vmatprep.subr.bf16.mxu1 %v4325_v55  ;;  %6732 = vst [vmem:[#allocation45_spill] sm:$0xff] %v5273_v4  ;;  %6733 = vst [vmem:[#allocation46_spill] sm:$0xff] %v5275_v41  ;;  %v500_v55 = vunpack.c.l.s8.bf16 %v5249_v50  ;;  %v496_v50 = vunpack.c.l.s8.bf16 %v5273_v4  ;;  %v356_v37 = vunpack.c.l.s8.bf16 %v5275_v41  ;;  %v5319_v17 = vcombine.low %v364_v14, %v368_v2  ;;  %v5323_v43 = vld [vmem:[#allocation4 + $0x2ae] sm:$0xff] }
  0x60   :  { %6739 = vst [vmem:[#allocation52_spill] sm:$0xff] %v5323_v43  ;;  %v348_v14 = vunpack.c.l.s8.bf16 %v5303_v34  ;;  %v5342_v41 = vcombine.high %v484_v57, %v488_v39 }
  0x61   :  { %2548 = vmatpush1.bf16.msra.mxu0 %v4212_v45  ;;  %v5297_v45 = vcombine.high %v508_v38, %v512_v23  ;;  %v5309_v4 = vcombine.high %v500_v55, %v504_v15  ;;  %v5337_v2 = vcombine.high %v356_v37, %v360_v51 }
  0x62   :  { %2601 = vmatpush1.bf16.msra.mxu1 %v4324_v56  ;;  %2549 = vmatprep.subr.bf16.mxu0 %v4318_v3  ;;  %v5305_v56 = vcombine.low %v508_v38, %v512_v23  ;;  %v5307_v3 = vcombine.high %v372_v53, %v376_v22  ;;  %v5325_v23 = vld [vmem:[#allocation4 + $0x444] sm:$0xff]  ;;  %v6740_v38 = vunpack.c.h.s8.bf16 %v5091_v1  ;;  %v6741_v22 = vunpack.c.h.s8.bf16 %v5089_v0 }
  0x63   :  { %2602 = vmatprep.subr.bf16.mxu1 %v4430_v20  ;;  %v5315_v20 = vcombine.low %v500_v55, %v504_v15  ;;  %v5333_v15 = vcombine.high %v492_v7, %v496_v50  ;;  %v5340_v55 = vld [vmem:[#allocation4 + $0x452] sm:$0xff]  ;;  %v5344_v1 = vcombine.low %v356_v37, %v360_v51  ;;  %v280_v0 = vld [vmem:[#allocation4 + $0x540] sm:$0xff]  ;;  %v5355_v51 = vld [vmem:[#allocation4 + $0x428] sm:$0xff] }
  0x64   :  { %v5331_v53 = vcombine.high %v6741_v22, %v6740_v38  ;;  %v333_v38 = vunpack.c.h.s8.bf16 %v5101_v8  ;;  %v282_v22 = vld [vmem:[#allocation4 + $0x54e] sm:$0xff]  ;;  %v5357_v37 = vld [vmem:[#allocation4 + $0x436] sm:$0xff] }
  0x65   :  { %2550 = vmatpush2.bf16.msra.mxu0 %v4317_v30  ;;  %v5335_v30 = vcombine.low %v492_v7, %v496_v50  ;;  %v476_v7 = vunpack.c.l.s8.bf16 %v5321_v44  ;;  %v480_v50 = vunpack.c.l.s8.bf16 %v5323_v43  ;;  %v672_v43 = vunpack.c.l.s8.bf16 %v282_v22  ;;  %v5370_v44 = vld [vmem:[#allocation4 + $0x40c] sm:$0xff] }
  0x66   :  { %6742 = vst [vmem:[#allocation53_spill] sm:$0xff] %v5331_v53  ;;  %2603 = vmatpush2.bf16.msra.mxu1 %v4429_v63  ;;  %2551 = vmatprep.subr.bf16.mxu0 %v4311_v5  ;;  %v337_v63 = vunpack.c.h.s8.bf16 %v5103_v9  ;;  %v352_v5 = vunpack.c.l.s8.bf16 %v5313_v52  ;;  %v325_v53 = vunpack.c.h.s8.bf16 %v5113_v16  ;;  %v329_v52 = vunpack.c.h.s8.bf16 %v5122_v21  ;;  %v5389_v22 = vld [vmem:[#allocation4 + $0x3f0] sm:$0xff] }
  0x67   :  { %2604 = vmatprep.subr.bf16.mxu1 %v4423_v24  ;;  %v5353_v24 = vcombine.low %v484_v57, %v488_v39  ;;  %v596_v16 = vunpack.c.l.s8.bf16 %v5325_v23  ;;  %v668_v39 = vunpack.c.l.s8.bf16 %v280_v0  ;;  %v317_v57 = vunpack.c.h.s8.bf16 %v5139_v32 }
  0x68   :  { %v5359_v8 = vcombine.high %v333_v38, %v337_v63  ;;  %v5361_v9 = vcombine.low %v333_v38, %v337_v63  ;;  %v5372_v38 = vld [vmem:[#allocation4 + $0x41a] sm:$0xff]  ;;  %v5374_v63 = vcombine.high %v325_v53, %v329_v52  ;;  %v5376_v21 = vcombine.low %v325_v53, %v329_v52 }
  0x69   :  { %2552 = vmatpush2.bf16.msra.mxu0 %v5251_v12  ;;  %v600_v12 = vunpack.c.l.s8.bf16 %v5340_v55  ;;  %v5383_v0 = vcombine.low %v348_v14, %v352_v5  ;;  %v309_v32 = vunpack.c.h.s8.bf16 %v5151_v46  ;;  %v588_v46 = vunpack.c.l.s8.bf16 %v5355_v51 }
  0x6a   :  { %6743 = vst [vmem:[#allocation54_spill] sm:$0xff] %v5359_v8  ;;  %6744 = vst [vmem:[#allocation55_spill] sm:$0xff] %v5361_v9  ;;  %2605 = vmatpush2.bf16.msra.mxu1 %v5259_v26  ;;  %2553 = vmatprep.subr.bf16.mxu0 %v5261_v36  ;;  %v321_v26 = vunpack.c.h.s8.bf16 %v5141_v33  ;;  %v5379_v36 = vcombine.high %v348_v14, %v352_v5  ;;  %v5381_v9 = vcombine.high %v476_v7, %v480_v50  ;;  %v5391_v8 = vld [vmem:[#allocation4 + $0x3fe] sm:$0xff] }
  0x6b   :  { %2606 = vmatprep.subr.bf16.mxu1 %v5267_v25  ;;  %6745 = vst [vmem:[#allocation56_spill] sm:$0xff] %v5374_v63  ;;  %6746 = vst [vmem:[#allocation57_spill] sm:$0xff] %v5376_v21  ;;  %v5387_v25 = vcombine.low %v476_v7, %v480_v50  ;;  %v313_v33 = vunpack.c.h.s8.bf16 %v5153_v47  ;;  %v5400_v14 = vcombine.high %v596_v16, %v600_v12  ;;  %v301_v5 = vunpack.c.h.s8.bf16 %v5165_v60  ;;  %v5408_v50 = vld [vmem:[#allocation4 + $0x3d4] sm:$0xff]  ;;  %v5427_v63 = vld [vmem:[#allocation4 + $0x3c6] sm:$0xff] }
  0x6c   :  { %v5393_v52 = vcombine.high %v317_v57, %v321_v26  ;;  %v5395_v53 = vcombine.low %v317_v57, %v321_v26  ;;  %v5406_v7 = vcombine.high %v668_v39, %v672_v43  ;;  %v5410_v57 = vld [vmem:[#allocation4 + $0x3e2] sm:$0xff]  ;;  %v5417_v26 = vcombine.low %v596_v16, %v600_v12  ;;  %v5425_v21 = vld [vmem:[#allocation4 + $0x3b8] sm:$0xff] }
  0x6d   :  { %2554 = vmatpush2.bf16.msra.mxu0 %v5269_v58  ;;  %v592_v58 = vunpack.c.l.s8.bf16 %v5357_v37  ;;  %v5412_v47 = vcombine.high %v309_v32, %v313_v33  ;;  %v584_v60 = vunpack.c.l.s8.bf16 %v5372_v38 }
  0x6e   :  { %6747 = vst [vmem:[#allocation58_spill] sm:$0xff] %v5393_v52  ;;  %6748 = vst [vmem:[#allocation59_spill] sm:$0xff] %v5395_v53  ;;  %2607 = vmatpush2.bf16.msra.mxu1 %v5287_v59  ;;  %2555 = vmatprep.subr.bf16.mxu0 %v5289_v28  ;;  %v5414_v59 = vcombine.low %v309_v32, %v313_v33  ;;  %v305_v28 = vunpack.c.h.s8.bf16 %v5167_v61  ;;  %v580_v53 = vunpack.c.l.s8.bf16 %v5370_v44  ;;  %v297_v61 = vunpack.c.h.s8.bf16 %v5179_v27 }
  0x6f   :  { %2608 = vmatprep.subr.bf16.mxu1 %v5297_v45  ;;  %v293_v45 = vunpack.c.h.s8.bf16 %v5175_v19  ;;  %v5423_v52 = vcombine.low %v668_v39, %v672_v43  ;;  %v5436_v16 = vcombine.high %v588_v46, %v592_v58  ;;  %v572_v19 = vunpack.c.l.s8.bf16 %v5389_v22  ;;  %v5444_v39 = vld [vmem:[#allocation4 + $0x39c] sm:$0xff] }
  0x70   :  { %v5429_v32 = vcombine.high %v301_v5, %v305_v28  ;;  %v5431_v33 = vcombine.low %v301_v5, %v305_v28  ;;  %v576_v43 = vunpack.c.l.s8.bf16 %v5391_v8  ;;  %v5442_v12 = vcombine.low %v588_v46, %v592_v58  ;;  %v5446_v5 = vld [vmem:[#allocation4 + $0x3aa] sm:$0xff]  ;;  %v5461_v58 = vld [vmem:[#allocation4 + $0x380] sm:$0xff] }
  0x71   :  { %2556 = vmatpush2.bf16.msra.mxu0 %v5299_v29  ;;  %v285_v29 = vunpack.c.h.s8.bf16 %v5186_v35  ;;  %v5448_v27 = vcombine.high %v293_v45, %v297_v61  ;;  %v5453_v28 = vcombine.high %v580_v53, %v584_v60  ;;  %v568_v35 = vunpack.c.l.s8.bf16 %v5410_v57 }
  0x72   :  { %6749 = vst [vmem:[#allocation60_spill] sm:$0xff] %v5429_v32  ;;  %6750 = vst [vmem:[#allocation61_spill] sm:$0xff] %v5431_v33  ;;  %2609 = vmatpush2.bf16.msra.mxu1 %v5305_v56  ;;  %2557 = vmatprep.subr.bf16.mxu0 %v5307_v3  ;;  %v5450_v56 = vcombine.low %v293_v45, %v297_v61  ;;  %v289_v3 = vunpack.c.h.s8.bf16 %v5191_v42  ;;  %v564_v33 = vunpack.c.l.s8.bf16 %v5408_v50  ;;  %v5463_v32 = vld [vmem:[#allocation4 + $0x38e] sm:$0xff]  ;;  %v409_v42 = vunpack.c.h.s8.bf16 %v5199_v49 }
  0x73   :  { %2610 = vmatprep.subr.bf16.mxu1 %v5309_v4  ;;  %v405_v4 = vunpack.c.h.s8.bf16 %v5197_v48  ;;  %v5459_v46 = vcombine.low %v580_v53, %v584_v60  ;;  %v556_v48 = vunpack.c.l.s8.bf16 %v5425_v21  ;;  %v397_v53 = vunpack.c.h.s8.bf16 %v5205_v54 }
  0x74   :  { %6751 = vst [vmem:[#allocation62_spill] sm:$0xff] %v5450_v56  ;;  %v5465_v45 = vcombine.high %v285_v29, %v289_v3  ;;  %v5467_v61 = vcombine.low %v285_v29, %v289_v3  ;;  %v5472_v56 = vcombine.high %v572_v19, %v576_v43  ;;  %v5478_v60 = vcombine.low %v572_v19, %v576_v43  ;;  %v5480_v29 = vld [vmem:[#allocation4 + $0x524] sm:$0xff]  ;;  %v5495_v19 = vld [vmem:[#allocation4 + $0x532] sm:$0xff] }
  0x75   :  { %2558 = vmatpush2.bf16.msra.mxu0 %v5311_v13  ;;  %v560_v13 = vunpack.c.l.s8.bf16 %v5427_v63  ;;  %v5482_v3 = vcombine.high %v405_v4, %v409_v42  ;;  %v5484_v49 = vcombine.low %v405_v4, %v409_v42  ;;  %v389_v54 = vunpack.c.h.s8.bf16 %v5217_v6 }
  0x76   :  { %6752 = vst [vmem:[#allocation63_spill] sm:$0xff] %v5465_v45  ;;  %6753 = vst [vmem:[#allocation64_spill] sm:$0xff] %v5467_v61  ;;  %2611 = vmatpush2.bf16.msra.mxu1 %v5315_v20  ;;  %2559 = vmatprep.subr.bf16.mxu0 %v5317_v40  ;;  %v401_v20 = vunpack.c.h.s8.bf16 %v5209_v10  ;;  %v5487_v40 = vcombine.high %v564_v33, %v568_v35  ;;  %v548_v61 = vunpack.c.l.s8.bf16 %v5444_v39  ;;  %v552_v45 = vunpack.c.l.s8.bf16 %v5446_v5 }
  0x77   :  { %2612 = vmatprep.subr.bf16.mxu1 %v5333_v15  ;;  %v5493_v15 = vcombine.low %v564_v33, %v568_v35  ;;  %v393_v10 = vunpack.c.h.s8.bf16 %v5219_v31  ;;  %v5504_v42 = vcombine.high %v556_v48, %v560_v13  ;;  %v381_v33 = vunpack.c.h.s8.bf16 %v5231_v18 }
  0x78   :  { %v5497_v43 = vcombine.high %v397_v53, %v401_v20  ;;  %v5499_v4 = vcombine.low %v397_v53, %v401_v20  ;;  %v5510_v35 = vcombine.low %v556_v48, %v560_v13  ;;  %v385_v31 = vunpack.c.h.s8.bf16 %v5237_v11  ;;  %v6759_v48 = vld [vmem:[#allocation39_spill] sm:$0xff] }
  0x79   :  { %2560 = vmatpush2.bf16.msra.mxu0 %v5319_v17  ;;  %v5512_v53 = vcombine.high %v389_v54, %v393_v10  ;;  %v5514_v20 = vcombine.low %v389_v54, %v393_v10  ;;  %v373_v17 = vunpack.c.h.s8.bf16 %v5245_v62  ;;  %v377_v13 = vunpack.c.h.s8.bf16 %v6759_v48  ;;  %v6760_v54 = vld [vmem:[#allocation14_spill] sm:$0xff] }
  0x7a   :  { %6754 = vst [vmem:[#allocation65_spill] sm:$0xff] %v5499_v4  ;;  %2613 = vmatpush2.bf16.msra.mxu1 %v5335_v30  ;;  %2561 = vmatprep.subr.bf16.mxu0 %v5337_v2  ;;  %v5517_v30 = vcombine.high %v548_v61, %v552_v45  ;;  %v5519_v2 = vcombine.low %v548_v61, %v552_v45  ;;  %v6761_v10 = vunpack.c.h.s8.bf16 %v6760_v54  ;;  %v5537_v45 = vld [vmem:[#allocation2] ss:$28 sps:$4 sm:$0xff]   ;;  %v6765_v62 = vunpack.c.l.s8.bf16 %v5463_v32 }
  0x7b   :  { %2614 = vmatprep.subr.bf16.mxu1 %v5342_v41  ;;  %6755 = vst [vmem:[#allocation66_spill] sm:$0xff] %v5512_v53  ;;  %6756 = vst [vmem:[#allocation67_spill] sm:$0xff] %v5514_v20  ;;  %v5524_v18 = vcombine.high %v381_v33, %v385_v31  ;;  %v5526_v41 = vcombine.low %v381_v33, %v385_v31  ;;  %v6762_v20 = vld [vmem:[#allocation13_spill] sm:$0xff]  ;;  %v6767_v31 = vld [vmem:[#allocation42_spill] sm:$0xff] }
  0x7c   :  { %v6763_v11 = vunpack.c.h.s8.bf16 %v6762_v20  ;;  %v365_v48 = vunpack.c.h.s8.bf16 %v6767_v31  ;;  %v6768_v54 = vld [vmem:[#allocation43_spill] sm:$0xff]  ;;  %v6775_v33 = vld [vmem:[#allocation46_spill] sm:$0xff] }
  0x7d   :  { %2562 = vmatpush2.bf16.msra.mxu0 %v5344_v1  ;;  %6757 = vst [vmem:[#allocation68_spill] sm:$0xff] %v5524_v18  ;;  %6758 = vst [vmem:[#allocation69_spill] sm:$0xff] %v5526_v41  ;;  %v6766_v1 = vunpack.c.l.s8.bf16 %v5461_v58  ;;  %v369_v20 = vunpack.c.h.s8.bf16 %v6768_v54  ;;  %v357_v31 = vunpack.c.h.s8.bf16 %v6775_v33  ;;  %v6776_v18 = vld [vmem:[#allocation47_spill] sm:$0xff] }
  0x7e   :  { %v5533_v53 = vcombine.high %v6763_v11, %v6761_v10  ;;  %2615 = vmatpush2.bf16.msra.mxu1 %v5353_v24  ;;  %2563 = vmatprep.subr.bf16.mxu0 %v5379_v36  ;;  %v5549_v10 = vld [vmem:[#allocation2 + $0x8] ss:$28 sps:$4 sm:$0xff]   ;;  %v5551_v24 = vcombine.high %v373_v17, %v377_v13  ;;  %v5553_v36 = vcombine.low %v373_v17, %v377_v13  ;;  %v6771_v11 = vld [vmem:[#allocation15_spill] sm:$0xff]  ;;  %v361_v54 = vunpack.c.h.s8.bf16 %v6776_v18 }
  0x7f   :  { %v5543_v61 = vcombine.high %v6766_v1, %v6765_v62  ;;  %2616 = vmatprep.subr.bf16.mxu1 %v5381_v9  ;;  %6769 = vst [vmem:[#allocation14_spill] sm:$0xff] %v5549_v10  ;;  %v461_v6 = vunpack.c.h.s8.bf16 %v6771_v11  ;;  %v5557_v62 = vcombine.high %v365_v48, %v369_v20  ;;  %v5559_v1 = vcombine.low %v365_v48, %v369_v20  ;;  %v5564_v9 = vld [vmem:[#allocation2 + $0x3c] ss:$28 sps:$4 sm:$0xff]   ;;  %v5566_v4 = vld [vmem:[#allocation2 + $0x44] ss:$28 sps:$4 sm:$0xff]  }
  0x80   :  { %6764 = vst [vmem:[#allocation39_spill] sm:$0xff] %v5533_v53  ;;  %6770 = vst [vmem:[#allocation13_spill] sm:$0xff] %v5553_v36  ;;  %v6772_v53 = vld [vmem:[#allocation16_spill] sm:$0xff]  ;;  %v6779_v11 = vld [vmem:[#allocation18_spill] sm:$0xff]  ;;  %v5576_v33 = vcombine.high %v357_v31, %v361_v54  ;;  %v5578_v18 = vcombine.low %v357_v31, %v361_v54  ;;  %v601_v54 = vunpack.c.h.s8.bf16 %v5340_v55 }
  0x81   :  { %v465_v41 = vunpack.c.h.s8.bf16 %v6772_v53  ;;  %6773 = vst [vmem:[#allocation42_spill] sm:$0xff] %v5557_v62  ;;  %6774 = vst [vmem:[#allocation43_spill] sm:$0xff] %v5559_v1  ;;  %2564 = vmatpush2.bf16.msra.mxu0 %v5383_v0  ;;  %v453_v53 = vunpack.c.h.s8.bf16 %v6779_v11  ;;  %v6780_v36 = vld [vmem:[#allocation19_spill] sm:$0xff]  ;;  %v349_v0 = vunpack.c.h.s8.bf16 %v5303_v34  ;;  %v6781_v48 = vld [vmem:[#allocation50_spill] sm:$0xff]  ;;  %v597_v34 = vunpack.c.h.s8.bf16 %v5325_v23 }
  0x82   :  { %6777 = vst [vmem:[#allocation15_spill] sm:$0xff] %v5564_v9  ;;  %6778 = vst [vmem:[#allocation16_spill] sm:$0xff] %v5566_v4  ;;  %v457_v62 = vunpack.c.h.s8.bf16 %v6780_v36  ;;  %2617 = vmatpush2.bf16.msra.mxu1 %v5387_v25  ;;  %2639 = vmatprep.subr.bf16.mxu0 %v5400_v14  ;;  %v353_v20 = vunpack.c.h.s8.bf16 %v6781_v48  ;;  %v6782_v11 = vld [vmem:[#allocation21_spill] sm:$0xff]  ;;  %v6783_v1 = vld [vmem:[#allocation22_spill] sm:$0xff] }
  0x83   :  { %v5568_v17 = vcombine.high %v461_v6, %v465_v41  ;;  %v5570_v13 = vcombine.low %v461_v6, %v465_v41  ;;  %2706 = vmatprep.subr.bf16.mxu1 %v5406_v7  ;;  %v445_v36 = vunpack.c.h.s8.bf16 %v6782_v11  ;;  %v449_v25 = vunpack.c.h.s8.bf16 %v6783_v1  ;;  %v6785_v48 = vld [vmem:[#allocation24_spill] sm:$0xff] }
  0x84   :  { %v5583_v6 = vcombine.high %v453_v53, %v457_v62  ;;  %v5585_v41 = vcombine.low %v453_v53, %v457_v62  ;;  %2566 = vmatmul.mubr.bf16.vlgmr.msra.gmra.mxu0 %v5537_v45  ;;  %v5590_v14 = vcombine.high %v349_v0, %v353_v20  ;;  %v5592_v31 = vcombine.low %v349_v0, %v353_v20  ;;  %v6784_v53 = vld [vmem:[#allocation23_spill] sm:$0xff]  ;;  %v5606_v0 = vld [vmem:[#allocation2 + $0x38] ss:$28 sps:$4 sm:$0xff]  }
  0x85   :  { %2619 = vmatmul.mubr.bf16.vlgmr.msra.gmra.mxu1 %v5549_v10  ;;  %2640 = vmatpush1.bf16.msra.mxu0 %v5417_v26  ;;  %v5598_v7 = vcombine.high %v445_v36, %v449_v25  ;;  %v5600_v62 = vcombine.low %v445_v36, %v449_v25  ;;  %v437_v1 = vunpack.c.h.s8.bf16 %v6784_v53  ;;  %v441_v11 = vunpack.c.h.s8.bf16 %v6785_v48  ;;  %v6787_v53 = vld [vmem:[#allocation26_spill] sm:$0xff]  ;;  %v6788_v10 = vld [vmem:[#allocation53_spill] sm:$0xff] }
  0x86   :  { %2707 = vmatpush1.bf16.msra.mxu1 %v5423_v52  ;;  %2641 = vmatprep.subr.bf16.mxu0 %v5436_v16  ;;  %v5608_v23 = vcombine.high %v597_v34, %v601_v54  ;;  %v5610_v55 = vcombine.low %v597_v34, %v601_v54  ;;  %v589_v26 = vunpack.c.h.s8.bf16 %v5355_v51  ;;  %v593_v20 = vunpack.c.h.s8.bf16 %v5357_v37  ;;  %v6786_v52 = vld [vmem:[#allocation25_spill] sm:$0xff] }
  0x87   :  { %2575 = vmatprep.mubr.bf16.mxu0 %v5564_v9  ;;  %2628 = vmatprep.mubr.bf16.mxu1 %v5566_v4  ;;  %v5616_v36 = vcombine.high %v437_v1, %v441_v11  ;;  %v5618_v25 = vcombine.low %v437_v1, %v441_v11  ;;  %v429_v16 = vunpack.c.h.s8.bf16 %v6786_v52  ;;  %v433_v48 = vunpack.c.h.s8.bf16 %v6787_v53  ;;  %v5630_v4 = vld [vmem:[#allocation2 + $0x40] ss:$28 sps:$4 sm:$0xff]   ;;  %v5632_v1 = vld [vmem:[#allocation2 + $0x14] ss:$28 sps:$4 sm:$0xff]   ;;  %v6794_v9 = vld [vmem:[#allocation28_spill] sm:$0xff] }
  0x88   :  { %2745 = vmatprep.subr.bf16.mxu1 %v6788_v10  ;;  %v5623_v34 = vcombine.high %v589_v26, %v593_v20  ;;  %v5625_v54 = vcombine.low %v589_v26, %v593_v20  ;;  %v581_v51 = vunpack.c.h.s8.bf16 %v5370_v44  ;;  %v585_v37 = vunpack.c.h.s8.bf16 %v5372_v38  ;;  %6791 = vst [vmem:[#allocation18_spill] sm:$0xff] %v5630_v4  ;;  %v6793_v53 = vld [vmem:[#allocation27_spill] sm:$0xff] }
  0x89   :  { %2642 = vmatpush1.bf16.msra.mxu0 %v5442_v12  ;;  %v5634_v11 = vcombine.high %v429_v16, %v433_v48  ;;  %v5636_v52 = vcombine.low %v429_v16, %v433_v48  ;;  %v421_v10 = vunpack.c.h.s8.bf16 %v6793_v53  ;;  %v573_v12 = vunpack.c.h.s8.bf16 %v5389_v22  ;;  %v6795_v16 = vld [vmem:[#allocation29_spill] sm:$0xff]  ;;  %v6796_v53 = vld [vmem:[#allocation30_spill] sm:$0xff] }
  0x8a   :  { %6789 = vst [vmem:[#allocation46_spill] sm:$0xff] %v5623_v34  ;;  %6790 = vst [vmem:[#allocation47_spill] sm:$0xff] %v5625_v54  ;;  %v425_v34 = vunpack.c.h.s8.bf16 %v6794_v9  ;;  %2643 = vmatprep.subr.bf16.mxu0 %v5453_v28  ;;  %v5641_v44 = vcombine.high %v581_v51, %v585_v37  ;;  %v5643_v38 = vcombine.low %v581_v51, %v585_v37  ;;  %v577_v26 = vunpack.c.h.s8.bf16 %v5391_v8  ;;  %v6798_v37 = vld [vmem:[#allocation31_spill] sm:$0xff] }
  0x8b   :  { %6792 = vst [vmem:[#allocation19_spill] sm:$0xff] %v5636_v52  ;;  %v413_v48 = vunpack.c.h.s8.bf16 %v6795_v16  ;;  %v417_v52 = vunpack.c.h.s8.bf16 %v6796_v53  ;;  %v565_v51 = vunpack.c.h.s8.bf16 %v5408_v50  ;;  %v569_v22 = vunpack.c.h.s8.bf16 %v5410_v57  ;;  %v6799_v16 = vld [vmem:[#allocation32_spill] sm:$0xff] }
  0x8c   :  { %v5647_v20 = vcombine.high %v421_v10, %v425_v34  ;;  %v5649_v54 = vcombine.low %v421_v10, %v425_v34  ;;  %2576 = vmatmul.mubr.bf16.gmra.mxu0 %v5606_v0  ;;  %v5654_v28 = vcombine.high %v573_v12, %v577_v26  ;;  %v5656_v9 = vcombine.low %v573_v12, %v577_v26 }
  0x8d   :  { %2629 = vmatmul.mubr.bf16.gmra.mxu1 %v5630_v4  ;;  %2644 = vmatpush1.bf16.msra.mxu0 %v5459_v46  ;;  %v5662_v8 = vcombine.high %v413_v48, %v417_v52  ;;  %v5664_v34 = vcombine.low %v413_v48, %v417_v52  ;;  %v533_v10 = vunpack.c.h.s8.bf16 %v6798_v37  ;;  %v537_v53 = vunpack.c.h.s8.bf16 %v6799_v16  ;;  %v6802_v37 = vld [vmem:[#allocation33_spill] sm:$0xff] }
  0x8e   :  { %6797 = vst [vmem:[#allocation50_spill] sm:$0xff] %v5656_v9  ;;  %2645 = vmatprep.subr.bf16.mxu0 %v5472_v56  ;;  %v6681_v12 = vmov 0   ;;  %v5670_v50 = vcombine.high %v565_v51, %v569_v22  ;;  %v5672_v57 = vcombine.low %v565_v51, %v569_v22  ;;  %v557_v26 = vunpack.c.h.s8.bf16 %v5425_v21  ;;  %2671 = vmatprep.mubr.bf16.mxu0 %v5632_v1  ;;  %v6803_v56 = vld [vmem:[#allocation34_spill] sm:$0xff] }
  0x8f   :  { %2724 = vmatprep.mubr.bf16.mxu1 %v6681_v12  ;;  %v561_v46 = vunpack.c.h.s8.bf16 %v5427_v63  ;;  %v5677_v52 = vcombine.high %v533_v10, %v537_v53  ;;  %v5679_v48 = vcombine.low %v533_v10, %v537_v53  ;;  %v525_v16 = vunpack.c.h.s8.bf16 %v6802_v37  ;;  %v5690_v63 = vld [vmem:[#allocation2 + $0x18] ss:$28 sps:$4 sm:$0xff]   ;;  %v6809_v53 = vld [vmem:[#allocation35_spill] sm:$0xff] }
  0x90   :  { %6800 = vst [vmem:[#allocation21_spill] sm:$0xff] %v5672_v57  ;;  %v529_v4 = vunpack.c.h.s8.bf16 %v6803_v56  ;;  %v549_v51 = vunpack.c.h.s8.bf16 %v5444_v39  ;;  %v553_v21 = vunpack.c.h.s8.bf16 %v5446_v5  ;;  %6806 = vst [vmem:[#allocation25_spill] sm:$0xff] %v5690_v63  ;;  %v517_v37 = vunpack.c.h.s8.bf16 %v6809_v53  ;;  %v6810_v57 = vld [vmem:[#allocation36_spill] sm:$0xff] }
  0x91   :  { %6801 = vst [vmem:[#allocation22_spill] sm:$0xff] %v5679_v48  ;;  %v5683_v9 = vcombine.high %v557_v26, %v561_v46  ;;  %v5685_v12 = vcombine.low %v557_v26, %v561_v46  ;;  %2646 = vmatpush1.bf16.msra.mxu0 %v5478_v60  ;;  %v521_v56 = vunpack.c.h.s8.bf16 %v6810_v57  ;;  %v541_v39 = vunpack.c.h.s8.bf16 %v5461_v58  ;;  %v6842_v48 = vld [vmem:[#allocation56_spill] sm:$0xff] }
  0x92   :  { %v5692_v22 = vcombine.high %v525_v16, %v529_v4  ;;  %v5694_v10 = vcombine.low %v525_v16, %v529_v4  ;;  %2647 = vmatprep.subr.bf16.mxu0 %v5487_v40  ;;  %v5699_v26 = vcombine.high %v549_v51, %v553_v21  ;;  %v5701_v46 = vcombine.low %v549_v51, %v553_v21  ;;  %v6815_v4 = vld [vmem:[#allocation37_spill] sm:$0xff]  ;;  %v5720_v21 = vld [vmem:[#allocation4 + $0x508] sm:$0xff] }
  0x93   :  { %6804 = vst [vmem:[#allocation23_spill] sm:$0xff] %v5683_v9  ;;  %6805 = vst [vmem:[#allocation24_spill] sm:$0xff] %v5685_v12  ;;  %v545_v5 = vunpack.c.h.s8.bf16 %v5463_v32  ;;  %v5705_v60 = vcombine.high %v517_v37, %v521_v56  ;;  %v5707_v12 = vcombine.low %v517_v37, %v521_v56  ;;  %v509_v16 = vunpack.c.h.s8.bf16 %v6815_v4  ;;  %v5722_v37 = vld [vmem:[#allocation4 + $0x516] sm:$0xff] }
  0x94   :  { %6807 = vst [vmem:[#allocation26_spill] sm:$0xff] %v5692_v22  ;;  %6808 = vst [vmem:[#allocation53_spill] sm:$0xff] %v5694_v10  ;;  %v6816_v10 = vld [vmem:[#allocation38_spill] sm:$0xff]  ;;  %v661_v40 = vunpack.c.h.s8.bf16 %v5480_v29  ;;  %v665_v51 = vunpack.c.h.s8.bf16 %v5495_v19  ;;  %v6821_v4 = vld [vmem:[#allocation40_spill] sm:$0xff] }
  0x95   :  { %6811 = vst [vmem:[#allocation27_spill] sm:$0xff] %v5699_v26  ;;  %6812 = vst [vmem:[#allocation28_spill] sm:$0xff] %v5701_v46  ;;  %v513_v53 = vunpack.c.h.s8.bf16 %v6816_v10  ;;  %v5711_v9 = vcombine.high %v541_v39, %v545_v5  ;;  %v5713_v57 = vcombine.low %v541_v39, %v545_v5  ;;  %4555 = vmatmul.mubr.msk.bf16.vlgmr.msra.gmra.mxu1 %vm2526_vm0, %v5690_v63  ;;  %2648 = vmatpush1.bf16.msra.mxu0 %v5493_v15  ;;  %v6822_v5 = vld [vmem:[#allocation41_spill] sm:$0xff]  ;;  %v6826_v26 = vld [vmem:[#allocation54_spill] sm:$0xff] }
  0x96   :  { %6813 = vst [vmem:[#allocation29_spill] sm:$0xff] %v5705_v60  ;;  %6814 = vst [vmem:[#allocation30_spill] sm:$0xff] %v5707_v12  ;;  %v501_v39 = vunpack.c.h.s8.bf16 %v6821_v4  ;;  %2649 = vmatprep.subr.bf16.mxu0 %v5504_v42  ;;  %v5732_v46 = vcombine.high %v661_v40, %v665_v51  ;;  %v5734_v63 = vcombine.low %v661_v40, %v665_v51  ;;  %v653_v15 = vunpack.c.h.s8.bf16 %v5720_v21  ;;  %v6830_v42 = vld [vmem:[#allocation44_spill] sm:$0xff]  ;;  %v6831_v40 = vld [vmem:[#allocation45_spill] sm:$0xff] }
  0x97   :  { %6817 = vst [vmem:[#allocation31_spill] sm:$0xff] %v5711_v9  ;;  %6818 = vst [vmem:[#allocation32_spill] sm:$0xff] %v5713_v57  ;;  %v5724_v56 = vcombine.high %v509_v16, %v513_v53  ;;  %v5726_v10 = vcombine.low %v509_v16, %v513_v53  ;;  %v505_v57 = vunpack.c.h.s8.bf16 %v6822_v5  ;;  %v6823_v9 = vld [vmem:[#allocation17_spill] sm:$0xff]  ;;  %v657_v12 = vunpack.c.h.s8.bf16 %v5722_v37  ;;  %v5739_v16 = vld [vmem:[#allocation4 + $0x4ec] sm:$0xff] }
  0x98   :  { %2746 = vmatpush1.bf16.msra.mxu1 %v6823_v9  ;;  %6824 = vst [vmem:[#allocation35_spill] sm:$0xff] %v5732_v46  ;;  %6825 = vst [vmem:[#allocation36_spill] sm:$0xff] %v5734_v63  ;;  %v5741_v53 = vld [vmem:[#allocation4 + $0x4fa] sm:$0xff]  ;;  %v6827_v4 = vmov 0   ;;  %v493_v46 = vunpack.c.h.s8.bf16 %v6830_v42  ;;  %v497_v51 = vunpack.c.h.s8.bf16 %v6831_v40  ;;  %v5757_v60 = vld [vmem:[#allocation4 + $0x4d0] sm:$0xff] }
  0x99   :  { %6819 = vst [vmem:[#allocation33_spill] sm:$0xff] %v5724_v56  ;;  %6820 = vst [vmem:[#allocation34_spill] sm:$0xff] %v5726_v10  ;;  %2747 = vmatprep.subr.bf16.mxu1 %v6826_v26  ;;  %2734 = vmatprep.mubr.bf16.mxu1 %v6827_v4  ;;  %v5744_v5 = vcombine.high %v501_v39, %v505_v57  ;;  %v5746_v9 = vcombine.low %v501_v39, %v505_v57  ;;  %v645_v26 = vunpack.c.h.s8.bf16 %v5739_v16  ;;  %v5759_v4 = vld [vmem:[#allocation4 + $0x4de] sm:$0xff]  ;;  %v6837_v40 = vld [vmem:[#allocation48_spill] sm:$0xff] }
  0x9a   :  { %v5750_v63 = vcombine.high %v653_v15, %v657_v12  ;;  %v5752_v10 = vcombine.low %v653_v15, %v657_v12  ;;  %v649_v56 = vunpack.c.h.s8.bf16 %v5741_v53  ;;  %2650 = vmatpush1.bf16.msra.mxu0 %v5510_v35  ;;  %v5761_v57 = vld [vmem:[#allocation2 + $0x50] ss:$28 sps:$4 sm:$0xff]   ;;  %v5763_v39 = vcombine.high %v493_v46, %v497_v51 }
  0x9b   :  { %6828 = vst [vmem:[#allocation37_spill] sm:$0xff] %v5744_v5  ;;  %6829 = vst [vmem:[#allocation38_spill] sm:$0xff] %v5746_v9  ;;  %v5765_v42 = vcombine.low %v493_v46, %v497_v51  ;;  %v6838_v12 = vld [vmem:[#allocation49_spill] sm:$0xff]  ;;  %2651 = vmatprep.subr.bf16.mxu0 %v5517_v30  ;;  %v637_v5 = vunpack.c.h.s8.bf16 %v5757_v60  ;;  %v641_v22 = vunpack.c.h.s8.bf16 %v5759_v4  ;;  %v5778_v46 = vld [vmem:[#allocation4 + $0x4b4] sm:$0xff] }
  0x9c   :  { %6832 = vst [vmem:[#allocation40_spill] sm:$0xff] %v5750_v63  ;;  %6833 = vst [vmem:[#allocation41_spill] sm:$0xff] %v5752_v10  ;;  %v485_v63 = vunpack.c.h.s8.bf16 %v6837_v40  ;;  %v489_v15 = vunpack.c.h.s8.bf16 %v6838_v12  ;;  %v6839_v10 = vld [vmem:[#allocation55_spill] sm:$0xff]  ;;  %v5771_v9 = vcombine.high %v645_v26, %v649_v56  ;;  %v5773_v35 = vcombine.low %v645_v26, %v649_v56  ;;  %v5780_v51 = vld [vmem:[#allocation4 + $0x4c2] sm:$0xff] }
  0x9d   :  { %6834 = vst [vmem:[#allocation17_spill] sm:$0xff] %v5761_v57  ;;  %6835 = vst [vmem:[#allocation54_spill] sm:$0xff] %v5763_v39  ;;  %2748 = vmatpush1.bf16.msra.mxu1 %v6839_v10  ;;  %v6844_v10 = vld [vmem:[#allocation51_spill] sm:$0xff]  ;;  %v5788_v56 = vcombine.high %v637_v5, %v641_v22  ;;  %v5790_v26 = vcombine.low %v637_v5, %v641_v22  ;;  %v6848_v39 = vunpack.c.l.s8.bf16 %v5463_v32  ;;  %v6851_v5 = vld [vmem:[#allocation57_spill] sm:$0xff]  ;;  %v6853_v32 = vunpack.c.l.s8.bf16 %v5480_v29 }
  0x9e   :  { %6836 = vst [vmem:[#allocation44_spill] sm:$0xff] %v5765_v42  ;;  %6840 = vst [vmem:[#allocation45_spill] sm:$0xff] %v5771_v9  ;;  %2749 = vmatprep.subr.bf16.mxu1 %v6842_v48  ;;  %v5782_v40 = vcombine.high %v485_v63, %v489_v15  ;;  %v5784_v12 = vcombine.low %v485_v63, %v489_v15  ;;  %v477_v30 = vunpack.c.h.s8.bf16 %v6844_v10  ;;  %v6845_v42 = vld [vmem:[#allocation52_spill] sm:$0xff]  ;;  %v633_v48 = vunpack.c.h.s8.bf16 %v5780_v51 }
  0x9f   :  { %6841 = vst [vmem:[#allocation48_spill] sm:$0xff] %v5773_v35  ;;  %v481_v9 = vunpack.c.h.s8.bf16 %v6845_v42  ;;  %6846 = vst [vmem:[#allocation55_spill] sm:$0xff] %v5788_v56  ;;  %v629_v35 = vunpack.c.h.s8.bf16 %v5778_v46  ;;  %2652 = vmatpush1.bf16.msra.mxu0 %v5519_v2  ;;  %v652_v15 = vunpack.c.l.s8.bf16 %v5720_v21  ;;  %4556 = vmatmul.mubr.msk.bf16.gmra.mxu1 %vm2526_vm0, %v5761_v57  ;;  %v6852_v2 = vunpack.c.l.s8.bf16 %v5495_v19  ;;  %v5815_v21 = vld [vmem:[#allocation4 + $0x4a6] sm:$0xff]  ;;  %v6863_v56 = vld [vmem:[#allocation60_spill] sm:$0xff] }
  0xa0   :  { %6843 = vst [vmem:[#allocation49_spill] sm:$0xff] %v5782_v40  ;;  %6847 = vst [vmem:[#allocation56_spill] sm:$0xff] %v5790_v26  ;;  %v6849_v40 = vunpack.c.l.s8.bf16 %v5461_v58  ;;  %2653 = vmatprep.subr.bf16.mxu0 %v5543_v61  ;;  %v656_v58 = vunpack.c.l.s8.bf16 %v5722_v37  ;;  %v5831_v26 = vld [vmem:[#allocation4 + $0x47c] sm:$0xff]  ;;  %v644_v19 = vunpack.c.l.s8.bf16 %v5739_v16  ;;  %v648_v29 = vunpack.c.l.s8.bf16 %v5741_v53 }
  0xa1   :  { %v5802_v42 = vcombine.high %v477_v30, %v481_v9  ;;  %v5804_v22 = vcombine.low %v477_v30, %v481_v9  ;;  %2750 = vmatpush1.bf16.msra.mxu1 %v6851_v5  ;;  %v4542_v10 = vcombine.high %v6853_v32, %v6852_v2  ;;  %v5819_v57 = vcombine.low %v629_v35, %v633_v48  ;;  %v6856_v9 = vld [vmem:[#allocation58_spill] sm:$0xff]  ;;  %v5822_v30 = vld [vmem:[#allocation2 + $0x4] ss:$28 sps:$4 sm:$0xff]  }
  0xa2   :  { %v4436_v63 = vcombine.low %v6849_v40, %v6848_v39  ;;  %v5813_v39 = vld [vmem:[#allocation4 + $0x498] sm:$0xff]  ;;  %v5817_v40 = vcombine.high %v629_v35, %v633_v48  ;;  %2751 = vmatprep.subr.bf16.mxu1 %v6856_v9  ;;  %6857 = vst [vmem:[#allocation58_spill] sm:$0xff] %v5822_v30  ;;  %2777 = vmatprep.mubr.bf16.mxu1 %v5822_v30  ;;  %v625_v5 = vunpack.c.h.s8.bf16 %v5815_v21  ;;  %v6858_v37 = vmov %v6852_v2 }
  0xa3   :  { %6850 = vst [vmem:[#allocation51_spill] sm:$0xff] %v5804_v22  ;;  %6855 = vst [vmem:[#allocation57_spill] sm:$0xff] %v5819_v57  ;;  %v621_v61 = vunpack.c.h.s8.bf16 %v5813_v39  ;;  %v6859_v2 = vmov %v6853_v32  ;;  %v613_v9 = vunpack.c.h.s8.bf16 %v5831_v26  ;;  %v6862_v57 = vld [vmem:[#allocation59_spill] sm:$0xff]  ;;  %v4535_v22 = vcombine.high %v652_v15, %v656_v58 }
  0xa4   :  { %6854 = vst [vmem:[#allocation52_spill] sm:$0xff] %v5817_v40  ;;  %v4541_v32 = vcombine.low %v6859_v2, %v6858_v37  ;;  %v254_v40 = vld [vmem:[#allocation4 + $0x48a] sm:$0xff]  ;;  %2654 = vmatpush1.bf16.msra.mxu0 %v4436_v63  ;;  %v248_v37 = vld [vmem:[#allocation4 + $0x460] sm:$0xff]  ;;  %v4528_v16 = vcombine.high %v644_v19, %v648_v29  ;;  %v640_v53 = vunpack.c.l.s8.bf16 %v5759_v4 }
  0xa5   :  { %v5833_v35 = vcombine.high %v621_v61, %v625_v5  ;;  %v5835_v48 = vcombine.low %v621_v61, %v625_v5  ;;  %v617_v30 = vunpack.c.h.s8.bf16 %v254_v40  ;;  %2752 = vmatpush1.bf16.msra.mxu1 %v6862_v57  ;;  %2655 = vmatprep.subr.bf16.mxu0 %v4542_v10  ;;  %v250_v2 = vld [vmem:[#allocation4 + $0x46e] sm:$0xff]  ;;  %v605_v61 = vunpack.c.h.s8.bf16 %v248_v37 }
  0xa6   :  { %2753 = vmatprep.subr.bf16.mxu1 %v5412_v47  ;;  %v609_v5 = vunpack.c.h.s8.bf16 %v250_v2  ;;  %v636_v57 = vunpack.c.l.s8.bf16 %v5757_v60  ;;  %v628_v60 = vunpack.c.l.s8.bf16 %v5778_v46 }
  0xa7   :  { %6860 = vst [vmem:[#allocation70_spill] sm:$0xff] %v5833_v35  ;;  %6861 = vst [vmem:[#allocation71_spill] sm:$0xff] %v5835_v48  ;;  %v5842_v63 = vcombine.high %v613_v9, %v617_v30  ;;  %v5844_v35 = vcombine.low %v613_v9, %v617_v30  ;;  %v4534_v48 = vcombine.low %v652_v15, %v656_v58  ;;  %v6864_v9 = vld [vmem:[#allocation61_spill] sm:$0xff] }
  0xa8   :  { %2656 = vmatpush2.bf16.msra.mxu0 %v4541_v32  ;;  %v5849_v10 = vcombine.high %v605_v61, %v609_v5  ;;  %v5851_v47 = vcombine.low %v605_v61, %v609_v5  ;;  %v4527_v30 = vcombine.low %v644_v19, %v648_v29  ;;  %v4521_v15 = vcombine.high %v636_v57, %v640_v53  ;;  %v6867_v29 = vld [vmem:[#allocation64_spill] sm:$0xff] }
  0xa9   :  { %2754 = vmatpush1.bf16.msra.mxu1 %v5414_v59  ;;  %2657 = vmatprep.subr.bf16.mxu0 %v4535_v22  ;;  %v632_v59 = vunpack.c.l.s8.bf16 %v5780_v51  ;;  %v4520_v4 = vcombine.low %v636_v57, %v640_v53  ;;  %v6865_v22 = vld [vmem:[#allocation62_spill] sm:$0xff]  ;;  %v624_v32 = vunpack.c.l.s8.bf16 %v5815_v21  ;;  %v616_v51 = vunpack.c.l.s8.bf16 %v254_v40  ;;  %v6870_v40 = vld [vmem:[#allocation67_spill] sm:$0xff] }
  0xaa   :  { %2755 = vmatprep.subr.bf16.mxu1 %v6863_v56  ;;  %v620_v56 = vunpack.c.l.s8.bf16 %v5813_v39  ;;  %v604_v21 = vunpack.c.l.s8.bf16 %v248_v37  ;;  %v608_v5 = vunpack.c.l.s8.bf16 %v250_v2  ;;  %v5873_v37 = vld [vmem:[#allocation2 + $0x4c] ss:$28 sps:$4 sm:$0xff]   ;;  %v6873_v2 = vld [vmem:[#allocation39_spill] sm:$0xff] }
  0xab   :  { %v4514_v58 = vcombine.high %v628_v60, %v632_v59  ;;  %v4513_v19 = vcombine.low %v628_v60, %v632_v59  ;;  %v6876_v60 = vld [vmem:[#allocation42_spill] sm:$0xff]  ;;  %v5884_v59 = vld [vmem:[#allocation2 + $0x48] ss:$28 sps:$4 sm:$0xff]  }
  0xac   :  { %2658 = vmatpush2.bf16.msra.mxu0 %v4534_v48  ;;  %v6866_v48 = vld [vmem:[#allocation63_spill] sm:$0xff]  ;;  %v4507_v46 = vcombine.high %v620_v56, %v624_v32  ;;  %v4506_v61 = vcombine.low %v620_v56, %v624_v32  ;;  %v4493_v53 = vcombine.high %v604_v21, %v608_v5  ;;  %v6899_v32 = vld [vmem:[#allocation38_spill] sm:$0xff] }
  0xad   :  { %2756 = vmatpush1.bf16.msra.mxu1 %v6864_v9  ;;  %2659 = vmatprep.subr.bf16.mxu0 %v4528_v16  ;;  %v6868_v16 = vld [vmem:[#allocation65_spill] sm:$0xff]  ;;  %v6874_v9 = vld [vmem:[#allocation20_spill] sm:$0xff] }
  0xae   :  { %2757 = vmatprep.subr.bf16.mxu1 %v5448_v27  ;;  %v612_v27 = vunpack.c.l.s8.bf16 %v5831_v26  ;;  %v6869_v26 = vld [vmem:[#allocation66_spill] sm:$0xff] }
  0xb0   :  { %2660 = vmatpush2.bf16.msra.mxu0 %v4527_v30  ;;  %v4500_v39 = vcombine.high %v612_v27, %v616_v51  ;;  %v4499_v57 = vcombine.low %v612_v27, %v616_v51  ;;  %v5871_v30 = vld [vmem:[#allocation2 + $0x10] ss:$28 sps:$4 sm:$0xff]   ;;  %v6902_v27 = vld [vmem:[#allocation40_spill] sm:$0xff] }
  0xb1   :  { %2758 = vmatpush1.bf16.msra.mxu1 %v6865_v22  ;;  %2661 = vmatprep.subr.bf16.mxu0 %v4521_v15  ;;  %v6875_v15 = vld [vmem:[#allocation13_spill] sm:$0xff] }
  0xb2   :  { %2759 = vmatprep.subr.bf16.mxu1 %v6866_v48  ;;  %v6900_v48 = vld [vmem:[#allocation36_spill] sm:$0xff] }
  0xb4   :  { %2662 = vmatpush2.bf16.msra.mxu0 %v4520_v4  ;;  %v6877_v4 = vld [vmem:[#allocation43_spill] sm:$0xff] }
  0xb5   :  { %2760 = vmatpush1.bf16.msra.mxu1 %v6867_v29  ;;  %2663 = vmatprep.subr.bf16.mxu0 %v4514_v58  ;;  %v5943_v29 = vld [vmem:[#allocation4 + $0x94] sm:$0x3f] }
  0xb6   :  { %2761 = vmatprep.subr.bf16.mxu1 %v5482_v3  ;;  %v4492_v3 = vcombine.low %v604_v21, %v608_v5  ;;  %v327_v51 = vunpack.c.h.s8.bf16 %v5943_v29  ;;  %v6903_v21 = vld [vmem:[#allocation44_spill] sm:$0xff]  ;;  %v6904_v5 = vld [vmem:[#allocation41_spill] sm:$0xff] }
  0xb8   :  { %2664 = vmatpush2.bf16.msra.mxu0 %v4513_v19  ;;  %v6901_v19 = vld [vmem:[#allocation54_spill] sm:$0xff] }
  0xb9   :  { %2762 = vmatpush2.bf16.msra.mxu1 %v5484_v49  ;;  %2665 = vmatprep.subr.bf16.mxu0 %v4507_v46  ;;  %v6871_v49 = vld [vmem:[#allocation68_spill] sm:$0xff]  ;;  %v5945_v46 = vld [vmem:[#allocation4 + $0xa2] sm:$0x3f] }
  0xba   :  { %2763 = vmatprep.subr.bf16.mxu1 %v5497_v43  ;;  %v6872_v43 = vld [vmem:[#allocation69_spill] sm:$0xff] }
  0xbc   :  { %2666 = vmatpush2.bf16.msra.mxu0 %v4506_v61  ;;  %v331_v61 = vunpack.c.h.s8.bf16 %v5945_v46 }
  0xbd   :  { %2764 = vmatpush2.bf16.msra.mxu1 %v6868_v16  ;;  %2667 = vmatprep.subr.bf16.mxu0 %v4500_v39 }
  0xbe   :  { %2765 = vmatprep.subr.bf16.mxu1 %v6869_v26  ;;  %v5955_v26 = vld [vmem:[#allocation4 + $0x78] sm:$0x3f] }
  0xc0   :  { %2668 = vmatpush2.bf16.msra.mxu0 %v4499_v57  ;;  %v6905_v57 = vld [vmem:[#allocation49_spill] sm:$0xff] }
  0xc1   :  { %2766 = vmatpush2.bf16.msra.mxu1 %v6870_v40  ;;  %2669 = vmatprep.subr.bf16.mxu0 %v4493_v53  ;;  %v6906_v40 = vld [vmem:[#allocation45_spill] sm:$0xff] }
  0xc2   :  { %2767 = vmatprep.subr.bf16.mxu1 %v6871_v49  ;;  %v319_v49 = vunpack.c.h.s8.bf16 %v5955_v26 }
  0xc4   :  { %2670 = vmatpush2.bf16.msra.mxu0 %v4492_v3  ;;  %v5957_v3 = vld [vmem:[#allocation4 + $0x86] sm:$0x3f] }
  0xc5   :  { %2768 = vmatpush2.bf16.msra.mxu1 %v6872_v43  ;;  %2798 = vmatprep.subr.bf16.mxu0 %v6873_v2  ;;  %v323_v43 = vunpack.c.h.s8.bf16 %v5957_v3  ;;  %v5962_v2 = vcombine.low %v327_v51, %v331_v61 }
  0xc6   :  { %2769 = vmatprep.subr.bf16.mxu1 %v5551_v24  ;;  %v5892_v24 = vld [vmem:[#allocation2 + $0xc] ss:$28 sps:$4 sm:$0xff]  }
  0xc7   :  { %2672 = vmatmul.mubr.bf16.vlgmr.msra.gmra.mxu0 %v5871_v30 }
  0xc8   :  { %2799 = vmatpush1.bf16.msra.mxu0 %v6874_v9  ;;  %2681 = vmatprep.mubr.bf16.mxu0 %v5873_v37  ;;  %v6907_v9 = vld [vmem:[#allocation48_spill] sm:$0xff] }
  0xc9   :  { %2770 = vmatpush2.bf16.msra.mxu1 %v6875_v15  ;;  %2800 = vmatprep.subr.bf16.mxu0 %v5568_v17  ;;  %v6878_v17 = vld [vmem:[#allocation46_spill] sm:$0xff] }
  0xca   :  { %2771 = vmatprep.subr.bf16.mxu1 %v6876_v60 }
  0xcc   :  { %2801 = vmatpush1.bf16.msra.mxu0 %v5570_v13  ;;  %v6879_v13 = vld [vmem:[#allocation15_spill] sm:$0xff] }
  0xcd   :  { %2772 = vmatpush2.bf16.msra.mxu1 %v6877_v4  ;;  %2802 = vmatprep.subr.bf16.mxu0 %v5583_v6  ;;  %v6883_v6 = vld [vmem:[#allocation22_spill] sm:$0xff] }
  0xce   :  { %2773 = vmatprep.subr.bf16.mxu1 %v5576_v33  ;;  %v6880_v33 = vld [vmem:[#allocation19_spill] sm:$0xff] }
  0xcf   :  { %2682 = vmatmul.mubr.bf16.gmra.mxu0 %v5884_v59 }
  0xd0   :  { %2803 = vmatpush1.bf16.msra.mxu0 %v5585_v41  ;;  %2830 = vmatprep.mubr.bf16.mxu0 %v5892_v24  ;;  %v6884_v41 = vld [vmem:[#allocation21_spill] sm:$0xff] }
  0xd1   :  { %2774 = vmatpush2.bf16.msra.mxu1 %v5578_v18  ;;  %2804 = vmatprep.subr.bf16.mxu0 %v5598_v7  ;;  %v6881_v18 = vld [vmem:[#allocation47_spill] sm:$0xff]  ;;  %v6887_v7 = vld [vmem:[#allocation53_spill] sm:$0xff] }
  0xd2   :  { %2775 = vmatprep.subr.bf16.mxu1 %v5590_v14  ;;  %v6885_v14 = vld [vmem:[#allocation26_spill] sm:$0xff] }
  0xd4   :  { %2805 = vmatpush1.bf16.msra.mxu0 %v5600_v62  ;;  %v6888_v62 = vld [vmem:[#allocation24_spill] sm:$0xff] }
  0xd5   :  { %2776 = vmatpush2.bf16.msra.mxu1 %v5592_v31  ;;  %2806 = vmatprep.subr.bf16.mxu0 %v5616_v36  ;;  %v6886_v31 = vld [vmem:[#allocation23_spill] sm:$0xff]  ;;  %v6892_v36 = vld [vmem:[#allocation28_spill] sm:$0xff] }
  0xd6   :  { %2851 = vmatprep.subr.bf16.mxu1 %v5608_v23  ;;  %v6890_v23 = vld [vmem:[#allocation27_spill] sm:$0xff] }
  0xd8   :  { %2778 = vmatmul.mubr.bf16.vlgmr.msra.gmra.mxu1 %v5537_v45  ;;  %2807 = vmatpush1.bf16.msra.mxu0 %v5618_v25  ;;  %v6882_v45 = vld [vmem:[#allocation50_spill] sm:$0xff]  ;;  %v6893_v25 = vld [vmem:[#allocation33_spill] sm:$0xff] }
  0xd9   :  { %2852 = vmatpush1.bf16.msra.mxu1 %v5610_v55  ;;  %2808 = vmatprep.subr.bf16.mxu0 %v5634_v11  ;;  %v6891_v55 = vld [vmem:[#allocation30_spill] sm:$0xff]  ;;  %v6894_v11 = vld [vmem:[#allocation31_spill] sm:$0xff] }
  0xda   :  { %2853 = vmatprep.subr.bf16.mxu1 %v6878_v17  ;;  %2787 = vmatprep.mubr.bf16.mxu1 %v6879_v13  ;;  %v5967_v17 = vld [vmem:[#allocation4 + $0x5c] sm:$0x3f]  ;;  %v5969_v13 = vld [vmem:[#allocation4 + $0x6a] sm:$0x3f] }
  0xdc   :  { %2809 = vmatpush1.bf16.msra.mxu0 %v6880_v33  ;;  %v6908_v33 = vld [vmem:[#allocation55_spill] sm:$0xff] }
  0xdd   :  { %2854 = vmatpush1.bf16.msra.mxu1 %v6881_v18  ;;  %2810 = vmatprep.subr.bf16.mxu0 %v5647_v20  ;;  %v6895_v20 = vld [vmem:[#allocation34_spill] sm:$0xff]  ;;  %v311_v18 = vunpack.c.h.s8.bf16 %v5967_v17 }
  0xde   :  { %2855 = vmatprep.subr.bf16.mxu1 %v5641_v44 }
  0xe0   :  { %2811 = vmatpush1.bf16.msra.mxu0 %v5649_v54  ;;  %2788 = vmatmul.mubr.bf16.gmra.mxu1 %v5606_v0  ;;  %v6889_v0 = vld [vmem:[#allocation29_spill] sm:$0xff]  ;;  %v117_v54 = vld [vmem:[#allocation4 + $0xcc] sm:$0x3f] }
  0xe1   :  { %2856 = vmatpush1.bf16.msra.mxu1 %v5643_v38  ;;  %2812 = vmatprep.subr.bf16.mxu0 %v5662_v8  ;;  %v343_v44 = vunpack.c.h.s8.bf16 %v117_v54  ;;  %v6897_v8 = vld [vmem:[#allocation37_spill] sm:$0xff]  ;;  %v342_v16 = vunpack.c.l.s8.bf16 %v117_v54 }
  0xe2   :  { %2857 = vmatprep.subr.bf16.mxu1 %v5654_v28  ;;  %2883 = vmatprep.mubr.bf16.mxu1 %v5632_v1  ;;  %v119_v1 = vld [vmem:[#allocation4 + $0xda] sm:$0x3f] }
  0xe3   :  { %v347_v38 = vunpack.c.h.s8.bf16 %v119_v1  ;;  %v6896_v28 = vld [vmem:[#allocation32_spill] sm:$0xff]  ;;  %v346_v53 = vunpack.c.l.s8.bf16 %v119_v1 }
  0xe4   :  { %2813 = vmatpush1.bf16.msra.mxu0 %v5664_v34  ;;  %v113_v34 = vld [vmem:[#allocation4 + $0xb0] sm:$0x3f] }
  0xe5   :  { %2858 = vmatpush1.bf16.msra.mxu1 %v6882_v45  ;;  %2814 = vmatprep.subr.bf16.mxu0 %v5677_v52  ;;  %v6898_v52 = vld [vmem:[#allocation35_spill] sm:$0xff]  ;;  %v335_v22 = vunpack.c.h.s8.bf16 %v113_v34  ;;  %v5938_v56 = vcombine.low %v343_v44, %v347_v38  ;;  %v4266_v15 = vcombine.high %v342_v16, %v346_v53  ;;  %v334_v60 = vunpack.c.l.s8.bf16 %v113_v34 }
  0xe6   :  { %2859 = vmatprep.subr.bf16.mxu1 %v5670_v50  ;;  %v115_v50 = vld [vmem:[#allocation4 + $0xbe] sm:$0x3f]  ;;  %v315_v45 = vunpack.c.h.s8.bf16 %v5969_v13 }
  0xe7   :  { %v339_v58 = vunpack.c.h.s8.bf16 %v115_v50  ;;  %v338_v4 = vunpack.c.l.s8.bf16 %v115_v50  ;;  %v318_v50 = vunpack.c.l.s8.bf16 %v5955_v26  ;;  %v314_v26 = vunpack.c.l.s8.bf16 %v5969_v13 }
  0xe8   :  { %2815 = vmatpush2.bf16.msra.mxu0 %v6883_v6  ;;  %v5974_v6 = vcombine.low %v319_v49, %v323_v43  ;;  %v5991_v1 = vcombine.low %v311_v18, %v315_v45  ;;  %v6024_v49 = vld [vmem:[#allocation4 + $0x422] sm:$0x3f]  ;;  %v6031_v18 = vld [vmem:[#allocation4 + $0x29a] sm:$0x3f] }
  0xe9   :  { %2860 = vmatpush1.bf16.msra.mxu1 %v6884_v41  ;;  %2816 = vmatprep.subr.bf16.mxu0 %v6885_v14  ;;  %v5950_v39 = vcombine.low %v335_v22, %v339_v58  ;;  %v4265_v41 = vcombine.low %v342_v16, %v346_v53  ;;  %v6911_v14 = vld [vmem:[#allocation56_spill] sm:$0xff]  ;;  %v6000_v22 = vld [vmem:[#allocation4 + $0x24] sm:$0x3f]  ;;  %v310_v53 = vunpack.c.l.s8.bf16 %v5967_v17  ;;  %v587_v13 = vunpack.c.h.s8.bf16 %v6024_v49 }
  0xea   :  { %2861 = vmatprep.subr.bf16.mxu1 %v6886_v31  ;;  %6909 = vst [vmem:[#allocation59_spill] sm:$0xff] %v5974_v6  ;;  %v326_v31 = vunpack.c.l.s8.bf16 %v5943_v29  ;;  %6913 = vst [vmem:[#allocation60_spill] sm:$0xff] %v5991_v1  ;;  %v6917_v58 = vld [vmem:[#allocation70_spill] sm:$0xff]  ;;  %v6008_v29 = vld [vmem:[#allocation4 + $0x43e] sm:$0x3f] }
  0xeb   :  { %v595_v61 = vunpack.c.h.s8.bf16 %v6008_v29  ;;  %v4905_v43 = vld [vmem:[#allocation4 + $0x540] sm:$0xff] }
  0xec   :  { %2817 = vmatpush2.bf16.msra.mxu0 %v6887_v7  ;;  %v330_v7 = vunpack.c.l.s8.bf16 %v5945_v46  ;;  %v6921_v45 = vld [vmem:[#allocation18_spill] sm:$0xff] }
  0xed   :  { %2862 = vmatpush1.bf16.msra.mxu1 %v6888_v62  ;;  %2818 = vmatprep.subr.bf16.mxu0 %v6889_v0  ;;  %v5980_v62 = vld [vmem:[#allocation4 + $0x44c] sm:$0x3f]  ;;  %v5982_v0 = vld [vmem:[#allocation4 + $0x45a] sm:$0x3f] }
  0xee   :  { %2863 = vmatprep.subr.bf16.mxu1 %v6890_v23  ;;  %v6912_v23 = vld [vmem:[#allocation52_spill] sm:$0xff]  ;;  %v603_v54 = vunpack.c.h.s8.bf16 %v5982_v0  ;;  %v4252_v34 = vcombine.high %v326_v31, %v330_v7 }
  0xf0   :  { %2819 = vmatpush2.bf16.msra.mxu0 %v6891_v55  ;;  %v5985_v55 = vld [vmem:[#allocation4 + $0x40] sm:$0x3f] }
  0xf1   :  { %2864 = vmatpush1.bf16.msra.mxu1 %v6892_v36  ;;  %2820 = vmatprep.subr.bf16.mxu0 %v6893_v25  ;;  %v5987_v36 = vld [vmem:[#allocation4 + $0x4e] sm:$0x3f]  ;;  %v599_v25 = vunpack.c.h.s8.bf16 %v5980_v62  ;;  %v303_v44 = vunpack.c.h.s8.bf16 %v5985_v55 }
  0xf2   :  { %2865 = vmatprep.subr.bf16.mxu1 %v6894_v11  ;;  %v6914_v11 = vld [vmem:[#allocation14_spill] sm:$0xff]  ;;  %v307_v38 = vunpack.c.h.s8.bf16 %v5987_v36 }
  0xf3   :  { %v6010_v46 = vcombine.low %v599_v25, %v603_v54  ;;  %v306_v25 = vunpack.c.l.s8.bf16 %v5987_v36  ;;  %v475_v36 = vunpack.c.h.s8.bf16 %v6031_v18 }
  0xf4   :  { %2821 = vmatpush2.bf16.msra.mxu0 %v6895_v20  ;;  %v4258_v20 = vcombine.low %v334_v60, %v338_v4 }
  0xf5   :  { %2866 = vmatpush1.bf16.msra.mxu1 %v6896_v28  ;;  %2822 = vmatprep.subr.bf16.mxu0 %v6897_v8  ;;  %v6915_v28 = vld [vmem:[#allocation16_spill] sm:$0xff]  ;;  %v6916_v8 = vld [vmem:[#allocation57_spill] sm:$0xff]  ;;  %6918 = vst [vmem:[#allocation61_spill] sm:$0xff] %v6010_v46 }
  0xf6   :  { %2867 = vmatprep.subr.bf16.mxu1 %v6898_v52  ;;  %v322_v52 = vunpack.c.l.s8.bf16 %v5957_v3  ;;  %v6020_v3 = vld [vmem:[#allocation4 + $0x8] sm:$0x3f]  ;;  %v6202_v46 = vld [vmem:[#allocation4 + $0x1d6] sm:$0x3f] }
  0xf8   :  { %2823 = vmatpush2.bf16.msra.mxu0 %v6899_v32  ;;  %v6003_v32 = vld [vmem:[#allocation4 + $0x32] sm:$0x3f]  ;;  %v4245_v16 = vcombine.high %v318_v50, %v322_v52 }
  0xf9   :  { %2868 = vmatpush2.bf16.msra.mxu1 %v6900_v48  ;;  %2824 = vmatprep.subr.bf16.mxu0 %v6901_v19  ;;  %v295_v48 = vunpack.c.h.s8.bf16 %v6000_v22  ;;  %v6006_v19 = vld [vmem:[#allocation4 + $0x430] sm:$0x3f] }
  0xfa   :  { %2869 = vmatprep.subr.bf16.mxu1 %v6902_v27  ;;  %v299_v27 = vunpack.c.h.s8.bf16 %v6003_v32  ;;  %v591_v51 = vunpack.c.h.s8.bf16 %v6006_v19 }
  0xfc   :  { %2825 = vmatpush2.bf16.msra.mxu0 %v6903_v21  ;;  %v6015_v21 = vcombine.low %v303_v44, %v307_v38  ;;  %v6048_v44 = vld [vmem:[#allocation4 + $0x3f8] sm:$0x3f]  ;;  %v6050_v38 = vld [vmem:[#allocation4 + $0x406] sm:$0x3f] }
  0xfd   :  { %2870 = vmatpush2.bf16.msra.mxu1 %v6904_v5  ;;  %2826 = vmatprep.subr.bf16.mxu0 %v6905_v57  ;;  %v4251_v5 = vcombine.low %v326_v31, %v330_v7  ;;  %v6920_v57 = vld [vmem:[#allocation71_spill] sm:$0xff]  ;;  %v302_v31 = vunpack.c.l.s8.bf16 %v5985_v55  ;;  %v6924_v7 = vld [vmem:[#allocation58_spill] sm:$0xff]  ;;  %v575_v55 = vunpack.c.h.s8.bf16 %v6048_v44 }
  0xfe   :  { %2871 = vmatprep.subr.bf16.mxu1 %v6906_v40  ;;  %6919 = vst [vmem:[#allocation62_spill] sm:$0xff] %v6015_v21  ;;  %v6022_v40 = vld [vmem:[#allocation4 + $0x414] sm:$0x3f] }
  0xff   :  { %v583_v17 = vunpack.c.h.s8.bf16 %v6022_v40 }
 0x100   :  { %2827 = vmatpush2.bf16.msra.mxu0 %v5784_v12  ;;  %v6910_v12 = vld [vmem:[#allocation51_spill] sm:$0xff] }
 0x101   :  { %2872 = vmatpush2.bf16.msra.mxu1 %v6907_v9  ;;  %2828 = vmatprep.subr.bf16.mxu0 %v5802_v42  ;;  %v4259_v42 = vcombine.high %v334_v60, %v338_v4  ;;  %v669_v9 = vunpack.c.h.s8.bf16 %v4905_v43  ;;  %v6027_v4 = vld [vmem:[#allocation4 + $0x16] sm:$0x3f]  ;;  %v4230_v43 = vcombine.low %v302_v31, %v306_v25 }
 0x102   :  { %2873 = vmatprep.subr.bf16.mxu1 %v6908_v33  ;;  %v6029_v33 = vld [vmem:[#allocation4 + $0x28c] sm:$0x3f] }
 0x103   :  { %v6686_v54 = vunpack.c.l.s8.bf16 %v6029_v33 }
 0x104   :  { %2829 = vmatpush2.bf16.msra.mxu0 %v6910_v12  ;;  %v287_v12 = vunpack.c.h.s8.bf16 %v6020_v3 }
 0x105   :  { %2874 = vmatpush2.bf16.msra.mxu1 %v6911_v14  ;;  %2957 = vmatprep.subr.bf16.mxu0 %v4266_v15  ;;  %v4906_v15 = vld [vmem:[#allocation4 + $0x54e] sm:$0xff]  ;;  %v6040_v14 = vcombine.low %v295_v48, %v299_v27  ;;  %v298_v27 = vunpack.c.l.s8.bf16 %v6003_v32 }
 0x106   :  { %2875 = vmatprep.subr.bf16.mxu1 %v6912_v23  ;;  %v673_v60 = vunpack.c.h.s8.bf16 %v4906_v15  ;;  %v4238_v23 = vcombine.high %v310_v53, %v314_v26  ;;  %v6062_v48 = vld [vmem:[#allocation4 + $0x270] sm:$0x3f] }
 0x107   :  { %2831 = vmatmul.mubr.bf16.vlgmr.msra.gmra.mxu0 %v6914_v11  ;;  %6923 = vst [vmem:[#allocation64_spill] sm:$0xff] %v6040_v14  ;;  %v6687_v11 = vunpack.c.l.s8.bf16 %v6031_v18  ;;  %v6086_v15 = vld [vmem:[#allocation4 + $0x1ac] sm:$0x3f] }
 0x108   :  { %2958 = vmatpush1.bf16.msra.mxu0 %v4265_v41  ;;  %2840 = vmatprep.mubr.bf16.mxu0 %v6915_v28  ;;  %v6038_v41 = vcombine.low %v591_v51, %v595_v61  ;;  %v579_v28 = vunpack.c.h.s8.bf16 %v6050_v38  ;;  %v6070_v61 = vld [vmem:[#allocation4 + $0x27e] sm:$0x3f] }
 0x109   :  { %2876 = vmatpush2.bf16.msra.mxu1 %v6916_v8  ;;  %2959 = vmatprep.subr.bf16.mxu0 %v4259_v42  ;;  %v4244_v42 = vcombine.low %v318_v50, %v322_v52  ;;  %v471_v8 = vunpack.c.h.s8.bf16 %v6029_v33  ;;  %v4550_v50 = vcombine.low %v669_v9, %v673_v60  ;;  %v4237_v52 = vcombine.low %v310_v53, %v314_v26 }
 0x10a   :  { %2877 = vmatprep.subr.bf16.mxu1 %v6917_v58  ;;  %6922 = vst [vmem:[#allocation63_spill] sm:$0xff] %v6038_v41  ;;  %v294_v58 = vunpack.c.l.s8.bf16 %v6000_v22  ;;  %v4378_v51 = vcombine.high %v6686_v54, %v6687_v11  ;;  %v6075_v22 = vld [vmem:[#allocation4 + $0x3ea] sm:$0x3f]  ;;  %v6080_v53 = vcombine.low %v575_v55, %v579_v28  ;;  %v6110_v28 = vld [vmem:[#allocation4 + $0x238] sm:$0x3f]  ;;  %v466_v54 = vunpack.c.l.s8.bf16 %v6070_v61 }
 0x10b   :  { %v571_v32 = vunpack.c.h.s8.bf16 %v6075_v22  ;;  %v6082_v26 = vcombine.low %v471_v8, %v475_v36  ;;  %v6112_v8 = vld [vmem:[#allocation4 + $0x246] sm:$0x3f]  ;;  %v447_v36 = vunpack.c.h.s8.bf16 %v6110_v28  ;;  %v6133_v11 = vld [vmem:[#allocation4 + $0x21c] sm:$0x3f] }
 0x10c   :  { %2960 = vmatpush1.bf16.msra.mxu0 %v4258_v20  ;;  %v4551_v20 = vcombine.high %v669_v9, %v673_v60  ;;  %6927 = vst [vmem:[#allocation67_spill] sm:$0xff] %v6080_v53  ;;  %v286_v9 = vunpack.c.l.s8.bf16 %v6020_v3  ;;  %v6088_v60 = vld [vmem:[#allocation4 + $0x254] sm:$0x3f]  ;;  %v6099_v3 = vld [vmem:[#allocation4 + $0x3ce] sm:$0x3f] }
 0x10d   :  { %2878 = vmatpush2.bf16.msra.mxu1 %v6920_v57  ;;  %2961 = vmatprep.subr.bf16.mxu0 %v4252_v34  ;;  %v6073_v57 = vld [vmem:[#allocation4 + $0x3dc] sm:$0x3f]  ;;  %6928 = vst [vmem:[#allocation68_spill] sm:$0xff] %v6082_v26  ;;  %v6933_v26 = vmov 0  }
 0x10e   :  { %2879 = vmatprep.subr.bf16.mxu1 %v5842_v63  ;;  %v291_v63 = vunpack.c.h.s8.bf16 %v6027_v4 }
 0x10f   :  { %2841 = vmatmul.mubr.bf16.gmra.mxu0 %v6921_v45  ;;  %v290_v45 = vunpack.c.l.s8.bf16 %v6027_v4 }
 0x110   :  { %2962 = vmatpush1.bf16.msra.mxu0 %v4251_v5  ;;  %2989 = vmatprep.mubr.bf16.mxu0 %v6924_v7  ;;  %v6059_v34 = vcombine.low %v287_v12, %v291_v63  ;;  %v463_v5 = vunpack.c.h.s8.bf16 %v6062_v48  ;;  %v6093_v12 = vld [vmem:[#allocation4 + $0x1ba] sm:$0x3f]  ;;  %v455_v63 = vunpack.c.h.s8.bf16 %v6088_v60  ;;  %v563_v7 = vunpack.c.h.s8.bf16 %v6099_v3 }
 0x111   :  { %2880 = vmatpush2.bf16.msra.mxu1 %v5844_v35  ;;  %2963 = vmatprep.subr.bf16.mxu0 %v4245_v16  ;;  %v6055_v35 = vcombine.low %v583_v17, %v587_v13  ;;  %v567_v16 = vunpack.c.h.s8.bf16 %v6073_v57  ;;  %v6090_v17 = vld [vmem:[#allocation4 + $0x262] sm:$0x3f]  ;;  %v4224_v13 = vcombine.high %v294_v58, %v298_v27  ;;  %v410_v55 = vunpack.c.l.s8.bf16 %v6093_v12 }
 0x112   :  { %2881 = vmatprep.subr.bf16.mxu1 %v5849_v10  ;;  %6926 = vst [vmem:[#allocation66_spill] sm:$0xff] %v6059_v34  ;;  %v4231_v10 = vcombine.high %v302_v31, %v306_v25  ;;  %v4223_v25 = vcombine.low %v294_v58, %v298_v27  ;;  %v6122_v58 = vld [vmem:[#allocation4 + $0x19e] sm:$0x3f]  ;;  %v458_v41 = vunpack.c.l.s8.bf16 %v6090_v17 }
 0x113   :  { %6925 = vst [vmem:[#allocation65_spill] sm:$0xff] %v6055_v35  ;;  %v454_v35 = vunpack.c.l.s8.bf16 %v6088_v60 }
 0x114   :  { %2964 = vmatpush1.bf16.msra.mxu0 %v4244_v42  ;;  %v6097_v42 = vld [vmem:[#allocation4 + $0x3c0] sm:$0x3f] }
 0x115   :  { %2882 = vmatpush2.bf16.msra.mxu1 %v5851_v47  ;;  %2965 = vmatprep.subr.bf16.mxu0 %v4238_v23  ;;  %v467_v47 = vunpack.c.h.s8.bf16 %v6070_v61  ;;  %v559_v31 = vunpack.c.h.s8.bf16 %v6097_v42  ;;  %v6104_v23 = vcombine.low %v567_v16, %v571_v32  ;;  %v4216_v32 = vcombine.low %v286_v9, %v290_v45  ;;  %v6146_v61 = vld [vmem:[#allocation4 + $0x174] sm:$0x3f] }
 0x116   :  { %2918 = vmatprep.subr.bf16.mxu1 %v4551_v20  ;;  %v406_v20 = vunpack.c.l.s8.bf16 %v6086_v15  ;;  %v390_v1 = vunpack.c.l.s8.bf16 %v6146_v61 }
 0x117   :  { %6929 = vst [vmem:[#allocation69_spill] sm:$0xff] %v6104_v23  ;;  %v6106_v4 = vcombine.low %v463_v5, %v467_v47  ;;  %v6126_v47 = vcombine.low %v559_v31, %v563_v7  ;;  %v6937_v23 = vunpack.c.l.s8.bf16 %v6029_v33  ;;  %v6170_v33 = vld [vmem:[#allocation4 + $0x166] sm:$0x3f] }
 0x118   :  { %2884 = vmatmul.mubr.bf16.vlgmr.msra.gmra.mxu1 %v5871_v30  ;;  %2966 = vmatpush1.bf16.msra.mxu0 %v4237_v52  ;;  %v459_v30 = vunpack.c.h.s8.bf16 %v6090_v17  ;;  %v6116_v52 = vld [vmem:[#allocation4 + $0x3a4] sm:$0x3f]  ;;  %v4321_v53 = vcombine.low %v406_v20, %v410_v55  ;;  %v6940_v17 = vld [vmem:[#allocation25_spill] sm:$0xff] }
 0x119   :  { %2919 = vmatpush1.bf16.msra.mxu1 %v4550_v50  ;;  %2967 = vmatprep.subr.bf16.mxu0 %v4231_v10  ;;  %6930 = vst [vmem:[#allocation39_spill] sm:$0xff] %v6106_v4  ;;  %v451_v50 = vunpack.c.h.s8.bf16 %v6112_v8  ;;  %v6118_v10 = vld [vmem:[#allocation4 + $0x3b2] sm:$0x3f]  ;;  %v551_v27 = vunpack.c.h.s8.bf16 %v6116_v52  ;;  %6931 = vst [vmem:[#allocation20_spill] sm:$0xff] %v6126_v47  ;;  %v6135_v4 = vld [vmem:[#allocation4 + $0x22a] sm:$0x3f]  ;;  %v6936_v47 = vunpack.c.l.s8.bf16 %v6031_v18 }
 0x11a   :  { %2893 = vmatprep.mubr.bf16.mxu1 %v5873_v37  ;;  %3010 = vmatprep.subr.bf16.mxu1 %v4378_v51  ;;  %v4217_v37 = vcombine.high %v286_v9, %v290_v45  ;;  %v6120_v51 = vld [vmem:[#allocation4 + $0x190] sm:$0x3f]  ;;  %v555_v5 = vunpack.c.h.s8.bf16 %v6118_v10  ;;  %v6128_v16 = vcombine.low %v455_v63, %v459_v30  ;;  %v402_v63 = vunpack.c.l.s8.bf16 %v6122_v58  ;;  %v6142_v45 = vld [vmem:[#allocation4 + $0x388] sm:$0x3f]  ;;  %v6148_v30 = vld [vmem:[#allocation4 + $0x182] sm:$0x3f] }
 0x11b   :  { %v398_v31 = vunpack.c.l.s8.bf16 %v6120_v51  ;;  %v443_v9 = vunpack.c.h.s8.bf16 %v6135_v4  ;;  %v543_v7 = vunpack.c.h.s8.bf16 %v6142_v45  ;;  %v4377_v34 = vcombine.low %v6937_v23, %v6936_v47  ;;  %v6168_v18 = vld [vmem:[#allocation4 + $0x158] sm:$0x3f] }
 0x11c   :  { %2968 = vmatpush1.bf16.msra.mxu0 %v4230_v43  ;;  %6932 = vst [vmem:[#allocation13_spill] sm:$0xff] %v6128_v16  ;;  %v4322_v43 = vcombine.high %v406_v20, %v410_v55  ;;  %v6154_v16 = vcombine.low %v447_v36, %v451_v50  ;;  %v6164_v36 = vld [vmem:[#allocation4 + $0x200] sm:$0x3f]  ;;  %v6166_v50 = vld [vmem:[#allocation4 + $0x20e] sm:$0x3f]  ;;  %v446_v47 = vunpack.c.l.s8.bf16 %v6110_v28 }
 0x11d   :  { %2969 = vmatprep.subr.bf16.mxu0 %v4224_v13  ;;  %v462_v13 = vunpack.c.l.s8.bf16 %v6062_v48  ;;  %v6144_v48 = vld [vmem:[#allocation4 + $0x396] sm:$0x3f]  ;;  %v4315_v21 = vcombine.high %v398_v31, %v402_v63  ;;  %v431_v23 = vunpack.c.h.s8.bf16 %v6164_v36  ;;  %v435_v60 = vunpack.c.h.s8.bf16 %v6166_v50  ;;  %v6191_v28 = vld [vmem:[#allocation4 + $0x14a] sm:$0x3f] }
 0x11e   :  { %6935 = vst [vmem:[#allocation43_spill] sm:$0xff] %v6154_v16  ;;  %v430_v6 = vunpack.c.l.s8.bf16 %v6164_v36 }
 0x11f   :  { %v4371_v14 = vcombine.high %v462_v13, %v466_v54 }
 0x120   :  { %2894 = vmatmul.mubr.bf16.gmra.mxu1 %v5884_v59  ;;  %2970 = vmatpush1.bf16.msra.mxu0 %v4223_v25  ;;  %v439_v59 = vunpack.c.h.s8.bf16 %v6133_v11  ;;  %v547_v25 = vunpack.c.h.s8.bf16 %v6144_v48 }
 0x121   :  { %2971 = vmatprep.subr.bf16.mxu0 %v4217_v37  ;;  %2936 = vmatprep.mubr.bf16.mxu1 %v6933_v26  ;;  %v6152_v37 = vcombine.low %v551_v27, %v555_v5  ;;  %v394_v27 = vunpack.c.l.s8.bf16 %v6148_v30  ;;  %v4314_v5 = vcombine.low %v398_v31, %v402_v63  ;;  %v6189_v31 = vld [vmem:[#allocation4 + $0x13c] sm:$0x3f] }
 0x122   :  { %v6174_v20 = vcombine.low %v543_v7, %v547_v25  ;;  %v6176_v55 = vcombine.low %v439_v59, %v443_v9  ;;  %v386_v7 = vunpack.c.l.s8.bf16 %v6170_v33  ;;  %v6184_v25 = vld [vmem:[#allocation4 + $0x1e4] sm:$0x3f]  ;;  %v6186_v59 = vld [vmem:[#allocation4 + $0x1f2] sm:$0x3f]  ;;  %v438_v9 = vunpack.c.l.s8.bf16 %v6133_v11 }
 0x123   :  { %6934 = vst [vmem:[#allocation42_spill] sm:$0xff] %v6152_v37  ;;  %v4308_v16 = vcombine.high %v390_v1, %v394_v27  ;;  %v382_v37 = vunpack.c.l.s8.bf16 %v6168_v18 }
 0x124   :  { %2972 = vmatpush1.bf16.msra.mxu0 %v4216_v32  ;;  %6938 = vst [vmem:[#allocation46_spill] sm:$0xff] %v6174_v20  ;;  %6939 = vst [vmem:[#allocation15_spill] sm:$0xff] %v6176_v55  ;;  %v450_v32 = vunpack.c.l.s8.bf16 %v6112_v8  ;;  %v4363_v8 = vcombine.low %v454_v35, %v458_v41  ;;  %v378_v55 = vunpack.c.l.s8.bf16 %v6191_v28  ;;  %v6200_v20 = vld [vmem:[#allocation4 + $0x1c8] sm:$0x3f] }
 0x125   :  { %2973 = vmatprep.subr.bf16.mxu0 %v4322_v43  ;;  %v4370_v43 = vcombine.low %v462_v13, %v466_v54  ;;  %v423_v54 = vunpack.c.h.s8.bf16 %v6184_v25  ;;  %v4307_v13 = vcombine.low %v390_v1, %v394_v27  ;;  %v6207_v1 = vld [vmem:[#allocation4 + $0x12e] sm:$0x3f]  ;;  %v4300_v27 = vcombine.low %v382_v37, %v386_v7 }
 0x126   :  { %v4357_v63 = vcombine.high %v446_v47, %v450_v32 }
 0x128   :  { %4557 = vmatmul.mubr.msk.bf16.vlgmr.msra.gmra.mxu1 %vm2526_vm0, %v6940_v17  ;;  %2974 = vmatpush2.bf16.msra.mxu0 %v4321_v53  ;;  %v4364_v53 = vcombine.high %v454_v35, %v458_v41  ;;  %v374_v17 = vunpack.c.l.s8.bf16 %v6189_v31  ;;  %v415_v41 = vunpack.c.h.s8.bf16 %v6200_v20  ;;  %v419_v35 = vunpack.c.h.s8.bf16 %v6202_v46 }
 0x129   :  { %3011 = vmatpush1.bf16.msra.mxu1 %v4377_v34  ;;  %2975 = vmatprep.subr.bf16.mxu0 %v4315_v21  ;;  %v427_v21 = vunpack.c.h.s8.bf16 %v6186_v59  ;;  %v6195_v34 = vcombine.low %v431_v23, %v435_v60  ;;  %v442_v23 = vunpack.c.l.s8.bf16 %v6135_v4  ;;  %v6205_v60 = vld [vmem:[#allocation4 + $0x120] sm:$0x3f] }
 0x12a   :  { %3012 = vmatprep.subr.bf16.mxu1 %v4371_v14  ;;  %2946 = vmatprep.mubr.bf16.mxu1 %v6933_v26  ;;  %v4301_v14 = vcombine.high %v382_v37, %v386_v7  ;;  %v366_v4 = vunpack.c.l.s8.bf16 %v6205_v60  ;;  %v6224_v37 = vcombine.low %v415_v41, %v419_v35  ;;  %v6238_v35 = vld [vmem:[#allocation4 + $0x36c] sm:$0x3f] }
 0x12b   :  { %6941 = vst [vmem:[#allocation19_spill] sm:$0xff] %v6195_v34  ;;  %v6211_v11 = vcombine.low %v423_v54, %v427_v21  ;;  %v4350_v34 = vcombine.high %v438_v9, %v442_v23  ;;  %v434_v54 = vunpack.c.l.s8.bf16 %v6166_v50  ;;  %v6219_v21 = vld [vmem:[#allocation4 + $0x104] sm:$0x3f] }
 0x12c   :  { %2976 = vmatpush2.bf16.msra.mxu0 %v4314_v5  ;;  %v4356_v5 = vcombine.low %v446_v47, %v450_v32  ;;  %6944 = vst [vmem:[#allocation50_spill] sm:$0xff] %v6224_v37  ;;  %v4293_v47 = vcombine.low %v374_v17, %v378_v55  ;;  %v4349_v32 = vcombine.low %v438_v9, %v442_v23  ;;  %v6308_v37 = vld [vmem:[#allocation4 + $0x2b6] sm:$0x3f] }
 0x12d   :  { %3013 = vmatpush1.bf16.msra.mxu1 %v4370_v43  ;;  %2977 = vmatprep.subr.bf16.mxu0 %v4308_v16  ;;  %6942 = vst [vmem:[#allocation47_spill] sm:$0xff] %v6211_v11  ;;  %v6943_v16 = vld [vmem:[#allocation17_spill] sm:$0xff]  ;;  %v4294_v43 = vcombine.high %v374_v17, %v378_v55  ;;  %v6221_v11 = vld [vmem:[#allocation4 + $0x112] sm:$0x3f]  ;;  %v4343_v50 = vcombine.high %v430_v6, %v434_v54  ;;  %6950 = vst [vmem:[#allocation24_spill] sm:$0xff] %v6308_v37 }
 0x12e   :  { %3014 = vmatprep.subr.bf16.mxu1 %v4364_v53  ;;  %v370_v53 = vunpack.c.l.s8.bf16 %v6207_v1  ;;  %v362_v36 = vunpack.c.l.s8.bf16 %v6221_v11  ;;  %v4342_v9 = vcombine.low %v430_v6, %v434_v54  ;;  %v6246_v54 = vld [vmem:[#allocation4 + $0x350] sm:$0x3f] }
 0x130   :  { %4558 = vmatmul.mubr.msk.bf16.gmra.mxu1 %vm2526_vm0, %v6943_v16  ;;  %2978 = vmatpush2.bf16.msra.mxu0 %v4307_v13  ;;  %v4287_v7 = vcombine.high %v366_v4, %v370_v53  ;;  %v422_v13 = vunpack.c.l.s8.bf16 %v6184_v25  ;;  %v4286_v55 = vcombine.low %v366_v4, %v370_v53  ;;  %v414_v25 = vunpack.c.l.s8.bf16 %v6200_v20  ;;  %v6240_v16 = vld [vmem:[#allocation4 + $0x37a] sm:$0x3f] }
 0x131   :  { %3015 = vmatpush1.bf16.msra.mxu1 %v4363_v8  ;;  %2979 = vmatprep.subr.bf16.mxu0 %v4301_v14  ;;  %v358_v8 = vunpack.c.l.s8.bf16 %v6219_v21  ;;  %v6230_v14 = vld [vmem:[#allocation4 + $0xe8] sm:$0x3f]  ;;  %v602_v4 = vunpack.c.l.s8.bf16 %v5982_v0  ;;  %v534_v20 = vunpack.c.l.s8.bf16 %v6238_v35  ;;  %v594_v0 = vunpack.c.l.s8.bf16 %v6008_v29 }
 0x132   :  { %3016 = vmatprep.subr.bf16.mxu1 %v4357_v63  ;;  %3042 = vmatprep.mubr.bf16.mxu1 %v5892_v24  ;;  %v426_v63 = vunpack.c.l.s8.bf16 %v6186_v59  ;;  %v6232_v24 = vld [vmem:[#allocation4 + $0xf6] sm:$0x3f]  ;;  %v350_v23 = vunpack.c.l.s8.bf16 %v6230_v14  ;;  %v418_v59 = vunpack.c.l.s8.bf16 %v6202_v46  ;;  %v538_v46 = vunpack.c.l.s8.bf16 %v6240_v16 }
 0x133   :  { %v4280_v17 = vcombine.high %v358_v8, %v362_v36  ;;  %v354_v41 = vunpack.c.l.s8.bf16 %v6232_v24  ;;  %v586_v29 = vunpack.c.l.s8.bf16 %v6024_v49 }
 0x134   :  { %2980 = vmatpush2.bf16.msra.mxu0 %v4300_v27  ;;  %v4279_v27 = vcombine.low %v358_v8, %v362_v36  ;;  %v4335_v6 = vcombine.low %v422_v13, %v426_v63  ;;  %v4329_v53 = vcombine.high %v414_v25, %v418_v59  ;;  %v4434_v36 = vcombine.high %v534_v20, %v538_v46 }
 0x135   :  { %3017 = vmatpush1.bf16.msra.mxu1 %v4356_v5  ;;  %2981 = vmatprep.subr.bf16.mxu0 %v4294_v43  ;;  %v4273_v5 = vcombine.high %v350_v23, %v354_v41  ;;  %v598_v43 = vunpack.c.l.s8.bf16 %v5980_v62  ;;  %v590_v62 = vunpack.c.l.s8.bf16 %v6006_v19  ;;  %v582_v19 = vunpack.c.l.s8.bf16 %v6022_v40 }
 0x136   :  { %3018 = vmatprep.subr.bf16.mxu1 %v4350_v34  ;;  %v4336_v34 = vcombine.high %v422_v13, %v426_v63  ;;  %v6254_v63 = vld [vmem:[#allocation4 + $0x334] sm:$0x3f] }
 0x137   :  { %v4490_v8 = vcombine.high %v598_v43, %v602_v4  ;;  %v4476_v49 = vcombine.high %v582_v19, %v586_v29 }
 0x138   :  { %2982 = vmatpush2.bf16.msra.mxu0 %v4293_v47  ;;  %v6248_v47 = vld [vmem:[#allocation4 + $0x35e] sm:$0x3f] }
 0x139   :  { %3019 = vmatpush1.bf16.msra.mxu1 %v4349_v32  ;;  %2983 = vmatprep.subr.bf16.mxu0 %v4287_v7  ;;  %v4272_v32 = vcombine.low %v350_v23, %v354_v41  ;;  %v4328_v7 = vcombine.low %v414_v25, %v418_v59  ;;  %v530_v13 = vunpack.c.l.s8.bf16 %v6248_v47  ;;  %v4483_v23 = vcombine.high %v590_v62, %v594_v0  ;;  %v6262_v59 = vld [vmem:[#allocation2] ss:$28 sps:$4 sm:$0xff]  }
 0x13a   :  { %3020 = vmatprep.subr.bf16.mxu1 %v4343_v50  ;;  %v526_v50 = vunpack.c.l.s8.bf16 %v6246_v54 }
 0x13c   :  { %2984 = vmatpush2.bf16.msra.mxu0 %v4286_v55  ;;  %v6256_v55 = vld [vmem:[#allocation4 + $0x342] sm:$0x3f]  ;;  %v4427_v41 = vcombine.high %v526_v50, %v530_v13  ;;  %v4426_v40 = vcombine.low %v526_v50, %v530_v13 }
 0x13d   :  { %3021 = vmatpush1.bf16.msra.mxu1 %v4342_v9  ;;  %2985 = vmatprep.subr.bf16.mxu0 %v4280_v17  ;;  %v4489_v9 = vcombine.low %v598_v43, %v602_v4  ;;  %v4433_v17 = vcombine.low %v534_v20, %v538_v46  ;;  %v522_v25 = vunpack.c.l.s8.bf16 %v6256_v55  ;;  %v6269_v43 = vld [vmem:[#allocation2 + $0x3c] ss:$28 sps:$4 sm:$0xff]   ;;  %v574_v4 = vunpack.c.l.s8.bf16 %v6048_v44 }
 0x13e   :  { %3022 = vmatprep.subr.bf16.mxu1 %v4336_v34  ;;  %v518_v34 = vunpack.c.l.s8.bf16 %v6254_v63  ;;  %v566_v44 = vunpack.c.l.s8.bf16 %v6073_v57 }
 0x140   :  { %2986 = vmatpush2.bf16.msra.mxu0 %v4279_v27  ;;  %v6265_v27 = vld [vmem:[#allocation4 + $0x318] sm:$0x3f]  ;;  %v4420_v20 = vcombine.high %v518_v34, %v522_v25 }
 0x141   :  { %3023 = vmatpush1.bf16.msra.mxu1 %v4335_v6  ;;  %2987 = vmatprep.subr.bf16.mxu0 %v4273_v5  ;;  %v6267_v6 = vld [vmem:[#allocation4 + $0x326] sm:$0x3f]  ;;  %v4482_v5 = vcombine.low %v590_v62, %v594_v0  ;;  %v510_v46 = vunpack.c.l.s8.bf16 %v6265_v27  ;;  %v4475_v62 = vcombine.low %v582_v19, %v586_v29  ;;  %v4419_v0 = vcombine.low %v518_v34, %v522_v25 }
 0x142   :  { %3024 = vmatprep.subr.bf16.mxu1 %v4329_v53  ;;  %v578_v53 = vunpack.c.l.s8.bf16 %v6050_v38  ;;  %v570_v38 = vunpack.c.l.s8.bf16 %v6075_v22  ;;  %v6291_v29 = vld [vmem:[#allocation2 + $0x14] ss:$28 sps:$4 sm:$0xff]   ;;  %v558_v34 = vunpack.c.l.s8.bf16 %v6097_v42  ;;  %v562_v25 = vunpack.c.l.s8.bf16 %v6099_v3 }
 0x143   :  { %v550_v42 = vunpack.c.l.s8.bf16 %v6116_v52  ;;  %v554_v3 = vunpack.c.l.s8.bf16 %v6118_v10  ;;  %v542_v52 = vunpack.c.l.s8.bf16 %v6142_v45  ;;  %v546_v10 = vunpack.c.l.s8.bf16 %v6144_v48 }
 0x144   :  { %2988 = vmatpush2.bf16.msra.mxu0 %v4272_v32  ;;  %v514_v32 = vunpack.c.l.s8.bf16 %v6267_v6  ;;  %v4468_v19 = vcombine.low %v574_v4, %v578_v53  ;;  %v4462_v22 = vcombine.high %v566_v44, %v570_v38 }
 0x145   :  { %3025 = vmatpush1.bf16.msra.mxu1 %v4328_v7  ;;  %3063 = vmatprep.subr.bf16.mxu0 %v4490_v8  ;;  %v6276_v7 = vld [vmem:[#allocation4 + $0x2fc] sm:$0x3f]  ;;  %v6278_v8 = vld [vmem:[#allocation4 + $0x30a] sm:$0x3f]  ;;  %v4441_v48 = vcombine.high %v542_v52, %v546_v10 }
 0x146   :  { %3026 = vmatprep.subr.bf16.mxu1 %v4434_v36  ;;  %v4469_v36 = vcombine.high %v574_v4, %v578_v53  ;;  %v4413_v50 = vcombine.high %v510_v46, %v514_v32  ;;  %v502_v13 = vunpack.c.l.s8.bf16 %v6276_v7  ;;  %v4412_v57 = vcombine.low %v510_v46, %v514_v32  ;;  %v6300_v4 = vld [vmem:[#allocation4 + $0x2d2] sm:$0x3f] }
 0x147   :  { %2990 = vmatmul.mubr.bf16.vlgmr.msra.gmra.mxu0 %v6262_v59  ;;  %6948 = vst [vmem:[#allocation23_spill] sm:$0xff] %v6300_v4  ;;  %v4461_v53 = vcombine.low %v566_v44, %v570_v38  ;;  %v4455_v32 = vcombine.high %v558_v34, %v562_v25  ;;  %v4454_v44 = vcombine.low %v558_v34, %v562_v25  ;;  %v6320_v34 = vld [vmem:[#allocation4 + $0x556] sm:$0x3f] }
 0x148   :  { %3064 = vmatpush1.bf16.msra.mxu0 %v4489_v9  ;;  %2999 = vmatprep.mubr.bf16.mxu0 %v6269_v43  ;;  %v506_v9 = vunpack.c.l.s8.bf16 %v6278_v8  ;;  %6952 = vst [vmem:[#allocation27_spill] sm:$0xff] %v6320_v34  ;;  %v4447_v25 = vcombine.low %v550_v42, %v554_v3 }
 0x149   :  { %3027 = vmatpush2.bf16.msra.mxu1 %v4433_v17  ;;  %3065 = vmatprep.subr.bf16.mxu0 %v4483_v23  ;;  %v6284_v17 = vld [vmem:[#allocation4 + $0x2e0] sm:$0x3f]  ;;  %v6286_v23 = vld [vmem:[#allocation4 + $0x2ee] sm:$0x3f] }
 0x14a   :  { %3028 = vmatprep.subr.bf16.mxu1 %v4427_v41  ;;  %6945 = vst [vmem:[#allocation22_spill] sm:$0xff] %v6284_v17  ;;  %6946 = vst [vmem:[#allocation21_spill] sm:$0xff] %v6286_v23  ;;  %v6288_v41 = vld [vmem:[#allocation2 + $0x38] ss:$28 sps:$4 sm:$0xff]   ;;  %v4405_v46 = vcombine.low %v502_v13, %v506_v9 }
 0x14c   :  { %3066 = vmatpush1.bf16.msra.mxu0 %v4482_v5  ;;  %v4406_v5 = vcombine.high %v502_v13, %v506_v9  ;;  %v4448_v13 = vcombine.high %v550_v42, %v554_v3  ;;  %v4440_v42 = vcombine.low %v542_v52, %v546_v10 }
 0x14d   :  { %3029 = vmatpush2.bf16.msra.mxu1 %v4426_v40  ;;  %3067 = vmatprep.subr.bf16.mxu0 %v4476_v49  ;;  %v494_v40 = vunpack.c.l.s8.bf16 %v6284_v17  ;;  %v498_v49 = vunpack.c.l.s8.bf16 %v6286_v23  ;;  %v6388_v23 = vld [vmem:[#allocation4 + $0x468] sm:$0x3f]  ;;  %v6390_v17 = vld [vmem:[#allocation4 + $0x476] sm:$0x3f] }
 0x14e   :  { %3030 = vmatprep.subr.bf16.mxu1 %v4420_v20  ;;  %v6298_v20 = vld [vmem:[#allocation4 + $0x2c4] sm:$0x3f] }
 0x14f   :  { %3000 = vmatmul.mubr.bf16.gmra.mxu0 %v6288_v41  ;;  %6947 = vst [vmem:[#allocation26_spill] sm:$0xff] %v6298_v20  ;;  %v4398_v38 = vcombine.low %v494_v40, %v498_v49 }
 0x150   :  { %3068 = vmatpush1.bf16.msra.mxu0 %v4475_v62  ;;  %3095 = vmatprep.mubr.bf16.mxu0 %v6291_v29  ;;  %v4399_v62 = vcombine.high %v494_v40, %v498_v49 }
 0x151   :  { %3031 = vmatpush2.bf16.msra.mxu1 %v4419_v0  ;;  %3069 = vmatprep.subr.bf16.mxu0 %v4469_v36  ;;  %v486_v0 = vunpack.c.l.s8.bf16 %v6298_v20  ;;  %v490_v36 = vunpack.c.l.s8.bf16 %v6300_v4  ;;  %v6344_v4 = vld [vmem:[#allocation2 + $0x8] ss:$28 sps:$4 sm:$0xff]  }
 0x152   :  { %3032 = vmatprep.subr.bf16.mxu1 %v4413_v50  ;;  %v6306_v50 = vld [vmem:[#allocation4 + $0x2a8] sm:$0x3f]  ;;  %6953 = vst [vmem:[#allocation30_spill] sm:$0xff] %v6344_v4 }
 0x153   :  { %6949 = vst [vmem:[#allocation53_spill] sm:$0xff] %v6306_v50  ;;  %v4392_v9 = vcombine.high %v486_v0, %v490_v36  ;;  %v4391_v45 = vcombine.low %v486_v0, %v490_v36 }
 0x154   :  { %3070 = vmatpush1.bf16.msra.mxu0 %v4468_v19  ;;  %v478_v19 = vunpack.c.l.s8.bf16 %v6306_v50  ;;  %v6328_v50 = vld [vmem:[#allocation4 + $0x51e] sm:$0x3f] }
 0x155   :  { %3033 = vmatpush2.bf16.msra.mxu1 %v4412_v57  ;;  %3071 = vmatprep.subr.bf16.mxu0 %v4462_v22  ;;  %v482_v57 = vunpack.c.l.s8.bf16 %v6308_v37  ;;  %v6314_v22 = vld [vmem:[#allocation4 + $0x52c] sm:$0x3f] }
 0x156   :  { %3034 = vmatprep.subr.bf16.mxu1 %v4406_v5  ;;  %v6316_v5 = vld [vmem:[#allocation4 + $0x53a] sm:$0x3f]  ;;  %v662_v40 = vunpack.c.l.s8.bf16 %v6314_v22  ;;  %v6326_v37 = vld [vmem:[#allocation4 + $0x510] sm:$0x3f] }
 0x157   :  { %v666_v49 = vunpack.c.l.s8.bf16 %v6316_v5  ;;  %v4384_v3 = vcombine.low %v478_v19, %v482_v57  ;;  %v654_v36 = vunpack.c.l.s8.bf16 %v6326_v37 }
 0x158   :  { %3072 = vmatpush1.bf16.msra.mxu0 %v4461_v53  ;;  %v6318_v53 = vld [vmem:[#allocation4 + $0x548] sm:$0x3f] }
 0x159   :  { %3035 = vmatpush2.bf16.msra.mxu1 %v4405_v46  ;;  %3073 = vmatprep.subr.bf16.mxu0 %v4455_v32  ;;  %6951 = vst [vmem:[#allocation29_spill] sm:$0xff] %v6318_v53  ;;  %v4385_v46 = vcombine.high %v478_v19, %v482_v57  ;;  %v670_v32 = vunpack.c.l.s8.bf16 %v6318_v53  ;;  %v4546_v0 = vcombine.high %v662_v40, %v666_v49  ;;  %v411_v53 = vunpack.c.h.s8.bf16 %v6093_v12 }
 0x15a   :  { %3036 = vmatprep.subr.bf16.mxu1 %v4399_v62  ;;  %v674_v62 = vunpack.c.l.s8.bf16 %v6320_v34  ;;  %v407_v34 = vunpack.c.h.s8.bf16 %v6086_v15  ;;  %v4545_v52 = vcombine.low %v662_v40, %v666_v49 }
 0x15c   :  { %3074 = vmatpush1.bf16.msra.mxu0 %v4454_v44  ;;  %v658_v44 = vunpack.c.l.s8.bf16 %v6328_v50  ;;  %v4552_v10 = vcombine.low %v670_v32, %v674_v62 }
 0x15d   :  { %3037 = vmatpush2.bf16.msra.mxu1 %v4398_v38  ;;  %3075 = vmatprep.subr.bf16.mxu0 %v4448_v13  ;;  %v4553_v38 = vcombine.high %v670_v32, %v674_v62  ;;  %v6332_v13 = vld [vmem:[#allocation4 + $0x4f4] sm:$0x3f]  ;;  %v6352_v62 = vld [vmem:[#allocation4 + $0x4bc] sm:$0x3f] }
 0x15e   :  { %3038 = vmatprep.subr.bf16.mxu1 %v4392_v9  ;;  %v6334_v9 = vld [vmem:[#allocation4 + $0x502] sm:$0x3f]  ;;  %v4539_v19 = vcombine.high %v654_v36, %v658_v44  ;;  %v646_v57 = vunpack.c.l.s8.bf16 %v6332_v13  ;;  %v4538_v15 = vcombine.low %v654_v36, %v658_v44  ;;  %v6349_v32 = vld [vmem:[#allocation2 + $0x44] ss:$28 sps:$4 sm:$0xff]  }
 0x15f   :  { %6954 = vst [vmem:[#allocation28_spill] sm:$0xff] %v6349_v32  ;;  %v6360_v44 = vld [vmem:[#allocation4 + $0x4a0] sm:$0x3f] }
 0x160   :  { %3076 = vmatpush1.bf16.msra.mxu0 %v4447_v25  ;;  %v650_v25 = vunpack.c.l.s8.bf16 %v6334_v9 }
 0x161   :  { %3039 = vmatpush2.bf16.msra.mxu1 %v4391_v45  ;;  %3077 = vmatprep.subr.bf16.mxu0 %v4441_v48  ;;  %v6340_v45 = vld [vmem:[#allocation4 + $0x4d8] sm:$0x3f]  ;;  %v6342_v48 = vld [vmem:[#allocation4 + $0x4e6] sm:$0x3f] }
 0x162   :  { %3040 = vmatprep.subr.bf16.mxu1 %v4385_v46  ;;  %v4323_v46 = vcombine.low %v407_v34, %v411_v53  ;;  %v4532_v12 = vcombine.high %v646_v57, %v650_v25  ;;  %v638_v40 = vunpack.c.l.s8.bf16 %v6340_v45  ;;  %v642_v49 = vunpack.c.l.s8.bf16 %v6342_v48  ;;  %v6354_v53 = vld [vmem:[#allocation4 + $0x4ca] sm:$0x3f] }
 0x163   :  { %v4531_v34 = vcombine.low %v646_v57, %v650_v25  ;;  %v634_v36 = vunpack.c.l.s8.bf16 %v6354_v53 }
 0x164   :  { %3078 = vmatpush1.bf16.msra.mxu0 %v4440_v42  ;;  %v6356_v42 = vpop.f32.mrf.mxu0 }
 0x165   :  { %3041 = vmatpush2.bf16.msra.mxu1 %v4384_v3  ;;  %3079 = vmatprep.subr.bf16.mxu0 %v4546_v0  ;;  %6955 = vst [vmem:[#allocation33_spill] sm:$0xff] %v6356_v42  ;;  %v4525_v3 = vcombine.high %v638_v40, %v642_v49  ;;  %v630_v0 = vunpack.c.l.s8.bf16 %v6352_v62 }
 0x166   :  { %3130 = vmatprep.subr.bf16.mxu1 %v4553_v38  ;;  %v6362_v38 = vld [vmem:[#allocation4 + $0x4ae] sm:$0x3f]  ;;  %v6369_v57 = vpop.f32.mrf.mxu0 }
 0x167   :  { %v4518_v25 = vcombine.high %v630_v0, %v634_v36 }
 0x168   :  { %3043 = vmatmul.mubr.bf16.vlgmr.msra.gmra.mxu1 %v6344_v4  ;;  %3080 = vmatpush2.bf16.msra.mxu0 %v4545_v52  ;;  %v6364_v52 = vld [vmem:[#allocation2 + $0x40] ss:$28 sps:$4 sm:$0xff]   ;;  %v6376_v4 = vld [vmem:[#allocation4 + $0x484] sm:$0x3f] }
 0x169   :  { %3131 = vmatpush1.bf16.msra.mxu1 %v4552_v10  ;;  %3081 = vmatprep.subr.bf16.mxu0 %v4539_v19  ;;  %6956 = vst [vmem:[#allocation31_spill] sm:$0xff] %v6364_v52  ;;  %v4524_v10 = vcombine.low %v638_v40, %v642_v49  ;;  %v6367_v19 = vpop.f32.mrf.mxu1  ;;  %v4517_v40 = vcombine.low %v630_v0, %v634_v36  ;;  %v6392_v0 = vld [vmem:[#allocation2 + $0x18] ss:$28 sps:$4 sm:$0xff]  }
 0x16a   :  { %3052 = vmatprep.mubr.bf16.mxu1 %v6349_v32  ;;  %4616 = vmatprep.subr.bf16.mxu1 %v4323_v46  ;;  %6957 = vst [vmem:[#allocation34_spill] sm:$0xff] %v6367_v19  ;;  %v622_v46 = vunpack.c.l.s8.bf16 %v6360_v44  ;;  %v403_v32 = vunpack.c.h.s8.bf16 %v6122_v58  ;;  %v614_v19 = vunpack.c.l.s8.bf16 %v6376_v4  ;;  %v395_v58 = vunpack.c.h.s8.bf16 %v6148_v30  ;;  %6959 = vst [vmem:[#allocation37_spill] sm:$0xff] %v6392_v0 }
 0x16b   :  { %v6380_v49 = vpop.f32.mrf.mxu1  ;;  %v606_v30 = vunpack.c.l.s8.bf16 %v6388_v23 }
 0x16c   :  { %3082 = vmatpush2.bf16.msra.mxu0 %v4538_v15  ;;  %v626_v15 = vunpack.c.l.s8.bf16 %v6362_v38 }
 0x16d   :  { %3083 = vmatprep.subr.bf16.mxu0 %v4532_v12  ;;  %v399_v12 = vunpack.c.h.s8.bf16 %v6120_v51  ;;  %v391_v51 = vunpack.c.h.s8.bf16 %v6146_v61 }
 0x16e   :  { %v4510_v36 = vcombine.low %v622_v46, %v626_v15 }
 0x16f   :  { %v4316_v20 = vcombine.low %v399_v12, %v403_v32  ;;  %v610_v32 = vunpack.c.l.s8.bf16 %v6390_v17  ;;  %v4309_v12 = vcombine.low %v391_v51, %v395_v58  ;;  %v371_v58 = vunpack.c.h.s8.bf16 %v6207_v1 }
 0x170   :  { %3053 = vmatmul.mubr.bf16.gmra.mxu1 %v6364_v52  ;;  %3084 = vmatpush2.bf16.msra.mxu0 %v4531_v34  ;;  %v6378_v34 = vld [vmem:[#allocation4 + $0x492] sm:$0x3f]  ;;  %v4511_v52 = vcombine.high %v622_v46, %v626_v15  ;;  %v363_v1 = vunpack.c.h.s8.bf16 %v6221_v11  ;;  %v639_v11 = vunpack.c.h.s8.bf16 %v6340_v45  ;;  %v631_v45 = vunpack.c.h.s8.bf16 %v6352_v62 }
 0x171   :  { %3085 = vmatprep.subr.bf16.mxu0 %v4525_v3  ;;  %3148 = vmatprep.mubr.bf16.mxu1 %v6933_v26  ;;  %v6382_v3 = vpop.f32.mrf.mxu0  ;;  %v618_v42 = vunpack.c.l.s8.bf16 %v6378_v34  ;;  %v6966_v62 = vld [vmem:[#allocation64_spill] sm:$0xff] }
 0x172   :  { %6958 = vst [vmem:[#allocation32_spill] sm:$0xff] %v6382_v3  ;;  %v383_v3 = vunpack.c.h.s8.bf16 %v6168_v18 }
 0x173   :  { %v4504_v61 = vcombine.high %v614_v19, %v618_v42  ;;  %v4503_v46 = vcombine.low %v614_v19, %v618_v42  ;;  %v4496_v42 = vcombine.low %v606_v30, %v610_v32  ;;  %v6415_v19 = vld [vmem:[#allocation2 + $0x50] ss:$28 sps:$4 sm:$0xff]  }
 0x174   :  { %3086 = vmatpush2.bf16.msra.mxu0 %v4524_v10  ;;  %v6396_v10 = vpop.f32.mrf.mxu1 }
 0x175   :  { %3087 = vmatprep.subr.bf16.mxu0 %v4518_v25  ;;  %v6398_v25 = vpop.f32.mrf.mxu0 }
 0x176   :  { %v6406_v15 = vpop.f32.mrf.mxu1 }
 0x178   :  { %4559 = vmatmul.mubr.msk.bf16.vlgmr.msra.gmra.mxu1 %vm2526_vm0, %v6392_v0  ;;  %3088 = vmatpush2.bf16.msra.mxu0 %v4517_v40  ;;  %v387_v0 = vunpack.c.h.s8.bf16 %v6170_v33  ;;  %v6408_v40 = vpop.f32.mrf.mxu0  ;;  %v375_v33 = vunpack.c.h.s8.bf16 %v6189_v31  ;;  %v659_v31 = vunpack.c.h.s8.bf16 %v6328_v50  ;;  %v651_v50 = vunpack.c.h.s8.bf16 %v6334_v9  ;;  %v6962_v9 = vld [vmem:[#allocation60_spill] sm:$0xff] }
 0x179   :  { %4617 = vmatpush3.bf16.msra.mxu1 %v5938_v56  ;;  %3089 = vmatprep.subr.bf16.mxu0 %v4511_v52  ;;  %v4497_v56 = vcombine.high %v606_v30, %v610_v32  ;;  %v663_v52 = vunpack.c.h.s8.bf16 %v6314_v22 }
 0x17a   :  { %4618 = vmatprep.subr.bf16.mxu1 %v4316_v20  ;;  %3158 = vmatprep.mubr.bf16.mxu1 %v6933_v26  ;;  %v667_v20 = vunpack.c.h.s8.bf16 %v6316_v5  ;;  %v4302_v18 = vcombine.low %v383_v3, %v387_v0  ;;  %v379_v26 = vunpack.c.h.s8.bf16 %v6191_v28  ;;  %v6421_v51 = vpop.f32.mrf.mxu0  ;;  %v655_v5 = vunpack.c.h.s8.bf16 %v6326_v37  ;;  %v4916_v0 = vld [vmem:[#allocation2 + $0x4] ss:$28 sps:$4 sm:$0xff]  }
 0x17b   :  { %v367_v3 = vunpack.c.h.s8.bf16 %v6205_v60  ;;  %v647_v37 = vunpack.c.h.s8.bf16 %v6332_v13  ;;  %v359_v60 = vunpack.c.h.s8.bf16 %v6219_v21 }
 0x17c   :  { %3090 = vmatpush2.bf16.msra.mxu0 %v4510_v36  ;;  %v4547_v22 = vcombine.low %v663_v52, %v667_v20  ;;  %v4295_v28 = vcombine.low %v375_v33, %v379_v26  ;;  %v4540_v30 = vcombine.low %v655_v5, %v659_v31  ;;  %v643_v20 = vunpack.c.h.s8.bf16 %v6342_v48  ;;  %v6964_v31 = vld [vmem:[#allocation62_spill] sm:$0xff] }
 0x17d   :  { %4619 = vmatpush3.bf16.msra.mxu1 %v5950_v39  ;;  %3091 = vmatprep.subr.bf16.mxu0 %v4504_v61  ;;  %v6419_v39 = vpop.f32.mrf.mxu1  ;;  %v6430_v61 = vpop.f32.mrf.mxu0  ;;  %v4288_v32 = vcombine.low %v367_v3, %v371_v58  ;;  %v4533_v21 = vcombine.low %v647_v37, %v651_v50  ;;  %v351_v33 = vunpack.c.h.s8.bf16 %v6230_v14  ;;  %v355_v26 = vunpack.c.h.s8.bf16 %v6232_v24 }
 0x17e   :  { %4620 = vmatprep.subr.bf16.mxu1 %v4309_v12  ;;  %v6437_v12 = vld [vmem:[#allocation2 + $0x10] ss:$28 sps:$4 sm:$0xff]   ;;  %v635_v48 = vunpack.c.h.s8.bf16 %v6354_v53  ;;  %v535_v14 = vunpack.c.h.s8.bf16 %v6238_v35  ;;  %v539_v24 = vunpack.c.h.s8.bf16 %v6240_v16  ;;  %v623_v37 = vunpack.c.h.s8.bf16 %v6360_v44 }
 0x17f   :  { %v6428_v36 = vpop.f32.mrf.mxu1  ;;  %v6446_v13 = vpop.f32.mrf.mxu0  ;;  %v4274_v3 = vcombine.low %v351_v33, %v355_v26  ;;  %v627_v35 = vunpack.c.h.s8.bf16 %v6362_v38  ;;  %v527_v50 = vunpack.c.h.s8.bf16 %v6246_v54  ;;  %v523_v38 = vunpack.c.h.s8.bf16 %v6256_v55 }
 0x180   :  { %3092 = vmatpush2.bf16.msra.mxu0 %v4503_v46  ;;  %4560 = vmatmul.mubr.msk.bf16.gmra.mxu1 %vm2526_vm0, %v6415_v19  ;;  %v6961_v46 = vld [vmem:[#allocation61_spill] sm:$0xff]  ;;  %v4519_v53 = vcombine.low %v631_v45, %v635_v48  ;;  %v4435_v16 = vcombine.low %v535_v14, %v539_v24  ;;  %v619_v54 = vunpack.c.h.s8.bf16 %v6378_v34  ;;  %v607_v34 = vunpack.c.h.s8.bf16 %v6388_v23  ;;  %v6972_v23 = vld [vmem:[#allocation39_spill] sm:$0xff] }
 0x181   :  { %4621 = vmatpush3.bf16.msra.mxu1 %v5962_v2  ;;  %3093 = vmatprep.subr.bf16.mxu0 %v4497_v56  ;;  %v6960_v2 = vld [vmem:[#allocation59_spill] sm:$0xff]  ;;  %v6441_v56 = vld [vmem:[#allocation2 + $0x4c] ss:$28 sps:$4 sm:$0xff]   ;;  %v6444_v52 = vpop.f32.mrf.mxu1  ;;  %v4512_v44 = vcombine.low %v623_v37, %v627_v35  ;;  %v6975_v35 = vld [vmem:[#allocation22_spill] sm:$0xff] }
 0x182   :  { %4622 = vmatprep.subr.bf16.mxu1 %v4302_v18  ;;  %3201 = vmatprep.mubr.bf16.mxu1 %v4916_v0  ;;  %v4281_v18 = vcombine.low %v359_v60, %v363_v1  ;;  %v6463_v0 = vld [vmem:[#allocation2 + $0x48] ss:$28 sps:$4 sm:$0xff]   ;;  %v3367_v1 = vlaneseq }
 0x183   :  { %v6456_v5 = vpop.f32.mrf.mxu1 }
 0x184   :  { %3094 = vmatpush2.bf16.msra.mxu0 %v4496_v42  ;;  %v6485_v33 = vshrl.u32 %v3367_v1, 7  ;;  %v6515_v1 = vld [vmem:[#allocation7] sm:$0x7f] }
 0x185   :  { %4623 = vmatpush3.bf16.msra.mxu1 %v6960_v2  ;;  %4672 = vmatprep.subr.bf16.mxu0 %v4547_v22  ;;  %v6963_v22 = vld [vmem:[#allocation63_spill] sm:$0xff]  ;;  %v6965_v2 = vld [vmem:[#allocation65_spill] sm:$0xff] }
 0x186   :  { %4624 = vmatprep.subr.bf16.mxu1 %v4295_v28  ;;  %v4526_v28 = vcombine.low %v639_v11, %v643_v20  ;;  %v615_v11 = vunpack.c.h.s8.bf16 %v6376_v4  ;;  %v3373_v48 = vsub.s32 1, %v6485_v33 }
 0x187   :  { %3096 = vmatmul.mubr.bf16.vlgmr.msra.gmra.mxu0 %v6437_v12  ;;  %v6453_v42 = vpop.f32.mrf.mxu0 }
 0x188   :  { %4673 = vmatpush3.bf16.msra.mxu0 %v6961_v46  ;;  %3105 = vmatprep.mubr.bf16.mxu0 %v6441_v56  ;;  %v519_v46 = vunpack.c.h.s8.bf16 %v6254_v63  ;;  %v6969_v63 = vld [vmem:[#allocation69_spill] sm:$0xff]  ;;  %v4505_v4 = vcombine.low %v615_v11, %v619_v54  ;;  %v6979_v54 = vld [vmem:[#allocation26_spill] sm:$0xff] }
 0x189   :  { %4625 = vmatpush3.bf16.msra.mxu1 %v6962_v9  ;;  %4674 = vmatprep.subr.bf16.mxu0 %v4540_v30  ;;  %v2675_v58 = vpop.f32.mrf.mxu0  ;;  %v6468_v30 = vpop.f32.mrf.mxu1 }
 0x18a   :  { %4626 = vmatprep.subr.bf16.mxu1 %v4288_v32  ;;  %v531_v32 = vunpack.c.h.s8.bf16 %v6248_v47  ;;  %v4421_v55 = vcombine.low %v519_v46, %v523_v38  ;;  %v6977_v46 = vld [vmem:[#allocation46_spill] sm:$0xff]  ;;  %v4839_v38 = vld [vmem:[#allocation9 + $0x70] sm:$0xff]  }
 0x18b   :  { %v6475_v60 = vpop.f32.mrf.mxu0  ;;  %v2728_v9 = vpop.f32.mrf.mxu1 }
 0x18c   :  { %4675 = vmatpush3.bf16.msra.mxu0 %v6963_v22  ;;  %v4428_v47 = vcombine.low %v527_v50, %v531_v32  ;;  %v6970_v22 = vld [vmem:[#allocation68_spill] sm:$0xff] }
 0x18d   :  { %4627 = vmatpush3.bf16.msra.mxu1 %v6964_v31  ;;  %4676 = vmatprep.subr.bf16.mxu0 %v4533_v21  ;;  %v6968_v21 = vld [vmem:[#allocation66_spill] sm:$0xff]  ;;  %v2679_v20 = vpop.f32.mrf.mxu0  ;;  %v6489_v26 = vpop.f32.mrf.mxu1  ;;  %v611_v31 = vunpack.c.h.s8.bf16 %v6390_v17  ;;  %v4920_v32 = vld [vmem:[#allocation2 + $0xc] ss:$28 sps:$4 sm:$0xff]  }
 0x18e   :  { %4628 = vmatprep.subr.bf16.mxu1 %v4281_v18  ;;  %v2627_v18 = vadd.f32 %v6406_v15, %v6398_v25  ;;  %v2623_v25 = vadd.f32 %v6380_v49, %v6369_v57  ;;  %v503_v49 = vunpack.c.h.s8.bf16 %v6276_v7 }
 0x18f   :  { %3106 = vmatmul.mubr.bf16.gmra.mxu0 %v6463_v0  ;;  %v2732_v14 = vpop.f32.mrf.mxu1  ;;  %v4498_v17 = vcombine.low %v607_v34, %v611_v31  ;;  %v6981_v31 = vld [vmem:[#allocation15_spill] sm:$0xff] }
 0x190   :  { %4677 = vmatpush3.bf16.msra.mxu0 %v6965_v2  ;;  %3299 = vmatprep.mubr.bf16.mxu0 %v6291_v29  ;;  %v6967_v29 = vld [vmem:[#allocation67_spill] sm:$0xff]  ;;  %v2680_v15 = vadd.f32 %v2679_v20, %v2627_v18  ;;  %v2676_v45 = vadd.f32 %v2675_v58, %v2623_v25  ;;  %v6973_v2 = vld [vmem:[#allocation42_spill] sm:$0xff]  ;;  %v4841_v25 = vld [vmem:[#allocation9 + $0x68] sm:$0xff]  }
 0x191   :  { %4629 = vmatpush3.bf16.msra.mxu1 %v6966_v62  ;;  %4678 = vmatprep.subr.bf16.mxu0 %v4526_v28  ;;  %v515_v28 = vunpack.c.h.s8.bf16 %v6267_v6  ;;  %v6504_v6 = vld [vmem:[#allocation6] sm:$0x7f]  ;;  %v6980_v20 = vld [vmem:[#allocation23_spill] sm:$0xff]  ;;  %v6531_v34 = vpop.f32.mrf.mxu1 }
 0x192   :  { %4630 = vmatprep.subr.bf16.mxu1 %v4274_v3  ;;  %v6971_v3 = vld [vmem:[#allocation20_spill] sm:$0xff]  ;;  %v2733_v24 = vadd.f32 %v2732_v14, %v2680_v15  ;;  %v6507_v58 = vrot.slane %v6504_v6, %v3373_v48  ;;  %v6974_v62 = vld [vmem:[#allocation13_spill] sm:$0xff]  ;;  %v491_v18 = vunpack.c.h.s8.bf16 %v6980_v20  ;;  %v6991_v20 = vld [vmem:[#allocation50_spill] sm:$0xff] }
 0x193   :  { %v4842_v14 = vld [vmem:[#allocation9 + $0x28] sm:$0xff]  }
 0x194   :  { %4679 = vmatpush3.bf16.msra.mxu0 %v6967_v29  ;;  %v3410_v37 = vmul.f32 %v6507_v58, %v2733_v24  ;;  %v6517_v29 = vpop.f32.mrf.mxu0  ;;  %v4843_v24 = vld [vmem:[#allocation9 + $0x60] sm:$0xff]  }
 0x195   :  { %4631 = vmatpush3.bf16.msra.mxu1 %v6968_v21  ;;  %4680 = vmatprep.subr.bf16.mxu0 %v4519_v53  ;;  %v4837_v53 = vld [vmem:[#allocation9 + $0x78] sm:$0xff]   ;;  %v6522_v21 = vrot.slane %v6515_v1, %v3373_v48 }
 0x196   :  { %4644 = vmatprep.subr.bf16.mxu1 %v4435_v16  ;;  %v6976_v16 = vld [vmem:[#allocation21_spill] sm:$0xff] }
 0x197   :  { %v499_v50 = vunpack.c.h.s8.bf16 %v6976_v16  ;;  %v6988_v16 = vld [vmem:[#allocation33_spill] sm:$0xff] }
 0x198   :  { %3202 = vmatmul.mubr.bf16.vlgmr.msra.gmra.mxu1 %v6262_v59  ;;  %4681 = vmatpush3.bf16.msra.mxu0 %v6969_v63  ;;  %v511_v59 = vunpack.c.h.s8.bf16 %v6265_v27  ;;  %v507_v27 = vunpack.c.h.s8.bf16 %v6278_v8  ;;  %v495_v8 = vunpack.c.h.s8.bf16 %v6975_v35  ;;  %v3475_v63 = vadd.f32 %v6522_v21, %v3410_v37 }
 0x199   :  { %4645 = vmatpush3.bf16.msra.mxu1 %v6970_v22  ;;  %4682 = vmatprep.subr.bf16.mxu0 %v4512_v44  ;;  %v6978_v44 = vld [vmem:[#allocation43_spill] sm:$0xff]  ;;  %v2685_v22 = vpop.f32.mrf.mxu0  ;;  %v2637_v35 = vadd.f32 %v6456_v5, %v6446_v13  ;;  %v3369_v5 = vsub.s32 0, %v6485_v33 }
 0x19a   :  { %4646 = vmatprep.subr.bf16.mxu1 %v4428_v47  ;;  %3209 = vmatprep.mubr.bf16.mxu1 %v6269_v43  ;;  %v4414_v57 = vcombine.low %v511_v59, %v515_v28  ;;  %v2729_v43 = vadd.f32 %v2728_v9, %v2676_v45  ;;  %v4407_v7 = vcombine.low %v503_v49, %v507_v27  ;;  %v4838_v9 = vld [vmem:[#allocation9 + $0x38] sm:$0xff]   ;;  %v487_v47 = vunpack.c.h.s8.bf16 %v6979_v54  ;;  %v6982_v59 = vld [vmem:[#allocation53_spill] sm:$0xff]  ;;  %v6983_v45 = vld [vmem:[#allocation24_spill] sm:$0xff] }
 0x19b   :  { %v4400_v11 = vcombine.low %v495_v8, %v499_v50  ;;  %v479_v28 = vunpack.c.h.s8.bf16 %v6982_v59  ;;  %v483_v48 = vunpack.c.h.s8.bf16 %v6983_v45  ;;  %v6985_v27 = vld [vmem:[#allocation29_spill] sm:$0xff]  ;;  %v4844_v8 = vld [vmem:[#allocation9 + $0x20] sm:$0xff]   ;;  %v6989_v50 = vld [vmem:[#allocation34_spill] sm:$0xff] }
 0x19c   :  { %4683 = vmatpush3.bf16.msra.mxu0 %v6971_v3  ;;  %v4393_v15 = vcombine.low %v487_v47, %v491_v18  ;;  %v3503_v3 = vmax.f32 %v3475_v63, 0.0  ;;  %v4846_v54 = vld [vmem:[#allocation9 + $0x18] sm:$0xff]   ;;  %v4847_v63 = vld [vmem:[#allocation9 + $0x50] sm:$0xff]   ;;  %v6993_v59 = vld [vmem:[#allocation28_spill] sm:$0xff] }
 0x19d   :  { %4647 = vmatpush3.bf16.msra.mxu1 %v6972_v23  ;;  %4684 = vmatprep.subr.bf16.mxu0 %v4505_v4 }
 0x19e   :  { %4648 = vmatprep.subr.bf16.mxu1 %v4421_v55  ;;  %v4840_v55 = vld [vmem:[#allocation9 + $0x30] sm:$0xff]  }
 0x1a0   :  { %4685 = vmatpush3.bf16.msra.mxu0 %v6973_v2  ;;  %3210 = vmatmul.mubr.bf16.gmra.mxu1 %v6288_v41  ;;  %v3403_v41 = vmul.f32 %v6507_v58, %v2729_v43  ;;  %v671_v43 = vunpack.c.h.s8.bf16 %v6985_v27  ;;  %v6986_v2 = vld [vmem:[#allocation27_spill] sm:$0xff] }
 0x1a1   :  { %4649 = vmatpush3.bf16.msra.mxu1 %v6974_v62  ;;  %4686 = vmatprep.subr.bf16.mxu0 %v4498_v17  ;;  %v6984_v17 = vld [vmem:[#allocation19_spill] sm:$0xff]  ;;  %v675_v62 = vunpack.c.h.s8.bf16 %v6986_v2  ;;  %v4869_v2 = vld [vmem:[#allocation9 + $0x178] sm:$0xff]  }
 0x1a2   :  { %4650 = vmatprep.subr.bf16.mxu1 %v4414_v57  ;;  %3250 = vmatprep.mubr.bf16.mxu1 %v4920_v32  ;;  %v3468_v4 = vadd.f32 %v6522_v21, %v3403_v41  ;;  %v4386_v57 = vcombine.low %v479_v28, %v483_v48  ;;  %v2621_v32 = vadd.f32 %v6989_v50, %v6988_v16  ;;  %v4849_v28 = vld [vmem:[#allocation9 + $0x48] sm:$0xff]   ;;  %v4854_v16 = vld [vmem:[#allocation9 + $0xb8] sm:$0xff]  }
 0x1a3   :  { %v4870_v50 = vld [vmem:[#allocation9 + $0x138] sm:$0xff]  }
 0x1a4   :  { %4687 = vmatpush3.bf16.msra.mxu0 %v6977_v46  ;;  %v3496_v23 = vmax.f32 %v3468_v4, 0.0  ;;  %v2674_v13 = vadd.f32 %v6453_v42, %v2621_v32  ;;  %v6992_v4 = vld [vmem:[#allocation30_spill] sm:$0xff]  ;;  %v4855_v32 = vld [vmem:[#allocation9 + $0xf0] sm:$0xff]  }
 0x1a5   :  { %4651 = vmatpush3.bf16.msra.mxu1 %v6978_v44  ;;  %4703 = vmatprep.subr.bf16.mxu0 %v4837_v53  ;;  %v6987_v53 = vld [vmem:[#allocation32_spill] sm:$0xff]  ;;  %v4845_v44 = vld [vmem:[#allocation9 + $0x58] sm:$0xff]  }
 0x1a6   :  { %4652 = vmatprep.subr.bf16.mxu1 %v4407_v7  ;;  %v3524_v49 = vpack.c.bf16 %v3503_v3, %v3496_v23  ;;  %v2625_v37 = vadd.f32 %v6396_v10, %v6987_v53  ;;  %v2633_v10 = vadd.f32 %v6428_v36, %v6421_v51  ;;  %v4853_v51 = vld [vmem:[#allocation9 + $0xf8] sm:$0xff]   ;;  %v2635_v36 = vadd.f32 %v6444_v52, %v6430_v61 }
 0x1a7   :  { %3300 = vmatmul.mubr.bf16.vlgmr.msra.gmra.mxu0 %v6437_v12  ;;  %v2687_v12 = vpop.f32.mrf.mxu0  ;;  %v2727_v42 = vadd.f32 %v6468_v30, %v2674_v13  ;;  %v3435_v30 = vrot.slane %v6515_v1, %v3369_v5  ;;  %v4857_v13 = vld [vmem:[#allocation9 + $0xe8] sm:$0xff]  }
 0x1a8   :  { %4704 = vmatpush3.bf16.msra.mxu0 %v4838_v9  ;;  %3307 = vmatprep.mubr.bf16.mxu0 %v6441_v56  ;;  %v2738_v56 = vpop.f32.mrf.mxu1  ;;  %v2678_v41 = vadd.f32 %v6475_v60, %v2625_v37  ;;  %v6990_v9 = vld [vmem:[#allocation47_spill] sm:$0xff] }
 0x1a9   :  { %4653 = vmatpush3.bf16.msra.mxu1 %v6981_v31  ;;  %4705 = vmatprep.subr.bf16.mxu0 %v4839_v38  ;;  %v2689_v7 = vpop.f32.mrf.mxu0  ;;  %v4554_v38 = vcombine.low %v671_v43, %v675_v62  ;;  %v2631_v31 = vadd.f32 %v6419_v39, %v6408_v40  ;;  %v4850_v40 = vld [vmem:[#allocation9 + $0x8] sm:$0xff]   ;;  %v6995_v43 = vld [vmem:[#allocation37_spill] sm:$0xff] }
 0x1aa   :  { %4654 = vmatprep.subr.bf16.mxu1 %v4400_v11  ;;  %v2740_v46 = vpop.f32.mrf.mxu1  ;;  %v2686_v11 = vadd.f32 %v2685_v22, %v2633_v10  ;;  %v2731_v60 = vadd.f32 %v6489_v26, %v2678_v41  ;;  %v4848_v26 = vld [vmem:[#allocation9 + $0x10] sm:$0xff]  }
 0x1ab   :  { %v2684_v45 = vadd.f32 %v6517_v29, %v2631_v31  ;;  %v4852_v29 = vld [vmem:[#allocation9] sm:$0xff]   ;;  %v4871_v41 = vld [vmem:[#allocation9 + $0x170] sm:$0xff]  }
 0x1ac   :  { %4706 = vmatpush3.bf16.msra.mxu0 %v4840_v55  ;;  %v2742_v47 = vpop.f32.mrf.mxu1  ;;  %v3370_v55 = vrot.slane %v6504_v6, %v3369_v5  ;;  %v2739_v22 = vadd.f32 %v2738_v56, %v2686_v11  ;;  %v4856_v10 = vld [vmem:[#allocation9 + $0xb0] sm:$0xff]   ;;  %v4873_v5 = vld [vmem:[#allocation9 + $0x168] sm:$0xff]  }
 0x1ad   :  { %4655 = vmatpush3.bf16.msra.mxu1 %v6984_v17  ;;  %4707 = vmatprep.subr.bf16.mxu0 %v4841_v25  ;;  %v2737_v17 = vadd.f32 %v6531_v34, %v2684_v45  ;;  %v4865_v45 = vld [vmem:[#allocation9 + $0xc8] sm:$0xff]  }
 0x1ae   :  { %4656 = vmatprep.subr.bf16.mxu1 %v4393_v15  ;;  %v3409_v25 = vmul.f32 %v3370_v55, %v2731_v60  ;;  %v2688_v15 = vadd.f32 %v2687_v12, %v2635_v36  ;;  %v3402_v52 = vmul.f32 %v3370_v55, %v2727_v42  ;;  %v3417_v48 = vmul.f32 %v6507_v58, %v2739_v22  ;;  %v6566_v3 = vpop.f32.mrf.mxu1  ;;  %v4858_v60 = vld [vmem:[#allocation9 + $0xa8] sm:$0xff]   ;;  %v4861_v42 = vld [vmem:[#allocation9 + $0xd8] sm:$0xff]  }
 0x1af   :  { %3308 = vmatmul.mubr.bf16.gmra.mxu0 %v6463_v0  ;;  %v2690_v0 = vadd.f32 %v2689_v7, %v2637_v35  ;;  %v3416_v37 = vmul.f32 %v3370_v55, %v2737_v17  ;;  %v4883_v17 = vld [vmem:[#allocation9 + $0x140] sm:$0xff]  }
 0x1b0   :  { %4708 = vmatpush3.bf16.msra.mxu0 %v4842_v14  ;;  %3983 = vmatprep.mubr.bf16.mxu0 %v3524_v49  ;;  %v3474_v39 = vadd.f32 %v3435_v30, %v3409_v25  ;;  %v2741_v12 = vadd.f32 %v2740_v46, %v2688_v15  ;;  %v4851_v14 = vld [vmem:[#allocation9 + $0x40] sm:$0xff]   ;;  %v3467_v56 = vadd.f32 %v3435_v30, %v3402_v52  ;;  %v4863_v25 = vld [vmem:[#allocation9 + $0xd0] sm:$0xff]  }
 0x1b1   :  { %4657 = vmatpush3.bf16.msra.mxu1 %v6990_v9  ;;  %4709 = vmatprep.subr.bf16.mxu0 %v4843_v24  ;;  %v2743_v18 = vadd.f32 %v2742_v47, %v2690_v0  ;;  %v6570_v24 = vpop.f32.mrf.mxu1  ;;  %v3481_v46 = vadd.f32 %v3435_v30, %v3416_v37  ;;  %v4872_v0 = vld [vmem:[#allocation9 + $0x130] sm:$0xff]   ;;  %v4874_v47 = vld [vmem:[#allocation9 + $0x128] sm:$0xff]  }
 0x1b2   :  { %4658 = vmatprep.subr.bf16.mxu1 %v4386_v57  ;;  %v6994_v57 = vld [vmem:[#allocation31_spill] sm:$0xff]  ;;  %v3502_v49 = vmax.f32 %v3474_v39, 0.0  ;;  %v3423_v27 = vmul.f32 %v3370_v55, %v2741_v12  ;;  %v3495_v53 = vmax.f32 %v3467_v56, 0.0  ;;  %v4877_v55 = vld [vmem:[#allocation9 + $0x158] sm:$0xff]   ;;  %v4879_v15 = vld [vmem:[#allocation9 + $0x150] sm:$0xff]  }
 0x1b3   :  { %v3424_v61 = vmul.f32 %v6507_v58, %v2743_v18  ;;  %v3482_v58 = vadd.f32 %v6522_v21, %v3417_v48  ;;  %v6576_v7 = vpop.f32.mrf.mxu1  ;;  %v3509_v11 = vmax.f32 %v3481_v46, 0.0  ;;  %v4875_v18 = vld [vmem:[#allocation9 + $0x160] sm:$0xff]   ;;  %v4880_v52 = vld [vmem:[#allocation9 + $0x110] sm:$0xff]   ;;  %v4881_v48 = vld [vmem:[#allocation9 + $0x148] sm:$0xff]  }
 0x1b4   :  { %4710 = vmatpush3.bf16.msra.mxu0 %v4844_v8  ;;  %v3523_v35 = vpack.c.bf16 %v3502_v49, %v3495_v53  ;;  %v3488_v8 = vadd.f32 %v3435_v30, %v3423_v27  ;;  %v4866_v12 = vld [vmem:[#allocation9 + $0x88] sm:$0xff]   ;;  %v4867_v56 = vld [vmem:[#allocation9 + $0xc0] sm:$0xff]  }
 0x1b5   :  { %4659 = vmatpush3.bf16.msra.mxu1 %v6991_v20  ;;  %4711 = vmatprep.subr.bf16.mxu0 %v4845_v44  ;;  %v3489_v23 = vadd.f32 %v6522_v21, %v3424_v61  ;;  %v3510_v34 = vmax.f32 %v3482_v58, 0.0  ;;  %v6578_v9 = vpop.f32.mrf.mxu1  ;;  %v4864_v61 = vld [vmem:[#allocation9 + $0x90] sm:$0xff]   ;;  %v4868_v58 = vld [vmem:[#allocation9 + $0x80] sm:$0xff]  }
 0x1b6   :  { %4791 = vmatprep.subr.bf16.mxu1 %v4554_v38  ;;  %v3516_v44 = vmax.f32 %v3488_v8, 0.0  ;;  %v4884_v49 = vld [vmem:[#allocation9 + $0x100] sm:$0xff]  }
 0x1b7   :  { %v3517_v62 = vmax.f32 %v3489_v23, 0.0 }
 0x1b8   :  { %3251 = vmatmul.mubr.bf16.vlgmr.msra.gmra.mxu1 %v6992_v4  ;;  %4712 = vmatpush3.bf16.msra.mxu0 %v4846_v54  ;;  %v3530_v54 = vpack.c.bf16 %v3516_v44, %v3509_v11  ;;  %v4862_v4 = vld [vmem:[#allocation9 + $0x98] sm:$0xff]  }
 0x1b9   :  { %4792 = vmatpush3.bf16.msra.mxu1 %v4554_v38  ;;  %3258 = vmatprep.mubr.bf16.mxu1 %v6993_v59  ;;  %v3531_v21 = vpack.c.bf16 %v3517_v62, %v3510_v34  ;;  %v6582_v38 = vpop.f32.mrf.mxu1  ;;  %v3381_v62 = vsub.s32 3, %v6485_v33  ;;  %v3377_v34 = vsub.s32 2, %v6485_v33 }
 0x1ba   :  { %4713 = vmatprep.subr.bf16.mxu0 %v4847_v63  ;;  %4731 = vmatprep.subr.bf16.mxu1 %v4853_v51  ;;  %v4860_v63 = vld [vmem:[#allocation9 + $0xa0] sm:$0xff]  }
 0x1bb   :  { %v6584_v20 = vpop.f32.mrf.mxu1  ;;  %v4876_v51 = vld [vmem:[#allocation9 + $0x120] sm:$0xff]   ;;  %v3378_v44 = vrot.slane %v6504_v6, %v3377_v34 }
 0x1bc   :  { %4714 = vmatpush3.bf16.msra.mxu0 %v4848_v26  ;;  %v4878_v26 = vld [vmem:[#allocation9 + $0x118] sm:$0xff]  }
 0x1bd   :  { %4715 = vmatprep.subr.bf16.mxu0 %v4849_v28  ;;  %v6586_v36 = vpop.f32.mrf.mxu1 }
 0x1bf   :  { %v6588_v31 = vpop.f32.mrf.mxu1 }
 0x1c0   :  { %3259 = vmatmul.mubr.bf16.gmra.mxu1 %v6994_v57  ;;  %4716 = vmatpush3.bf16.msra.mxu0 %v4850_v40 }
 0x1c1   :  { %4793 = vmatprep.mubr.msk.bf16.mxu1 %vm2526_vm0, %v6995_v43  ;;  %4717 = vmatprep.subr.bf16.mxu0 %v4851_v14  ;;  %v4882_v14 = vld [vmem:[#allocation9 + $0x108] sm:$0xff]  }
 0x1c4   :  { %4718 = vmatpush3.bf16.msra.mxu0 %v4852_v29 }
 0x1c5   :  { %4759 = vmatprep.subr.bf16.mxu0 %v4869_v2 }
 0x1c7   :  { %3984 = vmatmul.mubr.bf16.vlgmr.msra.gmra.mxu0 %v3523_v35  ;;  %v2832_v22 = vpop.f32.mrf.mxu0 }
 0x1c8   :  { %4794 = vmatmul.mubr.msk.bf16.vlgmr.msra.gmra.mxu1 %vm2526_vm0, %v6415_v19  ;;  %3991 = vmatprep.mubr.bf16.mxu0 %v3531_v21  ;;  %v4859_v19 = vld [vmem:[#allocation9 + $0xe0] sm:$0xff]   ;;  %v2833_v53 = vadd.f32 %v2832_v22, %v6566_v3 }
 0x1c9   :  { %4732 = vmatpush3.bf16.msra.mxu1 %v4854_v16  ;;  %4760 = vmatpush3.bf16.msra.mxu0 %v4870_v50  ;;  %v2834_v59 = vpop.f32.mrf.mxu0 }
 0x1ca   :  { %4733 = vmatprep.subr.bf16.mxu1 %v4855_v32  ;;  %4761 = vmatprep.subr.bf16.mxu0 %v4871_v41  ;;  %v2835_v35 = vadd.f32 %v2834_v59, %v6570_v24  ;;  %v3382_v41 = vrot.slane %v6504_v6, %v3381_v62 }
 0x1cb   :  { %v2836_v40 = vpop.f32.mrf.mxu0 }
 0x1cc   :  { %v2837_v21 = vadd.f32 %v2836_v40, %v6576_v7 }
 0x1cd   :  { %4734 = vmatpush3.bf16.msra.mxu1 %v4856_v10  ;;  %4762 = vmatpush3.bf16.msra.mxu0 %v4872_v0  ;;  %v2838_v57 = vpop.f32.mrf.mxu0 }
 0x1ce   :  { %4735 = vmatprep.subr.bf16.mxu1 %v4857_v13  ;;  %4763 = vmatprep.subr.bf16.mxu0 %v4873_v5  ;;  %v2839_v0 = vadd.f32 %v2838_v57, %v6578_v9 }
 0x1cf   :  { %3992 = vmatmul.mubr.bf16.gmra.mxu0 %v3530_v54  ;;  %v2842_v43 = vpop.f32.mrf.mxu0 }
 0x1d0   :  { %v2843_v7 = vadd.f32 %v2842_v43, %v6582_v38 }
 0x1d1   :  { %4736 = vmatpush3.bf16.msra.mxu1 %v4858_v60  ;;  %4764 = vmatpush3.bf16.msra.mxu0 %v4874_v47  ;;  %v2844_v8 = vpop.f32.mrf.mxu0  ;;  %v3447_v60 = vrot.slane %v6515_v1, %v3381_v62 }
 0x1d2   :  { %4737 = vmatprep.subr.bf16.mxu1 %v4859_v19  ;;  %4765 = vmatprep.subr.bf16.mxu0 %v4875_v18  ;;  %v3443_v18 = vrot.slane %v6515_v1, %v3377_v34 }
 0x1d3   :  { %v2846_v5 = vpop.f32.mrf.mxu0 }
 0x1d5   :  { %4738 = vmatpush3.bf16.msra.mxu1 %v4860_v63  ;;  %4766 = vmatpush3.bf16.msra.mxu0 %v4876_v51  ;;  %v2845_v51 = vadd.f32 %v2844_v8, %v6584_v20  ;;  %v2848_v9 = vpop.f32.mrf.mxu0 }
 0x1d6   :  { %4739 = vmatprep.subr.bf16.mxu1 %v4861_v42  ;;  %4767 = vmatprep.subr.bf16.mxu0 %v4877_v55 }
 0x1d8   :  { %v2885_v28 = vpop.f32.mrf.mxu1 }
 0x1d9   :  { %4740 = vmatpush3.bf16.msra.mxu1 %v4862_v4  ;;  %4768 = vmatpush3.bf16.msra.mxu0 %v4878_v26  ;;  %v2886_v16 = vadd.f32 %v2885_v28, %v2833_v53  ;;  %v2847_v28 = vadd.f32 %v2846_v5, %v6586_v36 }
 0x1da   :  { %v2887_v30 = vpop.f32.mrf.mxu1  ;;  %4741 = vmatprep.subr.bf16.mxu1 %v4863_v25  ;;  %4769 = vmatprep.subr.bf16.mxu0 %v4879_v15 }
 0x1db   :  { %v2888_v32 = vadd.f32 %v2887_v30, %v2835_v35  ;;  %v2849_v30 = vadd.f32 %v2848_v9, %v6588_v31 }
 0x1dc   :  { %v2889_v39 = vpop.f32.mrf.mxu1 }
 0x1dd   :  { %4742 = vmatpush3.bf16.msra.mxu1 %v4864_v61  ;;  %4770 = vmatpush3.bf16.msra.mxu0 %v4880_v52  ;;  %v2890_v3 = vadd.f32 %v2889_v39, %v2837_v21 }
 0x1de   :  { %v2891_v23 = vpop.f32.mrf.mxu1  ;;  %4743 = vmatprep.subr.bf16.mxu1 %v4865_v45  ;;  %4771 = vmatprep.subr.bf16.mxu0 %v4881_v48 }
 0x1df   :  { %v2892_v54 = vadd.f32 %v2891_v23, %v2839_v0 }
 0x1e0   :  { %v2895_v29 = vpop.f32.mrf.mxu1 }
 0x1e1   :  { %4744 = vmatpush3.bf16.msra.mxu1 %v4866_v12  ;;  %4772 = vmatpush3.bf16.msra.mxu0 %v4882_v14  ;;  %v2896_v22 = vadd.f32 %v2895_v29, %v2843_v7 }
 0x1e2   :  { %v2897_v27 = vpop.f32.mrf.mxu1  ;;  %4745 = vmatprep.subr.bf16.mxu1 %v4867_v56  ;;  %4773 = vmatprep.subr.bf16.mxu0 %v4883_v17 }
 0x1e3   :  { %v2898_v26 = vadd.f32 %v2897_v27, %v2845_v51 }
 0x1e4   :  { %v2899_v2 = vpop.f32.mrf.mxu1 }
 0x1e5   :  { %4746 = vmatpush3.bf16.msra.mxu1 %v4868_v58  ;;  %4774 = vmatpush3.bf16.msra.mxu0 %v4884_v49  ;;  %v2900_v40 = vadd.f32 %v2899_v2, %v2847_v28 }
 0x1e6   :  { %v2901_v37 = vpop.f32.mrf.mxu1 }
 0x1e7   :  { %v2902_v12 = vadd.f32 %v2901_v37, %v2849_v30 }
 0x1e8   :  { %v2938_v50 = vpop.f32.mrf.mxu1 }
 0x1e9   :  { %v2939_v46 = vadd.f32 %v2938_v50, %v2886_v16 }
 0x1ea   :  { %v2940_v10 = vpop.f32.mrf.mxu1 }
 0x1eb   :  { %v2941_v13 = vadd.f32 %v2940_v10, %v2888_v32  ;;  %v3404_v19 = vmul.f32 %v3378_v44, %v2939_v46  ;;  %v4885_v32 = vld [vmem:[#allocation9 + $0x188] sm:$0xff]   ;;  %v4886_v46 = vld [vmem:[#allocation9 + $0x180] sm:$0xff]  }
 0x1ec   :  { %v2942_v11 = vpop.f32.mrf.mxu1  ;;  %4797 = vmatprep.subr.bf16.mxu1 %v4885_v32 }
 0x1ed   :  { %v3405_v24 = vmul.f32 %v3382_v41, %v2941_v13  ;;  %v2943_v47 = vadd.f32 %v2942_v11, %v2890_v3  ;;  %v3469_v61 = vadd.f32 %v3443_v18, %v3404_v19 }
 0x1ee   :  { %v2944_v63 = vpop.f32.mrf.mxu1 }
 0x1ef   :  { %v3411_v42 = vmul.f32 %v3378_v44, %v2943_v47  ;;  %v2945_v55 = vadd.f32 %v2944_v63, %v2892_v54  ;;  %v3470_v25 = vadd.f32 %v3447_v60, %v3405_v24  ;;  %v3497_v17 = vmax.f32 %v3469_v61, 0.0 }
 0x1f0   :  { %v2948_v4 = vpop.f32.mrf.mxu1 }
 0x1f1   :  { %v3476_v15 = vadd.f32 %v3443_v18, %v3411_v42  ;;  %v3412_v59 = vmul.f32 %v3382_v41, %v2945_v55  ;;  %v2949_v52 = vadd.f32 %v2948_v4, %v2896_v22  ;;  %v3498_v14 = vmax.f32 %v3470_v25, 0.0 }
 0x1f2   :  { %v2950_v38 = vpop.f32.mrf.mxu1  ;;  %v3385_v4 = vsub.s32 4, %v6485_v33 }
 0x1f3   :  { %v3477_v45 = vadd.f32 %v3447_v60, %v3412_v59  ;;  %v2951_v48 = vadd.f32 %v2950_v38, %v2898_v26  ;;  %v3504_v20 = vmax.f32 %v3476_v15, 0.0  ;;  %v3418_v57 = vmul.f32 %v3378_v44, %v2949_v52 }
 0x1f4   :  { %v2952_v39 = vpop.f32.mrf.mxu1  ;;  %v3389_v26 = vsub.s32 5, %v6485_v33  ;;  %v3386_v38 = vrot.slane %v6504_v6, %v3385_v4 }
 0x1f5   :  { %v3505_v23 = vmax.f32 %v3477_v45, 0.0  ;;  %v3419_v56 = vmul.f32 %v3382_v41, %v2951_v48  ;;  %v2953_v29 = vadd.f32 %v2952_v39, %v2900_v40  ;;  %v3525_v27 = vpack.c.bf16 %v3504_v20, %v3497_v17 }
 0x1f6   :  { %v2954_v58 = vpop.f32.mrf.mxu1  ;;  %v3483_v31 = vadd.f32 %v3443_v18, %v3418_v57  ;;  %v3390_v45 = vrot.slane %v6504_v6, %v3389_v26 }
 0x1f7   :  { %v2955_v49 = vadd.f32 %v2954_v58, %v2902_v12  ;;  %v3526_v36 = vpack.c.bf16 %v3505_v23, %v3498_v14  ;;  %v3425_v43 = vmul.f32 %v3378_v44, %v2953_v29  ;;  %v3484_v62 = vadd.f32 %v3447_v60, %v3419_v56 }
 0x1f8   :  { %v3511_v16 = vmax.f32 %v3483_v31, 0.0  ;;  %v3451_v29 = vrot.slane %v6515_v1, %v3385_v4 }
 0x1f9   :  { %v3426_v53 = vmul.f32 %v3382_v41, %v2955_v49  ;;  %4032 = vmatprep.mubr.bf16.mxu1 %v3526_v36  ;;  %v3490_v34 = vadd.f32 %v3443_v18, %v3425_v43  ;;  %v3512_v37 = vmax.f32 %v3484_v62, 0.0 }
 0x1fa   :  { %4033 = vmatmul.mubr.bf16.vlgmr.msra.gmra.mxu1 %v3525_v27  ;;  %v3455_v27 = vrot.slane %v6515_v1, %v3389_v26 }
 0x1fb   :  { %v3491_v2 = vadd.f32 %v3447_v60, %v3426_v53  ;;  %v3518_v35 = vmax.f32 %v3490_v34, 0.0  ;;  %4798 = vmatpush3.bf16.msra.mxu1 %v4885_v32 }
 0x1fc   :  { %4799 = vmatprep.subr.bf16.mxu1 %v4886_v46 }
 0x1fd   :  { %v3519_v8 = vmax.f32 %v3491_v2, 0.0  ;;  %v3532_v21 = vpack.c.bf16 %v3518_v35, %v3511_v16 }
 0x1ff   :  { %v3533_v50 = vpack.c.bf16 %v3519_v8, %v3512_v37  ;;  %4800 = vmatpush3.bf16.msra.mxu1 %v4886_v46 }
 0x201   :  { %4040 = vmatprep.mubr.bf16.mxu1 %v3533_v50 }
 0x202   :  { %4041 = vmatmul.mubr.bf16.gmra.mxu1 %v3532_v21 }
 0x207   :  { %v2991_v10 = vpop.f32.mrf.mxu0 }
 0x209   :  { %v2993_v13 = vpop.f32.mrf.mxu0 }
 0x20b   :  { %v2995_v54 = vpop.f32.mrf.mxu0 }
 0x20d   :  { %v2997_v60 = vpop.f32.mrf.mxu0 }
 0x20f   :  { %v3001_v47 = vpop.f32.mrf.mxu0 }
 0x211   :  { %v3003_v19 = vpop.f32.mrf.mxu0 }
 0x213   :  { %v3005_v63 = vpop.f32.mrf.mxu0 }
 0x215   :  { %v3007_v42 = vpop.f32.mrf.mxu0 }
 0x228   :  { %v3044_v41 = vpop.f32.mrf.mxu1 }
 0x229   :  { %v3045_v9 = vadd.f32 %v3044_v41, %v2991_v10 }
 0x22a   :  { %v3046_v44 = vpop.f32.mrf.mxu1 }
 0x22b   :  { %v3047_v25 = vadd.f32 %v3046_v44, %v2993_v13 }
 0x22c   :  { %v3048_v0 = vpop.f32.mrf.mxu1 }
 0x22d   :  { %v3049_v61 = vadd.f32 %v3048_v0, %v2995_v54 }
 0x22e   :  { %v3050_v3 = vpop.f32.mrf.mxu1 }
 0x22f   :  { %v3051_v40 = vadd.f32 %v3050_v3, %v2997_v60 }
 0x230   :  { %v3054_v5 = vpop.f32.mrf.mxu1 }
 0x231   :  { %v3055_v23 = vadd.f32 %v3054_v5, %v3001_v47 }
 0x232   :  { %v3056_v11 = vpop.f32.mrf.mxu1 }
 0x233   :  { %v3057_v57 = vadd.f32 %v3056_v11, %v3003_v19 }
 0x234   :  { %v3058_v24 = vpop.f32.mrf.mxu1 }
 0x235   :  { %v3059_v2 = vadd.f32 %v3058_v24, %v3005_v63 }
 0x236   :  { %v3060_v7 = vpop.f32.mrf.mxu1 }
 0x237   :  { %v3061_v16 = vadd.f32 %v3060_v7, %v3007_v42 }
 0x238   :  { %v3150_v18 = vpop.f32.mrf.mxu1 }
 0x23a   :  { %v3152_v51 = vpop.f32.mrf.mxu1 }
 0x23c   :  { %v3154_v55 = vpop.f32.mrf.mxu1 }
 0x23e   :  { %v3156_v59 = vpop.f32.mrf.mxu1 }
 0x240   :  { %v3160_v30 = vpop.f32.mrf.mxu1 }
 0x242   :  { %v3162_v49 = vpop.f32.mrf.mxu1 }
 0x244   :  { %v3164_v50 = vpop.f32.mrf.mxu1 }
 0x246   :  { %v3166_v60 = vpop.f32.mrf.mxu1 }
 0x247   :  { %v3097_v22 = vpop.f32.mrf.mxu0 }
 0x248   :  { %v3098_v15 = vadd.f32 %v3097_v22, %v3045_v9 }
 0x249   :  { %v3099_v28 = vpop.f32.mrf.mxu0 }
 0x24a   :  { %v3100_v52 = vadd.f32 %v3099_v28, %v3047_v25  ;;  %v3151_v20 = vadd.f32 %v3150_v18, %v3098_v15 }
 0x24b   :  { %v3101_v48 = vpop.f32.mrf.mxu0 }
 0x24c   :  { %v3153_v39 = vadd.f32 %v3152_v51, %v3100_v52  ;;  %v3102_v12 = vadd.f32 %v3101_v48, %v3049_v61  ;;  %v3406_v43 = vmul.f32 %v3386_v38, %v3151_v20 }
 0x24d   :  { %v3103_v14 = vpop.f32.mrf.mxu0 }
 0x24e   :  { %v3155_v56 = vadd.f32 %v3154_v55, %v3102_v12  ;;  %v3104_v17 = vadd.f32 %v3103_v14, %v3051_v40  ;;  %v3407_v58 = vmul.f32 %v3390_v45, %v3153_v39  ;;  %v3471_v46 = vadd.f32 %v3451_v29, %v3406_v43 }
 0x24f   :  { %v3107_v36 = vpop.f32.mrf.mxu0 }
 0x250   :  { %v3413_v62 = vmul.f32 %v3386_v38, %v3155_v56  ;;  %v3157_v53 = vadd.f32 %v3156_v59, %v3104_v17  ;;  %v3108_v31 = vadd.f32 %v3107_v36, %v3055_v23  ;;  %v3472_v32 = vadd.f32 %v3455_v27, %v3407_v58 }
 0x251   :  { %v3109_v34 = vpop.f32.mrf.mxu0  ;;  %v3499_v19 = vmax.f32 %v3471_v46, 0.0 }
 0x252   :  { %v3478_v35 = vadd.f32 %v3451_v29, %v3413_v62  ;;  %v3414_v37 = vmul.f32 %v3390_v45, %v3157_v53  ;;  %v3110_v8 = vadd.f32 %v3109_v34, %v3057_v57  ;;  %v3161_v41 = vadd.f32 %v3160_v30, %v3108_v31 }
 0x253   :  { %v3111_v21 = vpop.f32.mrf.mxu0  ;;  %v3500_v47 = vmax.f32 %v3472_v32, 0.0 }
 0x254   :  { %v3163_v44 = vadd.f32 %v3162_v49, %v3110_v8  ;;  %v3112_v10 = vadd.f32 %v3111_v21, %v3059_v2  ;;  %v3479_v3 = vadd.f32 %v3455_v27, %v3414_v37  ;;  %v3506_v13 = vmax.f32 %v3478_v35, 0.0 }
 0x255   :  { %v3113_v0 = vpop.f32.mrf.mxu0  ;;  %v3420_v18 = vmul.f32 %v3386_v38, %v3161_v41 }
 0x256   :  { %v3421_v5 = vmul.f32 %v3390_v45, %v3163_v44  ;;  %v3165_v11 = vadd.f32 %v3164_v50, %v3112_v10  ;;  %v3114_v54 = vadd.f32 %v3113_v0, %v3061_v16  ;;  %v3507_v24 = vmax.f32 %v3479_v3, 0.0 }
 0x257   :  { %v3527_v42 = vpack.c.bf16 %v3506_v13, %v3499_v19  ;;  %v3485_v25 = vadd.f32 %v3451_v29, %v3420_v18  ;;  %v3393_v44 = vsub.s32 6, %v6485_v33 }
 0x258   :  { %v3427_v63 = vmul.f32 %v3386_v38, %v3165_v11  ;;  %v3167_v7 = vadd.f32 %v3166_v60, %v3114_v54  ;;  %v3528_v51 = vpack.c.bf16 %v3507_v24, %v3500_v47  ;;  %v3486_v9 = vadd.f32 %v3455_v27, %v3421_v5  ;;  %v4632_v4 = vpop.f32.mrf.mxu1 }
 0x259   :  { %v3513_v30 = vmax.f32 %v3485_v25, 0.0  ;;  %v3394_v19 = vrot.slane %v6504_v6, %v3393_v44 }
 0x25a   :  { %v3428_v55 = vmul.f32 %v3390_v45, %v3167_v7  ;;  %v3492_v22 = vadd.f32 %v3451_v29, %v3427_v63  ;;  %4081 = vmatprep.mubr.bf16.mxu0 %v3528_v51  ;;  %v3514_v15 = vmax.f32 %v3486_v9, 0.0  ;;  %v4633_v61 = vpop.f32.mrf.mxu1 }
 0x25b   :  { %4082 = vmatmul.mubr.bf16.vlgmr.msra.gmra.mxu0 %v3527_v42  ;;  %v4634_v34 = vadd.f32 %v4633_v61, %v4632_v4  ;;  %v3459_v4 = vrot.slane %v6515_v1, %v3393_v44 }
 0x25c   :  { %v3493_v26 = vadd.f32 %v3455_v27, %v3428_v55  ;;  %v3520_v28 = vmax.f32 %v3492_v22, 0.0  ;;  %v4635_v38 = vpop.f32.mrf.mxu1 }
 0x25e   :  { %v3521_v59 = vmax.f32 %v3493_v26, 0.0  ;;  %v3534_v48 = vpack.c.bf16 %v3520_v28, %v3513_v30  ;;  %v4636_v40 = vpop.f32.mrf.mxu1 }
 0x25f   :  { %v4637_v10 = vadd.f32 %v4636_v40, %v4635_v38 }
 0x260   :  { %v3535_v52 = vpack.c.bf16 %v3521_v59, %v3514_v15  ;;  %v4638_v20 = vpop.f32.mrf.mxu1 }
 0x262   :  { %4089 = vmatprep.mubr.bf16.mxu0 %v3535_v52  ;;  %v4639_v39 = vpop.f32.mrf.mxu1 }
 0x263   :  { %4090 = vmatmul.mubr.bf16.gmra.mxu0 %v3534_v48  ;;  %v4640_v2 = vadd.f32 %v4639_v39, %v4638_v20 }
 0x264   :  { %v4641_v14 = vpop.f32.mrf.mxu1 }
 0x266   :  { %v4642_v56 = vpop.f32.mrf.mxu1 }
 0x267   :  { %v4688_v45 = vpop.f32.mrf.mxu0  ;;  %v4643_v0 = vadd.f32 %v4642_v56, %v4641_v14 }
 0x269   :  { %v4689_v12 = vpop.f32.mrf.mxu0 }
 0x26a   :  { %v4690_v50 = vadd.f32 %v4689_v12, %v4688_v45 }
 0x26b   :  { %v4691_v23 = vpop.f32.mrf.mxu0 }
 0x26d   :  { %v4692_v17 = vpop.f32.mrf.mxu0 }
 0x26e   :  { %v4693_v63 = vadd.f32 %v4692_v17, %v4691_v23 }
 0x26f   :  { %v4694_v58 = vpop.f32.mrf.mxu0 }
 0x271   :  { %v4695_v27 = vpop.f32.mrf.mxu0 }
 0x272   :  { %v4696_v37 = vadd.f32 %v4695_v27, %v4694_v58 }
 0x273   :  { %v4697_v31 = vpop.f32.mrf.mxu0 }
 0x275   :  { %v4698_v41 = vpop.f32.mrf.mxu0 }
 0x276   :  { %v4699_v60 = vadd.f32 %v4698_v41, %v4697_v31 }
 0x278   :  { %v4660_v57 = vpop.f32.mrf.mxu1 }
 0x27a   :  { %v4661_v29 = vpop.f32.mrf.mxu1 }
 0x27b   :  { %v4662_v62 = vadd.f32 %v4661_v29, %v4660_v57 }
 0x27c   :  { %v4663_v49 = vpop.f32.mrf.mxu1 }
 0x27d   :  { %v3253_v16 = vadd.f32 %v4662_v62, %v4634_v34 }
 0x27e   :  { %v4664_v36 = vpop.f32.mrf.mxu1 }
 0x27f   :  { %v4665_v21 = vadd.f32 %v4664_v36, %v4663_v49  ;;  %v3302_v47 = vadd.f32 %v4690_v50, %v3253_v16 }
 0x280   :  { %v4666_v43 = vpop.f32.mrf.mxu1 }
 0x281   :  { %v3256_v11 = vadd.f32 %v4665_v21, %v4637_v10 }
 0x282   :  { %v4667_v53 = vpop.f32.mrf.mxu1 }
 0x283   :  { %v4668_v35 = vadd.f32 %v4667_v53, %v4666_v43  ;;  %v3305_v33 = vadd.f32 %v4693_v63, %v3256_v11 }
 0x284   :  { %v4669_v8 = vpop.f32.mrf.mxu1 }
 0x285   :  { %v3261_v32 = vadd.f32 %v4668_v35, %v4640_v2 }
 0x286   :  { %v4670_v46 = vpop.f32.mrf.mxu1 }
 0x287   :  { %v4671_v3 = vadd.f32 %v4670_v46, %v4669_v8  ;;  %v3310_v13 = vadd.f32 %v4696_v37, %v3261_v32  ;;  %v4719_v39 = vpop.f32.mrf.mxu0  ;;  %v4563_v32 = vld [vmem:[%s6633_s5] ss:$0 sm:$0xff] }
 0x288   :  { %v4795_v5 = vpop.f32.mrf.mxu1 }
 0x289   :  { %v3264_v54 = vadd.f32 %v4671_v3, %v4643_v0  ;;  %v3359_v24 = vadd.f32 %v4795_v5, %v3310_v13  ;;  %v4720_v12 = vpop.f32.mrf.mxu0 }
 0x28a   :  { %v3350_v18 = vpop.f32.mrf.mxu1  ;;  %v4721_v50 = vadd.f32 %v4720_v12, %v4719_v39 }
 0x28b   :  { %v3351_v7 = vadd.f32 %v3350_v18, %v3302_v47  ;;  %v3313_v51 = vadd.f32 %v4699_v60, %v3264_v54  ;;  %v3422_v22 = vmul.f32 %v3394_v19, %v3359_v24  ;;  %v4722_v1 = vpop.f32.mrf.mxu0 }
 0x28c   :  { %v4796_v42 = vpop.f32.mrf.mxu1  ;;  %v3986_v5 = vadd.f32 %v4721_v50, %v4563_v32 }
 0x28d   :  { %v3408_v55 = vmul.f32 %v3394_v19, %v3351_v7  ;;  %v3362_v9 = vadd.f32 %v4796_v42, %v3313_v51  ;;  %v3487_v52 = vadd.f32 %v3459_v4, %v3422_v22  ;;  %v4723_v14 = vpop.f32.mrf.mxu0 }
 0x28e   :  { %v3353_v26 = vpop.f32.mrf.mxu1  ;;  %v4724_v3 = vadd.f32 %v4723_v14, %v4722_v1 }
 0x28f   :  { %v3429_v25 = vmul.f32 %v3394_v19, %v3362_v9  ;;  %v3354_v15 = vadd.f32 %v3353_v26, %v3305_v33  ;;  %v3473_v59 = vadd.f32 %v3459_v4, %v3408_v55  ;;  %v3515_v40 = vmax.f32 %v3487_v52, 0.0  ;;  %v4725_v23 = vpop.f32.mrf.mxu0 }
 0x290   :  { %v3989_v7 = vadd.f32 %v4724_v3, %v4563_v32 }
 0x291   :  { %v3494_v28 = vadd.f32 %v3459_v4, %v3429_v25  ;;  %v3415_v61 = vmul.f32 %v3394_v19, %v3354_v15  ;;  %v3501_v48 = vmax.f32 %v3473_v59, 0.0  ;;  %v4726_v56 = vpop.f32.mrf.mxu0 }
 0x292   :  { %v4727_v8 = vadd.f32 %v4726_v56, %v4725_v23 }
 0x293   :  { %v3480_v30 = vadd.f32 %v3459_v4, %v3415_v61  ;;  %v3522_v6 = vmax.f32 %v3494_v28, 0.0  ;;  %v4728_v17 = vpop.f32.mrf.mxu0 }
 0x294   :  { %v3994_v44 = vadd.f32 %v4727_v8, %v4563_v32 }
 0x295   :  { %v3508_v38 = vmax.f32 %v3480_v30, 0.0  ;;  %v3536_v45 = vpack.c.bf16 %v3522_v6, %v3515_v40  ;;  %v4729_v57 = vpop.f32.mrf.mxu0 }
 0x296   :  { %v4730_v46 = vadd.f32 %v4729_v57, %v4728_v17 }
 0x297   :  { %v3529_v20 = vpack.c.bf16 %v3508_v38, %v3501_v48 }
 0x298   :  { %v3997_v47 = vadd.f32 %v4730_v46, %v4563_v32 }
 0x299   :  { %4801 = vmatprep.mubr.msk.bf16.mxu1 %vm3944_vm1, %v3529_v20 }
 0x29a   :  { %4802 = vmatmul.mubr.msk.bf16.vlgmr.msra.gmra.mxu1 %vm3944_vm1, %v3536_v45 }
 0x2ba   :  { %v4747_v29 = vpop.f32.mrf.mxu1 }
 0x2bc   :  { %v4748_v49 = vpop.f32.mrf.mxu1 }
 0x2bd   :  { %v4749_v10 = vadd.f32 %v4748_v49, %v4747_v29 }
 0x2be   :  { %v4750_v27 = vpop.f32.mrf.mxu1 }
 0x2bf   :  { %v4035_v24 = vadd.f32 %v4749_v10, %v3986_v5 }
 0x2c0   :  { %v4751_v62 = vpop.f32.mrf.mxu1 }
 0x2c1   :  { %v4752_v19 = vadd.f32 %v4751_v62, %v4750_v27 }
 0x2c2   :  { %v4753_v31 = vpop.f32.mrf.mxu1 }
 0x2c3   :  { %v4038_v4 = vadd.f32 %v4752_v19, %v3989_v7 }
 0x2c4   :  { %v4754_v2 = vpop.f32.mrf.mxu1 }
 0x2c5   :  { %v4755_v21 = vadd.f32 %v4754_v2, %v4753_v31 }
 0x2c6   :  { %v4756_v37 = vpop.f32.mrf.mxu1 }
 0x2c7   :  { %v4043_v11 = vadd.f32 %v4755_v21, %v3994_v44 }
 0x2c8   :  { %v4757_v41 = vpop.f32.mrf.mxu1 }
 0x2c9   :  { %v4758_v54 = vadd.f32 %v4757_v41, %v4756_v37 }
 0x2cb   :  { %v4046_v42 = vadd.f32 %v4758_v54, %v3997_v47 }
 0x31b   :  { %v4775_v58 = vpop.f32.mrf.mxu0 }
 0x31d   :  { %v4776_v36 = vpop.f32.mrf.mxu0 }
 0x31e   :  { %v4777_v60 = vadd.f32 %v4776_v36, %v4775_v58 }
 0x31f   :  { %v4778_v43 = vpop.f32.mrf.mxu0 }
 0x320   :  { %v4084_v33 = vadd.f32 %v4777_v60, %v4035_v24 }
 0x321   :  { %v4779_v53 = vpop.f32.mrf.mxu0 }
 0x322   :  { %v4780_v55 = vadd.f32 %v4779_v53, %v4778_v43 }
 0x323   :  { %v4781_v34 = vpop.f32.mrf.mxu0 }
 0x324   :  { %v4087_v28 = vadd.f32 %v4780_v55, %v4038_v4 }
 0x325   :  { %v4782_v35 = vpop.f32.mrf.mxu0 }
 0x326   :  { %v4783_v0 = vadd.f32 %v4782_v35, %v4781_v34 }
 0x327   :  { %v4784_v16 = vpop.f32.mrf.mxu0 }
 0x328   :  { %v4092_v63 = vadd.f32 %v4783_v0, %v4043_v11 }
 0x329   :  { %v4785_v13 = vpop.f32.mrf.mxu0 }
 0x32a   :  { %v4786_v18 = vadd.f32 %v4785_v13, %v4784_v16 }
 0x32c   :  { %v4095_v25 = vadd.f32 %v4786_v18, %v4046_v42 }
 0x35a   :  { %v4803_v51 = vpop.f32.mrf.mxu1 }
 0x35b   :  { %v4141_v9 = vadd.f32 %v4803_v51, %v4092_v63 }
 0x35c   :  { %v4132_v22 = vpop.f32.mrf.mxu1 }
 0x35d   :  { %v4133_v26 = vadd.f32 %v4132_v22, %v4084_v33  ;;  %4151 = vmax.xlane.f32.xlu1 %v4141_v9 }
 0x35e   :  { %v4804_v15 = vpop.f32.mrf.mxu1 }
 0x35f   :  { %v4144_v59 = vadd.f32 %v4804_v15, %v4095_v25  ;;  %4147 = vmax.xlane.f32.xlu0 %v4133_v26 }
 0x360   :  { %v4135_v61 = vpop.f32.mrf.mxu1 }
 0x361   :  { %v4136_v52 = vadd.f32 %v4135_v61, %v4087_v28  ;;  %4153 = vmax.xlane.f32.xlu1 %v4144_v59 }
 0x363   :  { %4149 = vmax.xlane.f32.xlu0 %v4136_v52 }
 0x3e6   :  { %v4152_v30 = vpop.xlane.xlu1 %4151 }
 0x3e7   :  { %v4157_v6 = vsub.f32 %v4141_v9, %v4152_v30 }
 0x3e8   :  { %v4148_v48 = vpop.xlane.xlu0 %4147 }
 0x3e9   :  { %v4155_v38 = vsub.f32 %v4133_v26, %v4148_v48  ;;  %v4163_v45 = vmul.f32 1.442695, %v4157_v6 }
 0x3ea   :  { %v4154_v40 = vpop.xlane.xlu1 %4153 }
 0x3eb   :  { %v4159_v20 = vmul.f32 1.442695, %v4155_v38  ;;  %v4158_v12 = vsub.f32 %v4144_v59, %v4154_v40 }
 0x3ec   :  { %v4150_v39 = vpop.xlane.xlu0 %4149 }
 0x3ed   :  { %4887 = vpow2.f32 %v4159_v20  ;;  %v4156_v1 = vsub.f32 %v4136_v52, %v4150_v39  ;;  %v4165_v23 = vmul.f32 1.442695, %v4158_v12 }
 0x3ee   :  { %4889 = vpow2.f32 %v4163_v45 }
 0x3ef   :  { %v4161_v14 = vmul.f32 1.442695, %v4156_v1 }
 0x3f1   :  { %4891 = vpow2.f32 %v4161_v14 }
 0x3f2   :  { %4893 = vpow2.f32 %v4165_v23 }
 0x3fa   :  { %v4888_v56 = vpop.eup %4887 }
 0x3fb   :  { %4167 = vadd.xlane.f32.xlu0 %v4888_v56  ;;  %v4890_v17 = vpop.eup %4889 }
 0x3fe   :  { %v4892_v57 = vpop.eup %4891 }
 0x3ff   :  { %4169 = vadd.xlane.f32.xlu1 %v4892_v57  ;;  %4171 = vadd.xlane.f32.xlu0 %v4890_v17  ;;  %v4894_v29 = vpop.eup %4893 }
 0x403   :  { %4173 = vadd.xlane.f32.xlu1 %v4894_v29 }
 0x484   :  { %v4168_v58 = vpop.xlane.xlu0 %4167 }
 0x485   :  { %4895 = vlog2.f32 %v4168_v58 }
 0x488   :  { %v4172_v49 = vpop.xlane.xlu0 %4171  ;;  %v4170_v36 = vpop.xlane.xlu1 %4169 }
 0x489   :  { %4897 = vlog2.f32 %v4172_v49 }
 0x48a   :  { %4899 = vlog2.f32 %v4170_v36 }
 0x48c   :  { %v4174_v27 = vpop.xlane.xlu1 %4173 }
 0x48d   :  { %4901 = vlog2.f32 %v4174_v27 }
 0x492   :  { %v4896_v43 = vpop.eup %4895 }
 0x493   :  { %v4176_v62 = vmul.f32 0.6931472, %v4896_v43 }
 0x495   :  { %v4183_v53 = vsub.f32 %v4155_v38, %v4176_v62 }
 0x496   :  { %v4898_v31 = vpop.eup %4897 }
 0x497   :  { %v4900_v34 = vpop.eup %4899  ;;  %4187 = vst [vmem:[%s6634_s6] sm:$0xff] %v4183_v53  ;;  %v4180_v2 = vmul.f32 0.6931472, %v4898_v31 }
 0x498   :  { %v4178_v35 = vmul.f32 0.6931472, %v4900_v34 }
 0x499   :  { %v4185_v37 = vsub.f32 %v4157_v6, %v4180_v2 }
 0x49a   :  { %v4902_v8 = vpop.eup %4901  ;;  %v4184_v16 = vsub.f32 %v4156_v1, %v4178_v35 }
 0x49b   :  { %4189 = vst [vmem:[%s6634_s6 + $0x10] sm:$0xff] %v4185_v37  ;;  %v4182_v50 = vmul.f32 0.6931472, %v4902_v8 }
 0x49c   :  { %4188 = vst [vmem:[%s6634_s6 + $0x8] sm:$0xff] %v4184_v16 }
 0x49d   :  { %v4186_v21 = vsub.f32 %v4158_v12, %v4182_v50 }
 0x49f   :  { %4190 = vst [vmem:[%s6634_s6 + $0x18] sm:$0xff] %v4186_v21 }
 0x4a0   :  { %4195 = vsyncpa [#allocation3], 1 }
 0x4a1   :  { %4196 = vsyncpa [#allocation5], 1 }
 0x4a2   :  { %4197 = vsyncpa [#allocation8], 1 }

</bundles_post_ra>
